<compile_context>
chip_gen: v5e
topology: v5e:2x2
jax: 0.10.0
libtpu: 0.0.40
codegen_flags: <defaults>
</compile_context>

<pallas_src>
import random

import jax
import jax.numpy as jnp
from jax.experimental import pallas as pl
from jax.experimental.pallas import tpu as pltpu

# ---- config (stand-ins for the chatbot globals of the reference script) ----
VOCAB = 64            # len(chatbot_ws_target)
PAD, SOS, EOS = 0, 1, 2
EMB = 32              # chatbot_embedding_dim
DEC_H = 32            # decoder_hidden_size
ENC_H = 32            # hidden_size (encoder); equals DEC_H for dot attention
NUM_LAYERS = 1        # decoder_num_layers
TARGET_MAX_LEN = 7    # forward runs TARGET_MAX_LEN + 1 = 8 decode steps
T_STEPS = TARGET_MAX_LEN + 1
TEACH_FORCING = 0.5
BATCH = 2
ENC_S = 8             # encoder output sequence length

VPAD = 128            # vocab padded to a full 128-lane row for dense stores
NEG = -1.0e30         # logit value of pad columns (never wins max / argmax)


def fused_decoder_kernel(tf_ref,                                  # SMEM [1] int32
                         tgt_emb_ref, enc_ref, emb_ref,           # VMEM
                         w_ih_t_ref, b_rz_ref, b_in_ref, b_hn_ref,
                         wa_h_t_ref, wa_c_t_ref, fc_w_t_ref, fc_b_ref,
                         logp_ref, hid_ref):
    """Full forward: T fused steps of GRU(h0=0) -> attention -> Wa -> fc -> log_softmax,
    with in-kernel greedy / teacher-forced feedback."""
    D = DEC_H
    tf_w = tf_ref[0].astype(jnp.float32)          # 1.0 => teacher forcing, 0.0 => greedy

    # Hoist everything once: VMEM-resident for all T steps.
    w_ih_t = w_ih_t_ref[...]                       # [E, 3D]
    b_rz = b_rz_ref[...]                           # [1, 2D]  (b_ih + b_hh, r/z gates)
    b_in = b_in_ref[...]                           # [1, D]
    b_hn = b_hn_ref[...]                           # [1, D]
    wa_h_t = wa_h_t_ref[...]                       # [D, D]
    wa_c_t = wa_c_t_ref[...]                       # [H, D]
    fc_w_t = fc_w_t_ref[...]                       # [D, VPAD]
    fc_b = fc_b_ref[...]                           # [1, VPAD]
    enc = enc_ref[...]                             # [B, S, H]
    emb = emb_ref[...]                             # [VPAD, E] (pad rows are zero)

    col = jax.lax.broadcasted_iota(jnp.int32, (BATCH, VPAD), 1)

    x = tgt_emb_ref[0]                             # SOS embedding, [B, E]
    h = jnp.zeros((BATCH, D), jnp.float32)

    for t in range(T_STEPS):                       # static unroll, all indices static
        # --- GRU single step with h_prev = 0 (as in the reference call) ---
        gi = jnp.dot(x, w_ih_t, preferred_element_type=jnp.float32)   # [B, 3D]
        rz = jax.nn.sigmoid(gi[:, :2 * D] + b_rz)
        r = rz[:, :D]
        z = rz[:, D:]
        n = jnp.tanh(gi[:, 2 * D:] + b_in + r * b_hn)
        h = (1.0 - z) * n                                             # h_prev == 0

        # --- dot-product attention over encoder outputs ---
        scores = jnp.sum(enc * h[:, None, :], axis=-1)                # [B, S]
        scores = scores - jnp.max(scores, axis=-1, keepdims=True)
        e = jnp.exp(scores)
        attn = e / jnp.sum(e, axis=-1, keepdims=True)                 # softmax weights
        ctx = jnp.sum(attn[:, :, None] * enc, axis=1)                 # [B, H]

        # --- Wa(concat([out, context])) as split matmuls, then tanh ---
        out = jnp.tanh(jnp.dot(h, wa_h_t, preferred_element_type=jnp.float32)
                       + jnp.dot(ctx, wa_c_t, preferred_element_type=jnp.float32))

        # --- fc + log_softmax over the lane-dense padded vocab ---
        logits = jnp.dot(out, fc_w_t, preferred_element_type=jnp.float32) + fc_b
        m = jnp.max(logits, axis=-1, keepdims=True)
        sh = logits - m
        lse = jnp.log(jnp.sum(jnp.exp(sh), axis=-1, keepdims=True))
        logp_ref[t] = sh - lse                                        # [B, VPAD] full-lane store

        # --- next input, selected on-core (no host round trip) ---
        if t + 1 < T_STEPS:
            # greedy: first-occurrence argmax -> one-hot -> embedding via MXU
            idx = jnp.min(jnp.where(logits >= m, col, VPAD), axis=-1, keepdims=True)
            onehot = (col == idx).astype(jnp.float32)                 # [B, VPAD]
            x_greedy = jnp.dot(onehot, emb, preferred_element_type=jnp.float32)
            x_teacher = tgt_emb_ref[t + 1]                            # pre-embedded target id
            x = tf_w * x_teacher + (1.0 - tf_w) * x_greedy

    hid_ref[...] = h                                                  # last step's GRU hidden


def _vmem():
    return pl.BlockSpec(memory_space=pltpu.MemorySpace.VMEM)


def _smem():
    return pl.BlockSpec(memory_space=pltpu.MemorySpace.SMEM)


@jax.jit
def _decoder_forward_jit(tf_flag, target, encoder_outputs, params):
    emb = params["embedding"]                                   # [V, E]
    B = target.shape[0]

    # Teacher-forced input ids per step: [SOS, target[:,0], ..., target[:,T-2]]
    sos = jnp.full((B, 1), SOS, dtype=jnp.int32)
    teacher_ids = jnp.concatenate([sos, target[:, :T_STEPS - 1].astype(jnp.int32)], axis=1)
    tgt_emb = jnp.take(emb, teacher_ids, axis=0)                # [B, T, E]
    tgt_emb = jnp.transpose(tgt_emb, (1, 0, 2))                 # [T, B, E]

    # Fold GRU hidden bias into the r/z gate biases (h_prev == 0 every step).
    b_ih, b_hh = params["b_ih"], params["b_hh"]
    b_rz = b_ih[:, :2 * DEC_H] + b_hh[:, :2 * DEC_H]
    b_in = b_ih[:, 2 * DEC_H:]
    b_hn = b_hh[:, 2 * DEC_H:]

    # Split Wa; pad fc weights / bias / embedding table to a 128-lane vocab.
    wa_t = params["wa_t"]
    wa_h_t = wa_t[:DEC_H, :]
    wa_c_t = wa_t[DEC_H:, :]
    fc_w_t = jnp.pad(params["fc_w_t"], ((0, 0), (0, VPAD - VOCAB)))
    fc_b = jnp.pad(params["fc_b"], ((0, 0), (0, VPAD - VOCAB)), constant_values=NEG)
    emb_pad = jnp.pad(emb, ((0, VPAD - VOCAB), (0, 0)))         # [VPAD, E]

    logp_pad, hid = pl.pallas_call(
        fused_decoder_kernel,
        out_shape=(jax.ShapeDtypeStruct((T_STEPS, B, VPAD), jnp.float32),
                   jax.ShapeDtypeStruct((B, DEC_H), jnp.float32)),
        in_specs=[_smem()] + [_vmem()] * 11,
        out_specs=(_vmem(), _vmem()),
    )(tf_flag, tgt_emb, encoder_outputs, emb_pad,
      params["w_ih_t"], b_rz, b_in, b_hn,
      wa_h_t, wa_c_t, fc_w_t, fc_b)

    decoder_outputs = jnp.transpose(logp_pad[:, :, :VOCAB], (1, 0, 2))   # [B, T, V]
    decoder_hidden = hid[None, :, :]                                     # [1, B, D]
    return decoder_outputs, decoder_hidden


def decoder_forward(target, encoder_hidden, encoder_outputs, params):
    """Mirrors Decoder.forward.  encoder_hidden never influences the numerics
    because the reference calls self.gru(...) without a hidden state (h0 = 0),
    and the returned hidden is the last step's GRU hidden."""
    del encoder_hidden
    use_teacher = random.random() > TEACH_FORCING               # same branch rule as reference
    tf_flag = jnp.array([1 if use_teacher else 0], dtype=jnp.int32)
    return _decoder_forward_jit(tf_flag, target, encoder_outputs, params)


def init_params(key):
    ks = jax.random.split(key, 8)
    scale = 1.0 / jnp.sqrt(jnp.float32(DEC_H))
    emb = jax.random.normal(ks[0], (VOCAB, EMB), jnp.float32) * 0.1
    emb = emb.at[PAD].set(0.0)                                  # padding_idx row = 0
    u = lambda k, shp: jax.random.uniform(k, shp, jnp.float32, -scale, scale)
    return dict(
        embedding=emb,
        w_ih_t=u(ks[1], (EMB, 3 * DEC_H)),                      # GRU W_ih (pre-transposed)
        b_ih=u(ks[2], (1, 3 * DEC_H)),
        b_hh=u(ks[3], (1, 3 * DEC_H)),
        wa_t=u(ks[4], (ENC_H + DEC_H, DEC_H)),                  # Wa (bias=False), pre-transposed
        fc_w_t=u(ks[5], (DEC_H, VOCAB)),                        # fc weight, pre-transposed
        fc_b=u(ks[6], (1, VOCAB)),
    )


if __name__ == "__main__":
    random.seed(0)
    key = jax.random.PRNGKey(0)
    k_par, k_tgt, k_enc, k_hid = jax.random.split(key, 4)

    params = init_params(k_par)
    target = jax.random.randint(k_tgt, (BATCH, TARGET_MAX_LEN + 1), 0, VOCAB, jnp.int32)
    encoder_outputs = jax.random.normal(k_enc, (BATCH, ENC_S, ENC_H), jnp.float32)
    encoder_hidden = jax.random.normal(k_hid, (NUM_LAYERS, BATCH, DEC_H), jnp.float32)

    decoder_outputs, decoder_hidden = decoder_forward(
        target, encoder_hidden, encoder_outputs, params)
    jax.block_until_ready((decoder_outputs, decoder_hidden))

    assert decoder_outputs.shape == (BATCH, TARGET_MAX_LEN + 1, VOCAB)
    assert decoder_hidden.shape == (NUM_LAYERS, BATCH, DEC_H)
    assert bool(jnp.all(jnp.isfinite(decoder_outputs)))
    print("KERNEL_OK")
</pallas_src>

<mosaic_0001>
module attributes {stable_mosaic.version = 11 : i64} {
  func.func @fused_decoder_kernel(%arg0: memref<1xi32, #tpu.memory_space<smem>>, %arg1: memref<8x2x32xf32, #tpu.memory_space<vmem>>, %arg2: memref<2x8x32xf32, #tpu.memory_space<vmem>>, %arg3: memref<128x32xf32, #tpu.memory_space<vmem>>, %arg4: memref<32x96xf32, #tpu.memory_space<vmem>>, %arg5: memref<1x64xf32, #tpu.memory_space<vmem>>, %arg6: memref<1x32xf32, #tpu.memory_space<vmem>>, %arg7: memref<1x32xf32, #tpu.memory_space<vmem>>, %arg8: memref<32x32xf32, #tpu.memory_space<vmem>>, %arg9: memref<32x32xf32, #tpu.memory_space<vmem>>, %arg10: memref<32x128xf32, #tpu.memory_space<vmem>>, %arg11: memref<1x128xf32, #tpu.memory_space<vmem>>, %arg12: memref<8x2x128xf32, #tpu.memory_space<vmem>>, %arg13: memref<2x32xf32, #tpu.memory_space<vmem>>) attributes {dimension_semantics = [], scalar_prefetch = 0 : i64, scratch_operands = 0 : i64, tpu.core_type = #tpu.core_type<tc>} {
    %c0 = arith.constant 0 : index
    %0 = memref.load %arg0[%c0] : memref<1xi32, #tpu.memory_space<smem>>
    %1 = arith.sitofp %0 : i32 to f32
    %c0_0 = arith.constant 0 : index
    %c0_1 = arith.constant 0 : index
    %2 = vector.load %arg4[%c0_0, %c0_1] : memref<32x96xf32, #tpu.memory_space<vmem>>, vector<32x96xf32>
    %c0_2 = arith.constant 0 : index
    %c0_3 = arith.constant 0 : index
    %3 = vector.load %arg5[%c0_2, %c0_3] : memref<1x64xf32, #tpu.memory_space<vmem>>, vector<1x64xf32>
    %c0_4 = arith.constant 0 : index
    %c0_5 = arith.constant 0 : index
    %4 = vector.load %arg6[%c0_4, %c0_5] : memref<1x32xf32, #tpu.memory_space<vmem>>, vector<1x32xf32>
    %c0_6 = arith.constant 0 : index
    %c0_7 = arith.constant 0 : index
    %5 = vector.load %arg7[%c0_6, %c0_7] : memref<1x32xf32, #tpu.memory_space<vmem>>, vector<1x32xf32>
    %c0_8 = arith.constant 0 : index
    %c0_9 = arith.constant 0 : index
    %6 = vector.load %arg8[%c0_8, %c0_9] : memref<32x32xf32, #tpu.memory_space<vmem>>, vector<32x32xf32>
    %c0_10 = arith.constant 0 : index
    %c0_11 = arith.constant 0 : index
    %7 = vector.load %arg9[%c0_10, %c0_11] : memref<32x32xf32, #tpu.memory_space<vmem>>, vector<32x32xf32>
    %c0_12 = arith.constant 0 : index
    %c0_13 = arith.constant 0 : index
    %8 = vector.load %arg10[%c0_12, %c0_13] : memref<32x128xf32, #tpu.memory_space<vmem>>, vector<32x128xf32>
    %c0_14 = arith.constant 0 : index
    %c0_15 = arith.constant 0 : index
    %9 = vector.load %arg11[%c0_14, %c0_15] : memref<1x128xf32, #tpu.memory_space<vmem>>, vector<1x128xf32>
    %c0_16 = arith.constant 0 : index
    %c0_17 = arith.constant 0 : index
    %c0_18 = arith.constant 0 : index
    %10 = vector.load %arg2[%c0_16, %c0_17, %c0_18] : memref<2x8x32xf32, #tpu.memory_space<vmem>>, vector<2x8x32xf32>
    %c0_19 = arith.constant 0 : index
    %c0_20 = arith.constant 0 : index
    %11 = vector.load %arg3[%c0_19, %c0_20] : memref<128x32xf32, #tpu.memory_space<vmem>>, vector<128x32xf32>
    %12 = tpu.iota {dimensions = array<i32: 1>} : vector<2x128xi32>
    %c0_21 = arith.constant 0 : index
    %c0_22 = arith.constant 0 : index
    %c0_23 = arith.constant 0 : index
    %13 = vector.load %arg1[%c0_21, %c0_22, %c0_23] : memref<8x2x32xf32, #tpu.memory_space<vmem>>, vector<1x2x32xf32>
    %14 = vector.shape_cast %13 : vector<1x2x32xf32> to vector<2x32xf32>
    %cst = arith.constant dense<0.000000e+00> : vector<2x96xf32>
    %15 = tpu.matmul %14, %2, %cst {dimension_numbers = #tpu.dot_dimension_numbers<[1], [0], [0], [1], [0, 0, 1, 1], [], []>} : vector<2x32xf32>, vector<32x96xf32>, vector<2x96xf32> -> vector<2x96xf32>
    %16 = vector.extract_strided_slice %15 {offsets = [0, 0], sizes = [2, 64], strides = [1, 1]} : vector<2x96xf32> to vector<2x64xf32>
    %17 = vector.broadcast %3 : vector<1x64xf32> to vector<2x64xf32>
    %18 = arith.addf %16, %17 : vector<2x64xf32>
    %19 = arith.negf %18 : vector<2x64xf32>
    %20 = math.exp %19 : vector<2x64xf32>
    %cst_24 = arith.constant 1.000000e+00 : f32
    %21 = vector.broadcast %cst_24 : f32 to vector<2x64xf32>
    %22 = arith.addf %21, %20 : vector<2x64xf32>
    %23 = arith.divf %21, %22 : vector<2x64xf32>
    %24 = vector.extract_strided_slice %23 {offsets = [0, 0], sizes = [2, 32], strides = [1, 1]} : vector<2x64xf32> to vector<2x32xf32>
    %25 = vector.extract_strided_slice %23 {offsets = [0, 32], sizes = [2, 32], strides = [1, 1]} : vector<2x64xf32> to vector<2x32xf32>
    %26 = vector.extract_strided_slice %15 {offsets = [0, 64], sizes = [2, 32], strides = [1, 1]} : vector<2x96xf32> to vector<2x32xf32>
    %27 = vector.broadcast %4 : vector<1x32xf32> to vector<2x32xf32>
    %28 = arith.addf %26, %27 : vector<2x32xf32>
    %29 = vector.broadcast %5 : vector<1x32xf32> to vector<2x32xf32>
    %30 = arith.mulf %24, %29 : vector<2x32xf32>
    %31 = arith.addf %28, %30 : vector<2x32xf32>
    %32 = math.tanh %31 : vector<2x32xf32>
    %cst_25 = arith.constant 1.000000e+00 : f32
    %33 = vector.broadcast %cst_25 : f32 to vector<2x32xf32>
    %34 = arith.subf %33, %25 : vector<2x32xf32>
    %35 = arith.mulf %34, %32 : vector<2x32xf32>
    %36 = vector.shape_cast %35 : vector<2x32xf32> to vector<2x1x32xf32>
    %37 = vector.broadcast %36 : vector<2x1x32xf32> to vector<2x8x32xf32>
    %38 = arith.mulf %10, %37 : vector<2x8x32xf32>
    %cst_26 = arith.constant dense<0.000000e+00> : vector<2x8xf32>
    %39 = vector.multi_reduction <add>, %38, %cst_26 [2] : vector<2x8x32xf32> to vector<2x8xf32>
    %cst_27 = arith.constant dense<0xFF800000> : vector<2xf32>
    %40 = vector.multi_reduction <maximumf>, %39, %cst_27 [1] : vector<2x8xf32> to vector<2xf32>
    %41 = vector.shape_cast %40 : vector<2xf32> to vector<2x1xf32>
    %42 = vector.broadcast %41 : vector<2x1xf32> to vector<2x8xf32>
    %43 = arith.subf %39, %42 : vector<2x8xf32>
    %44 = math.exp %43 : vector<2x8xf32>
    %cst_28 = arith.constant dense<0.000000e+00> : vector<2xf32>
    %45 = vector.multi_reduction <add>, %44, %cst_28 [1] : vector<2x8xf32> to vector<2xf32>
    %46 = vector.shape_cast %45 : vector<2xf32> to vector<2x1xf32>
    %47 = vector.broadcast %46 : vector<2x1xf32> to vector<2x8xf32>
    %48 = arith.divf %44, %47 : vector<2x8xf32>
    %49 = vector.shape_cast %48 : vector<2x8xf32> to vector<2x8x1xf32>
    %50 = vector.broadcast %49 : vector<2x8x1xf32> to vector<2x8x32xf32>
    %51 = arith.mulf %50, %10 : vector<2x8x32xf32>
    %cst_29 = arith.constant dense<0.000000e+00> : vector<2x32xf32>
    %52 = vector.multi_reduction <add>, %51, %cst_29 [1] : vector<2x8x32xf32> to vector<2x32xf32>
    %cst_30 = arith.constant dense<0.000000e+00> : vector<2x32xf32>
    %53 = tpu.matmul %35, %6, %cst_30 {dimension_numbers = #tpu.dot_dimension_numbers<[1], [0], [0], [1], [0, 0, 1, 1], [], []>} : vector<2x32xf32>, vector<32x32xf32>, vector<2x32xf32> -> vector<2x32xf32>
    %cst_31 = arith.constant dense<0.000000e+00> : vector<2x32xf32>
    %54 = tpu.matmul %52, %7, %cst_31 {dimension_numbers = #tpu.dot_dimension_numbers<[1], [0], [0], [1], [0, 0, 1, 1], [], []>} : vector<2x32xf32>, vector<32x32xf32>, vector<2x32xf32> -> vector<2x32xf32>
    %55 = arith.addf %53, %54 : vector<2x32xf32>
    %56 = math.tanh %55 : vector<2x32xf32>
    %cst_32 = arith.constant dense<0.000000e+00> : vector<2x128xf32>
    %57 = tpu.matmul %56, %8, %cst_32 {dimension_numbers = #tpu.dot_dimension_numbers<[1], [0], [0], [1], [0, 0, 1, 1], [], []>} : vector<2x32xf32>, vector<32x128xf32>, vector<2x128xf32> -> vector<2x128xf32>
    %58 = vector.broadcast %9 : vector<1x128xf32> to vector<2x128xf32>
    %59 = arith.addf %57, %58 : vector<2x128xf32>
    %cst_33 = arith.constant dense<0xFF800000> : vector<2xf32>
    %60 = vector.multi_reduction <maximumf>, %59, %cst_33 [1] : vector<2x128xf32> to vector<2xf32>
    %61 = vector.shape_cast %60 : vector<2xf32> to vector<2x1xf32>
    %62 = vector.broadcast %61 : vector<2x1xf32> to vector<2x128xf32>
    %63 = arith.subf %59, %62 : vector<2x128xf32>
    %64 = math.exp %63 : vector<2x128xf32>
    %cst_34 = arith.constant dense<0.000000e+00> : vector<2xf32>
    %65 = vector.multi_reduction <add>, %64, %cst_34 [1] : vector<2x128xf32> to vector<2xf32>
    %66 = vector.shape_cast %65 : vector<2xf32> to vector<2x1xf32>
    %67 = math.log %66 : vector<2x1xf32>
    %68 = vector.broadcast %67 : vector<2x1xf32> to vector<2x128xf32>
    %69 = arith.subf %63, %68 : vector<2x128xf32>
    %c0_35 = arith.constant 0 : index
    %c0_36 = arith.constant 0 : index
    %c0_37 = arith.constant 0 : index
    %70 = vector.load %arg12[%c0_35, %c0_36, %c0_37] : memref<8x2x128xf32, #tpu.memory_space<vmem>>, vector<1x2x128xf32>
    %71 = vector.shape_cast %70 : vector<1x2x128xf32> to vector<2x128xf32>
    %72 = vector.shape_cast %69 : vector<2x128xf32> to vector<1x2x128xf32>
    tpu.vector_store %arg12[%c0_35, %c0_36, %c0_37], %72 {strides = array<i32>} : memref<8x2x128xf32, #tpu.memory_space<vmem>>, vector<1x2x128xf32>,
    %73 = vector.broadcast %61 : vector<2x1xf32> to vector<2x128xf32>
    %74 = arith.cmpf oge, %59, %73 : vector<2x128xf32>
    %c128_i32 = arith.constant 128 : i32
    %75 = vector.broadcast %c128_i32 : i32 to vector<2x128xi32>
    %76 = arith.select %74, %12, %75 : vector<2x128xi1>, vector<2x128xi32>
    %cst_38 = arith.constant dense<2147483647> : vector<2xi32>
    %77 = vector.multi_reduction <minsi>, %76, %cst_38 [1] : vector<2x128xi32> to vector<2xi32>
    %78 = vector.shape_cast %77 : vector<2xi32> to vector<2x1xi32>
    %79 = vector.broadcast %78 : vector<2x1xi32> to vector<2x128xi32>
    %80 = arith.cmpi eq, %12, %79 : vector<2x128xi32>
    %81 = arith.extui %80 : vector<2x128xi1> to vector<2x128xi32>
    %82 = arith.sitofp %81 : vector<2x128xi32> to vector<2x128xf32>
    %cst_39 = arith.constant dense<0.000000e+00> : vector<2x32xf32>
    %83 = tpu.matmul %82, %11, %cst_39 {dimension_numbers = #tpu.dot_dimension_numbers<[1], [0], [0], [1], [0, 0, 1, 1], [], []>} : vector<2x128xf32>, vector<128x32xf32>, vector<2x32xf32> -> vector<2x32xf32>
    %c1 = arith.constant 1 : index
    %c0_40 = arith.constant 0 : index
    %c0_41 = arith.constant 0 : index
    %84 = vector.load %arg1[%c1, %c0_40, %c0_41] : memref<8x2x32xf32, #tpu.memory_space<vmem>>, vector<1x2x32xf32>
    %85 = vector.shape_cast %84 : vector<1x2x32xf32> to vector<2x32xf32>
    %86 = vector.broadcast %1 : f32 to vector<2x32xf32>
    %87 = arith.mulf %86, %85 : vector<2x32xf32>
    %cst_42 = arith.constant 1.000000e+00 : f32
    %88 = arith.subf %cst_42, %1 : f32
    %89 = vector.broadcast %88 : f32 to vector<2x32xf32>
    %90 = arith.mulf %89, %83 : vector<2x32xf32>
    %91 = arith.addf %87, %90 : vector<2x32xf32>
    %cst_43 = arith.constant dense<0.000000e+00> : vector<2x96xf32>
    %92 = tpu.matmul %91, %2, %cst_43 {dimension_numbers = #tpu.dot_dimension_numbers<[1], [0], [0], [1], [0, 0, 1, 1], [], []>} : vector<2x32xf32>, vector<32x96xf32>, vector<2x96xf32> -> vector<2x96xf32>
    %93 = vector.extract_strided_slice %92 {offsets = [0, 0], sizes = [2, 64], strides = [1, 1]} : vector<2x96xf32> to vector<2x64xf32>
    %94 = vector.broadcast %3 : vector<1x64xf32> to vector<2x64xf32>
    %95 = arith.addf %93, %94 : vector<2x64xf32>
    %96 = arith.negf %95 : vector<2x64xf32>
    %97 = math.exp %96 : vector<2x64xf32>
    %cst_44 = arith.constant 1.000000e+00 : f32
    %98 = vector.broadcast %cst_44 : f32 to vector<2x64xf32>
    %99 = arith.addf %98, %97 : vector<2x64xf32>
    %100 = arith.divf %98, %99 : vector<2x64xf32>
    %101 = vector.extract_strided_slice %100 {offsets = [0, 0], sizes = [2, 32], strides = [1, 1]} : vector<2x64xf32> to vector<2x32xf32>
    %102 = vector.extract_strided_slice %100 {offsets = [0, 32], sizes = [2, 32], strides = [1, 1]} : vector<2x64xf32> to vector<2x32xf32>
    %103 = vector.extract_strided_slice %92 {offsets = [0, 64], sizes = [2, 32], strides = [1, 1]} : vector<2x96xf32> to vector<2x32xf32>
    %104 = vector.broadcast %4 : vector<1x32xf32> to vector<2x32xf32>
    %105 = arith.addf %103, %104 : vector<2x32xf32>
    %106 = vector.broadcast %5 : vector<1x32xf32> to vector<2x32xf32>
    %107 = arith.mulf %101, %106 : vector<2x32xf32>
    %108 = arith.addf %105, %107 : vector<2x32xf32>
    %109 = math.tanh %108 : vector<2x32xf32>
    %cst_45 = arith.constant 1.000000e+00 : f32
    %110 = vector.broadcast %cst_45 : f32 to vector<2x32xf32>
    %111 = arith.subf %110, %102 : vector<2x32xf32>
    %112 = arith.mulf %111, %109 : vector<2x32xf32>
    %113 = vector.shape_cast %112 : vector<2x32xf32> to vector<2x1x32xf32>
    %114 = vector.broadcast %113 : vector<2x1x32xf32> to vector<2x8x32xf32>
    %115 = arith.mulf %10, %114 : vector<2x8x32xf32>
    %cst_46 = arith.constant dense<0.000000e+00> : vector<2x8xf32>
    %116 = vector.multi_reduction <add>, %115, %cst_46 [2] : vector<2x8x32xf32> to vector<2x8xf32>
    %cst_47 = arith.constant dense<0xFF800000> : vector<2xf32>
    %117 = vector.multi_reduction <maximumf>, %116, %cst_47 [1] : vector<2x8xf32> to vector<2xf32>
    %118 = vector.shape_cast %117 : vector<2xf32> to vector<2x1xf32>
    %119 = vector.broadcast %118 : vector<2x1xf32> to vector<2x8xf32>
    %120 = arith.subf %116, %119 : vector<2x8xf32>
    %121 = math.exp %120 : vector<2x8xf32>
    %cst_48 = arith.constant dense<0.000000e+00> : vector<2xf32>
    %122 = vector.multi_reduction <add>, %121, %cst_48 [1] : vector<2x8xf32> to vector<2xf32>
    %123 = vector.shape_cast %122 : vector<2xf32> to vector<2x1xf32>
    %124 = vector.broadcast %123 : vector<2x1xf32> to vector<2x8xf32>
    %125 = arith.divf %121, %124 : vector<2x8xf32>
    %126 = vector.shape_cast %125 : vector<2x8xf32> to vector<2x8x1xf32>
    %127 = vector.broadcast %126 : vector<2x8x1xf32> to vector<2x8x32xf32>
    %128 = arith.mulf %127, %10 : vector<2x8x32xf32>
    %cst_49 = arith.constant dense<0.000000e+00> : vector<2x32xf32>
    %129 = vector.multi_reduction <add>, %128, %cst_49 [1] : vector<2x8x32xf32> to vector<2x32xf32>
    %cst_50 = arith.constant dense<0.000000e+00> : vector<2x32xf32>
    %130 = tpu.matmul %112, %6, %cst_50 {dimension_numbers = #tpu.dot_dimension_numbers<[1], [0], [0], [1], [0, 0, 1, 1], [], []>} : vector<2x32xf32>, vector<32x32xf32>, vector<2x32xf32> -> vector<2x32xf32>
    %cst_51 = arith.constant dense<0.000000e+00> : vector<2x32xf32>
    %131 = tpu.matmul %129, %7, %cst_51 {dimension_numbers = #tpu.dot_dimension_numbers<[1], [0], [0], [1], [0, 0, 1, 1], [], []>} : vector<2x32xf32>, vector<32x32xf32>, vector<2x32xf32> -> vector<2x32xf32>
    %132 = arith.addf %130, %131 : vector<2x32xf32>
    %133 = math.tanh %132 : vector<2x32xf32>
    %cst_52 = arith.constant dense<0.000000e+00> : vector<2x128xf32>
    %134 = tpu.matmul %133, %8, %cst_52 {dimension_numbers = #tpu.dot_dimension_numbers<[1], [0], [0], [1], [0, 0, 1, 1], [], []>} : vector<2x32xf32>, vector<32x128xf32>, vector<2x128xf32> -> vector<2x128xf32>
    %135 = vector.broadcast %9 : vector<1x128xf32> to vector<2x128xf32>
    %136 = arith.addf %134, %135 : vector<2x128xf32>
    %cst_53 = arith.constant dense<0xFF800000> : vector<2xf32>
    %137 = vector.multi_reduction <maximumf>, %136, %cst_53 [1] : vector<2x128xf32> to vector<2xf32>
    %138 = vector.shape_cast %137 : vector<2xf32> to vector<2x1xf32>
    %139 = vector.broadcast %138 : vector<2x1xf32> to vector<2x128xf32>
    %140 = arith.subf %136, %139 : vector<2x128xf32>
    %141 = math.exp %140 : vector<2x128xf32>
    %cst_54 = arith.constant dense<0.000000e+00> : vector<2xf32>
    %142 = vector.multi_reduction <add>, %141, %cst_54 [1] : vector<2x128xf32> to vector<2xf32>
    %143 = vector.shape_cast %142 : vector<2xf32> to vector<2x1xf32>
    %144 = math.log %143 : vector<2x1xf32>
    %145 = vector.broadcast %144 : vector<2x1xf32> to vector<2x128xf32>
    %146 = arith.subf %140, %145 : vector<2x128xf32>
    %c1_55 = arith.constant 1 : index
    %c0_56 = arith.constant 0 : index
    %c0_57 = arith.constant 0 : index
    %147 = vector.load %arg12[%c1_55, %c0_56, %c0_57] : memref<8x2x128xf32, #tpu.memory_space<vmem>>, vector<1x2x128xf32>
    %148 = vector.shape_cast %147 : vector<1x2x128xf32> to vector<2x128xf32>
    %149 = vector.shape_cast %146 : vector<2x128xf32> to vector<1x2x128xf32>
    tpu.vector_store %arg12[%c1_55, %c0_56, %c0_57], %149 {strides = array<i32>} : memref<8x2x128xf32, #tpu.memory_space<vmem>>, vector<1x2x128xf32>,
    %150 = vector.broadcast %138 : vector<2x1xf32> to vector<2x128xf32>
    %151 = arith.cmpf oge, %136, %150 : vector<2x128xf32>
    %c128_i32_58 = arith.constant 128 : i32
    %152 = vector.broadcast %c128_i32_58 : i32 to vector<2x128xi32>
    %153 = arith.select %151, %12, %152 : vector<2x128xi1>, vector<2x128xi32>
    %cst_59 = arith.constant dense<2147483647> : vector<2xi32>
    %154 = vector.multi_reduction <minsi>, %153, %cst_59 [1] : vector<2x128xi32> to vector<2xi32>
    %155 = vector.shape_cast %154 : vector<2xi32> to vector<2x1xi32>
    %156 = vector.broadcast %155 : vector<2x1xi32> to vector<2x128xi32>
    %157 = arith.cmpi eq, %12, %156 : vector<2x128xi32>
    %158 = arith.extui %157 : vector<2x128xi1> to vector<2x128xi32>
    %159 = arith.sitofp %158 : vector<2x128xi32> to vector<2x128xf32>
    %cst_60 = arith.constant dense<0.000000e+00> : vector<2x32xf32>
    %160 = tpu.matmul %159, %11, %cst_60 {dimension_numbers = #tpu.dot_dimension_numbers<[1], [0], [0], [1], [0, 0, 1, 1], [], []>} : vector<2x128xf32>, vector<128x32xf32>, vector<2x32xf32> -> vector<2x32xf32>
    %c2 = arith.constant 2 : index
    %c0_61 = arith.constant 0 : index
    %c0_62 = arith.constant 0 : index
    %161 = vector.load %arg1[%c2, %c0_61, %c0_62] : memref<8x2x32xf32, #tpu.memory_space<vmem>>, vector<1x2x32xf32>
    %162 = vector.shape_cast %161 : vector<1x2x32xf32> to vector<2x32xf32>
    %163 = vector.broadcast %1 : f32 to vector<2x32xf32>
    %164 = arith.mulf %163, %162 : vector<2x32xf32>
    %cst_63 = arith.constant 1.000000e+00 : f32
    %165 = arith.subf %cst_63, %1 : f32
    %166 = vector.broadcast %165 : f32 to vector<2x32xf32>
    %167 = arith.mulf %166, %160 : vector<2x32xf32>
    %168 = arith.addf %164, %167 : vector<2x32xf32>
    %cst_64 = arith.constant dense<0.000000e+00> : vector<2x96xf32>
    %169 = tpu.matmul %168, %2, %cst_64 {dimension_numbers = #tpu.dot_dimension_numbers<[1], [0], [0], [1], [0, 0, 1, 1], [], []>} : vector<2x32xf32>, vector<32x96xf32>, vector<2x96xf32> -> vector<2x96xf32>
    %170 = vector.extract_strided_slice %169 {offsets = [0, 0], sizes = [2, 64], strides = [1, 1]} : vector<2x96xf32> to vector<2x64xf32>
    %171 = vector.broadcast %3 : vector<1x64xf32> to vector<2x64xf32>
    %172 = arith.addf %170, %171 : vector<2x64xf32>
    %173 = arith.negf %172 : vector<2x64xf32>
    %174 = math.exp %173 : vector<2x64xf32>
    %cst_65 = arith.constant 1.000000e+00 : f32
    %175 = vector.broadcast %cst_65 : f32 to vector<2x64xf32>
    %176 = arith.addf %175, %174 : vector<2x64xf32>
    %177 = arith.divf %175, %176 : vector<2x64xf32>
    %178 = vector.extract_strided_slice %177 {offsets = [0, 0], sizes = [2, 32], strides = [1, 1]} : vector<2x64xf32> to vector<2x32xf32>
    %179 = vector.extract_strided_slice %177 {offsets = [0, 32], sizes = [2, 32], strides = [1, 1]} : vector<2x64xf32> to vector<2x32xf32>
    %180 = vector.extract_strided_slice %169 {offsets = [0, 64], sizes = [2, 32], strides = [1, 1]} : vector<2x96xf32> to vector<2x32xf32>
    %181 = vector.broadcast %4 : vector<1x32xf32> to vector<2x32xf32>
    %182 = arith.addf %180, %181 : vector<2x32xf32>
    %183 = vector.broadcast %5 : vector<1x32xf32> to vector<2x32xf32>
    %184 = arith.mulf %178, %183 : vector<2x32xf32>
    %185 = arith.addf %182, %184 : vector<2x32xf32>
    %186 = math.tanh %185 : vector<2x32xf32>
    %cst_66 = arith.constant 1.000000e+00 : f32
    %187 = vector.broadcast %cst_66 : f32 to vector<2x32xf32>
    %188 = arith.subf %187, %179 : vector<2x32xf32>
    %189 = arith.mulf %188, %186 : vector<2x32xf32>
    %190 = vector.shape_cast %189 : vector<2x32xf32> to vector<2x1x32xf32>
    %191 = vector.broadcast %190 : vector<2x1x32xf32> to vector<2x8x32xf32>
    %192 = arith.mulf %10, %191 : vector<2x8x32xf32>
    %cst_67 = arith.constant dense<0.000000e+00> : vector<2x8xf32>
    %193 = vector.multi_reduction <add>, %192, %cst_67 [2] : vector<2x8x32xf32> to vector<2x8xf32>
    %cst_68 = arith.constant dense<0xFF800000> : vector<2xf32>
    %194 = vector.multi_reduction <maximumf>, %193, %cst_68 [1] : vector<2x8xf32> to vector<2xf32>
    %195 = vector.shape_cast %194 : vector<2xf32> to vector<2x1xf32>
    %196 = vector.broadcast %195 : vector<2x1xf32> to vector<2x8xf32>
    %197 = arith.subf %193, %196 : vector<2x8xf32>
    %198 = math.exp %197 : vector<2x8xf32>
    %cst_69 = arith.constant dense<0.000000e+00> : vector<2xf32>
    %199 = vector.multi_reduction <add>, %198, %cst_69 [1] : vector<2x8xf32> to vector<2xf32>
    %200 = vector.shape_cast %199 : vector<2xf32> to vector<2x1xf32>
    %201 = vector.broadcast %200 : vector<2x1xf32> to vector<2x8xf32>
    %202 = arith.divf %198, %201 : vector<2x8xf32>
    %203 = vector.shape_cast %202 : vector<2x8xf32> to vector<2x8x1xf32>
    %204 = vector.broadcast %203 : vector<2x8x1xf32> to vector<2x8x32xf32>
    %205 = arith.mulf %204, %10 : vector<2x8x32xf32>
    %cst_70 = arith.constant dense<0.000000e+00> : vector<2x32xf32>
    %206 = vector.multi_reduction <add>, %205, %cst_70 [1] : vector<2x8x32xf32> to vector<2x32xf32>
    %cst_71 = arith.constant dense<0.000000e+00> : vector<2x32xf32>
    %207 = tpu.matmul %189, %6, %cst_71 {dimension_numbers = #tpu.dot_dimension_numbers<[1], [0], [0], [1], [0, 0, 1, 1], [], []>} : vector<2x32xf32>, vector<32x32xf32>, vector<2x32xf32> -> vector<2x32xf32>
    %cst_72 = arith.constant dense<0.000000e+00> : vector<2x32xf32>
    %208 = tpu.matmul %206, %7, %cst_72 {dimension_numbers = #tpu.dot_dimension_numbers<[1], [0], [0], [1], [0, 0, 1, 1], [], []>} : vector<2x32xf32>, vector<32x32xf32>, vector<2x32xf32> -> vector<2x32xf32>
    %209 = arith.addf %207, %208 : vector<2x32xf32>
    %210 = math.tanh %209 : vector<2x32xf32>
    %cst_73 = arith.constant dense<0.000000e+00> : vector<2x128xf32>
    %211 = tpu.matmul %210, %8, %cst_73 {dimension_numbers = #tpu.dot_dimension_numbers<[1], [0], [0], [1], [0, 0, 1, 1], [], []>} : vector<2x32xf32>, vector<32x128xf32>, vector<2x128xf32> -> vector<2x128xf32>
    %212 = vector.broadcast %9 : vector<1x128xf32> to vector<2x128xf32>
    %213 = arith.addf %211, %212 : vector<2x128xf32>
    %cst_74 = arith.constant dense<0xFF800000> : vector<2xf32>
    %214 = vector.multi_reduction <maximumf>, %213, %cst_74 [1] : vector<2x128xf32> to vector<2xf32>
    %215 = vector.shape_cast %214 : vector<2xf32> to vector<2x1xf32>
    %216 = vector.broadcast %215 : vector<2x1xf32> to vector<2x128xf32>
    %217 = arith.subf %213, %216 : vector<2x128xf32>
    %218 = math.exp %217 : vector<2x128xf32>
    %cst_75 = arith.constant dense<0.000000e+00> : vector<2xf32>
    %219 = vector.multi_reduction <add>, %218, %cst_75 [1] : vector<2x128xf32> to vector<2xf32>
    %220 = vector.shape_cast %219 : vector<2xf32> to vector<2x1xf32>
    %221 = math.log %220 : vector<2x1xf32>
    %222 = vector.broadcast %221 : vector<2x1xf32> to vector<2x128xf32>
    %223 = arith.subf %217, %222 : vector<2x128xf32>
    %c2_76 = arith.constant 2 : index
    %c0_77 = arith.constant 0 : index
    %c0_78 = arith.constant 0 : index
    %224 = vector.load %arg12[%c2_76, %c0_77, %c0_78] : memref<8x2x128xf32, #tpu.memory_space<vmem>>, vector<1x2x128xf32>
    %225 = vector.shape_cast %224 : vector<1x2x128xf32> to vector<2x128xf32>
    %226 = vector.shape_cast %223 : vector<2x128xf32> to vector<1x2x128xf32>
    tpu.vector_store %arg12[%c2_76, %c0_77, %c0_78], %226 {strides = array<i32>} : memref<8x2x128xf32, #tpu.memory_space<vmem>>, vector<1x2x128xf32>,
    %227 = vector.broadcast %215 : vector<2x1xf32> to vector<2x128xf32>
    %228 = arith.cmpf oge, %213, %227 : vector<2x128xf32>
    %c128_i32_79 = arith.constant 128 : i32
    %229 = vector.broadcast %c128_i32_79 : i32 to vector<2x128xi32>
    %230 = arith.select %228, %12, %229 : vector<2x128xi1>, vector<2x128xi32>
    %cst_80 = arith.constant dense<2147483647> : vector<2xi32>
    %231 = vector.multi_reduction <minsi>, %230, %cst_80 [1] : vector<2x128xi32> to vector<2xi32>
    %232 = vector.shape_cast %231 : vector<2xi32> to vector<2x1xi32>
    %233 = vector.broadcast %232 : vector<2x1xi32> to vector<2x128xi32>
    %234 = arith.cmpi eq, %12, %233 : vector<2x128xi32>
    %235 = arith.extui %234 : vector<2x128xi1> to vector<2x128xi32>
    %236 = arith.sitofp %235 : vector<2x128xi32> to vector<2x128xf32>
    %cst_81 = arith.constant dense<0.000000e+00> : vector<2x32xf32>
    %237 = tpu.matmul %236, %11, %cst_81 {dimension_numbers = #tpu.dot_dimension_numbers<[1], [0], [0], [1], [0, 0, 1, 1], [], []>} : vector<2x128xf32>, vector<128x32xf32>, vector<2x32xf32> -> vector<2x32xf32>
    %c3 = arith.constant 3 : index
    %c0_82 = arith.constant 0 : index
    %c0_83 = arith.constant 0 : index
    %238 = vector.load %arg1[%c3, %c0_82, %c0_83] : memref<8x2x32xf32, #tpu.memory_space<vmem>>, vector<1x2x32xf32>
    %239 = vector.shape_cast %238 : vector<1x2x32xf32> to vector<2x32xf32>
    %240 = vector.broadcast %1 : f32 to vector<2x32xf32>
    %241 = arith.mulf %240, %239 : vector<2x32xf32>
    %cst_84 = arith.constant 1.000000e+00 : f32
    %242 = arith.subf %cst_84, %1 : f32
    %243 = vector.broadcast %242 : f32 to vector<2x32xf32>
    %244 = arith.mulf %243, %237 : vector<2x32xf32>
    %245 = arith.addf %241, %244 : vector<2x32xf32>
    %cst_85 = arith.constant dense<0.000000e+00> : vector<2x96xf32>
    %246 = tpu.matmul %245, %2, %cst_85 {dimension_numbers = #tpu.dot_dimension_numbers<[1], [0], [0], [1], [0, 0, 1, 1], [], []>} : vector<2x32xf32>, vector<32x96xf32>, vector<2x96xf32> -> vector<2x96xf32>
    %247 = vector.extract_strided_slice %246 {offsets = [0, 0], sizes = [2, 64], strides = [1, 1]} : vector<2x96xf32> to vector<2x64xf32>
    %248 = vector.broadcast %3 : vector<1x64xf32> to vector<2x64xf32>
    %249 = arith.addf %247, %248 : vector<2x64xf32>
    %250 = arith.negf %249 : vector<2x64xf32>
    %251 = math.exp %250 : vector<2x64xf32>
    %cst_86 = arith.constant 1.000000e+00 : f32
    %252 = vector.broadcast %cst_86 : f32 to vector<2x64xf32>
    %253 = arith.addf %252, %251 : vector<2x64xf32>
    %254 = arith.divf %252, %253 : vector<2x64xf32>
    %255 = vector.extract_strided_slice %254 {offsets = [0, 0], sizes = [2, 32], strides = [1, 1]} : vector<2x64xf32> to vector<2x32xf32>
    %256 = vector.extract_strided_slice %254 {offsets = [0, 32], sizes = [2, 32], strides = [1, 1]} : vector<2x64xf32> to vector<2x32xf32>
    %257 = vector.extract_strided_slice %246 {offsets = [0, 64], sizes = [2, 32], strides = [1, 1]} : vector<2x96xf32> to vector<2x32xf32>
    %258 = vector.broadcast %4 : vector<1x32xf32> to vector<2x32xf32>
    %259 = arith.addf %257, %258 : vector<2x32xf32>
    %260 = vector.broadcast %5 : vector<1x32xf32> to vector<2x32xf32>
    %261 = arith.mulf %255, %260 : vector<2x32xf32>
    %262 = arith.addf %259, %261 : vector<2x32xf32>
    %263 = math.tanh %262 : vector<2x32xf32>
    %cst_87 = arith.constant 1.000000e+00 : f32
    %264 = vector.broadcast %cst_87 : f32 to vector<2x32xf32>
    %265 = arith.subf %264, %256 : vector<2x32xf32>
    %266 = arith.mulf %265, %263 : vector<2x32xf32>
    %267 = vector.shape_cast %266 : vector<2x32xf32> to vector<2x1x32xf32>
    %268 = vector.broadcast %267 : vector<2x1x32xf32> to vector<2x8x32xf32>
    %269 = arith.mulf %10, %268 : vector<2x8x32xf32>
    %cst_88 = arith.constant dense<0.000000e+00> : vector<2x8xf32>
    %270 = vector.multi_reduction <add>, %269, %cst_88 [2] : vector<2x8x32xf32> to vector<2x8xf32>
    %cst_89 = arith.constant dense<0xFF800000> : vector<2xf32>
    %271 = vector.multi_reduction <maximumf>, %270, %cst_89 [1] : vector<2x8xf32> to vector<2xf32>
    %272 = vector.shape_cast %271 : vector<2xf32> to vector<2x1xf32>
    %273 = vector.broadcast %272 : vector<2x1xf32> to vector<2x8xf32>
    %274 = arith.subf %270, %273 : vector<2x8xf32>
    %275 = math.exp %274 : vector<2x8xf32>
    %cst_90 = arith.constant dense<0.000000e+00> : vector<2xf32>
    %276 = vector.multi_reduction <add>, %275, %cst_90 [1] : vector<2x8xf32> to vector<2xf32>
    %277 = vector.shape_cast %276 : vector<2xf32> to vector<2x1xf32>
    %278 = vector.broadcast %277 : vector<2x1xf32> to vector<2x8xf32>
    %279 = arith.divf %275, %278 : vector<2x8xf32>
    %280 = vector.shape_cast %279 : vector<2x8xf32> to vector<2x8x1xf32>
    %281 = vector.broadcast %280 : vector<2x8x1xf32> to vector<2x8x32xf32>
    %282 = arith.mulf %281, %10 : vector<2x8x32xf32>
    %cst_91 = arith.constant dense<0.000000e+00> : vector<2x32xf32>
    %283 = vector.multi_reduction <add>, %282, %cst_91 [1] : vector<2x8x32xf32> to vector<2x32xf32>
    %cst_92 = arith.constant dense<0.000000e+00> : vector<2x32xf32>
    %284 = tpu.matmul %266, %6, %cst_92 {dimension_numbers = #tpu.dot_dimension_numbers<[1], [0], [0], [1], [0, 0, 1, 1], [], []>} : vector<2x32xf32>, vector<32x32xf32>, vector<2x32xf32> -> vector<2x32xf32>
    %cst_93 = arith.constant dense<0.000000e+00> : vector<2x32xf32>
    %285 = tpu.matmul %283, %7, %cst_93 {dimension_numbers = #tpu.dot_dimension_numbers<[1], [0], [0], [1], [0, 0, 1, 1], [], []>} : vector<2x32xf32>, vector<32x32xf32>, vector<2x32xf32> -> vector<2x32xf32>
    %286 = arith.addf %284, %285 : vector<2x32xf32>
    %287 = math.tanh %286 : vector<2x32xf32>
    %cst_94 = arith.constant dense<0.000000e+00> : vector<2x128xf32>
    %288 = tpu.matmul %287, %8, %cst_94 {dimension_numbers = #tpu.dot_dimension_numbers<[1], [0], [0], [1], [0, 0, 1, 1], [], []>} : vector<2x32xf32>, vector<32x128xf32>, vector<2x128xf32> -> vector<2x128xf32>
    %289 = vector.broadcast %9 : vector<1x128xf32> to vector<2x128xf32>
    %290 = arith.addf %288, %289 : vector<2x128xf32>
    %cst_95 = arith.constant dense<0xFF800000> : vector<2xf32>
    %291 = vector.multi_reduction <maximumf>, %290, %cst_95 [1] : vector<2x128xf32> to vector<2xf32>
    %292 = vector.shape_cast %291 : vector<2xf32> to vector<2x1xf32>
    %293 = vector.broadcast %292 : vector<2x1xf32> to vector<2x128xf32>
    %294 = arith.subf %290, %293 : vector<2x128xf32>
    %295 = math.exp %294 : vector<2x128xf32>
    %cst_96 = arith.constant dense<0.000000e+00> : vector<2xf32>
    %296 = vector.multi_reduction <add>, %295, %cst_96 [1] : vector<2x128xf32> to vector<2xf32>
    %297 = vector.shape_cast %296 : vector<2xf32> to vector<2x1xf32>
    %298 = math.log %297 : vector<2x1xf32>
    %299 = vector.broadcast %298 : vector<2x1xf32> to vector<2x128xf32>
    %300 = arith.subf %294, %299 : vector<2x128xf32>
    %c3_97 = arith.constant 3 : index
    %c0_98 = arith.constant 0 : index
    %c0_99 = arith.constant 0 : index
    %301 = vector.load %arg12[%c3_97, %c0_98, %c0_99] : memref<8x2x128xf32, #tpu.memory_space<vmem>>, vector<1x2x128xf32>
    %302 = vector.shape_cast %301 : vector<1x2x128xf32> to vector<2x128xf32>
    %303 = vector.shape_cast %300 : vector<2x128xf32> to vector<1x2x128xf32>
    tpu.vector_store %arg12[%c3_97, %c0_98, %c0_99], %303 {strides = array<i32>} : memref<8x2x128xf32, #tpu.memory_space<vmem>>, vector<1x2x128xf32>,
    %304 = vector.broadcast %292 : vector<2x1xf32> to vector<2x128xf32>
    %305 = arith.cmpf oge, %290, %304 : vector<2x128xf32>
    %c128_i32_100 = arith.constant 128 : i32
    %306 = vector.broadcast %c128_i32_100 : i32 to vector<2x128xi32>
    %307 = arith.select %305, %12, %306 : vector<2x128xi1>, vector<2x128xi32>
    %cst_101 = arith.constant dense<2147483647> : vector<2xi32>
    %308 = vector.multi_reduction <minsi>, %307, %cst_101 [1] : vector<2x128xi32> to vector<2xi32>
    %309 = vector.shape_cast %308 : vector<2xi32> to vector<2x1xi32>
    %310 = vector.broadcast %309 : vector<2x1xi32> to vector<2x128xi32>
    %311 = arith.cmpi eq, %12, %310 : vector<2x128xi32>
    %312 = arith.extui %311 : vector<2x128xi1> to vector<2x128xi32>
    %313 = arith.sitofp %312 : vector<2x128xi32> to vector<2x128xf32>
    %cst_102 = arith.constant dense<0.000000e+00> : vector<2x32xf32>
    %314 = tpu.matmul %313, %11, %cst_102 {dimension_numbers = #tpu.dot_dimension_numbers<[1], [0], [0], [1], [0, 0, 1, 1], [], []>} : vector<2x128xf32>, vector<128x32xf32>, vector<2x32xf32> -> vector<2x32xf32>
    %c4 = arith.constant 4 : index
    %c0_103 = arith.constant 0 : index
    %c0_104 = arith.constant 0 : index
    %315 = vector.load %arg1[%c4, %c0_103, %c0_104] : memref<8x2x32xf32, #tpu.memory_space<vmem>>, vector<1x2x32xf32>
    %316 = vector.shape_cast %315 : vector<1x2x32xf32> to vector<2x32xf32>
    %317 = vector.broadcast %1 : f32 to vector<2x32xf32>
    %318 = arith.mulf %317, %316 : vector<2x32xf32>
    %cst_105 = arith.constant 1.000000e+00 : f32
    %319 = arith.subf %cst_105, %1 : f32
    %320 = vector.broadcast %319 : f32 to vector<2x32xf32>
    %321 = arith.mulf %320, %314 : vector<2x32xf32>
    %322 = arith.addf %318, %321 : vector<2x32xf32>
    %cst_106 = arith.constant dense<0.000000e+00> : vector<2x96xf32>
    %323 = tpu.matmul %322, %2, %cst_106 {dimension_numbers = #tpu.dot_dimension_numbers<[1], [0], [0], [1], [0, 0, 1, 1], [], []>} : vector<2x32xf32>, vector<32x96xf32>, vector<2x96xf32> -> vector<2x96xf32>
    %324 = vector.extract_strided_slice %323 {offsets = [0, 0], sizes = [2, 64], strides = [1, 1]} : vector<2x96xf32> to vector<2x64xf32>
    %325 = vector.broadcast %3 : vector<1x64xf32> to vector<2x64xf32>
    %326 = arith.addf %324, %325 : vector<2x64xf32>
    %327 = arith.negf %326 : vector<2x64xf32>
    %328 = math.exp %327 : vector<2x64xf32>
    %cst_107 = arith.constant 1.000000e+00 : f32
    %329 = vector.broadcast %cst_107 : f32 to vector<2x64xf32>
    %330 = arith.addf %329, %328 : vector<2x64xf32>
    %331 = arith.divf %329, %330 : vector<2x64xf32>
    %332 = vector.extract_strided_slice %331 {offsets = [0, 0], sizes = [2, 32], strides = [1, 1]} : vector<2x64xf32> to vector<2x32xf32>
    %333 = vector.extract_strided_slice %331 {offsets = [0, 32], sizes = [2, 32], strides = [1, 1]} : vector<2x64xf32> to vector<2x32xf32>
    %334 = vector.extract_strided_slice %323 {offsets = [0, 64], sizes = [2, 32], strides = [1, 1]} : vector<2x96xf32> to vector<2x32xf32>
    %335 = vector.broadcast %4 : vector<1x32xf32> to vector<2x32xf32>
    %336 = arith.addf %334, %335 : vector<2x32xf32>
    %337 = vector.broadcast %5 : vector<1x32xf32> to vector<2x32xf32>
    %338 = arith.mulf %332, %337 : vector<2x32xf32>
    %339 = arith.addf %336, %338 : vector<2x32xf32>
    %340 = math.tanh %339 : vector<2x32xf32>
    %cst_108 = arith.constant 1.000000e+00 : f32
    %341 = vector.broadcast %cst_108 : f32 to vector<2x32xf32>
    %342 = arith.subf %341, %333 : vector<2x32xf32>
    %343 = arith.mulf %342, %340 : vector<2x32xf32>
    %344 = vector.shape_cast %343 : vector<2x32xf32> to vector<2x1x32xf32>
    %345 = vector.broadcast %344 : vector<2x1x32xf32> to vector<2x8x32xf32>
    %346 = arith.mulf %10, %345 : vector<2x8x32xf32>
    %cst_109 = arith.constant dense<0.000000e+00> : vector<2x8xf32>
    %347 = vector.multi_reduction <add>, %346, %cst_109 [2] : vector<2x8x32xf32> to vector<2x8xf32>
    %cst_110 = arith.constant dense<0xFF800000> : vector<2xf32>
    %348 = vector.multi_reduction <maximumf>, %347, %cst_110 [1] : vector<2x8xf32> to vector<2xf32>
    %349 = vector.shape_cast %348 : vector<2xf32> to vector<2x1xf32>
    %350 = vector.broadcast %349 : vector<2x1xf32> to vector<2x8xf32>
    %351 = arith.subf %347, %350 : vector<2x8xf32>
    %352 = math.exp %351 : vector<2x8xf32>
    %cst_111 = arith.constant dense<0.000000e+00> : vector<2xf32>
    %353 = vector.multi_reduction <add>, %352, %cst_111 [1] : vector<2x8xf32> to vector<2xf32>
    %354 = vector.shape_cast %353 : vector<2xf32> to vector<2x1xf32>
    %355 = vector.broadcast %354 : vector<2x1xf32> to vector<2x8xf32>
    %356 = arith.divf %352, %355 : vector<2x8xf32>
    %357 = vector.shape_cast %356 : vector<2x8xf32> to vector<2x8x1xf32>
    %358 = vector.broadcast %357 : vector<2x8x1xf32> to vector<2x8x32xf32>
    %359 = arith.mulf %358, %10 : vector<2x8x32xf32>
    %cst_112 = arith.constant dense<0.000000e+00> : vector<2x32xf32>
    %360 = vector.multi_reduction <add>, %359, %cst_112 [1] : vector<2x8x32xf32> to vector<2x32xf32>
    %cst_113 = arith.constant dense<0.000000e+00> : vector<2x32xf32>
    %361 = tpu.matmul %343, %6, %cst_113 {dimension_numbers = #tpu.dot_dimension_numbers<[1], [0], [0], [1], [0, 0, 1, 1], [], []>} : vector<2x32xf32>, vector<32x32xf32>, vector<2x32xf32> -> vector<2x32xf32>
    %cst_114 = arith.constant dense<0.000000e+00> : vector<2x32xf32>
    %362 = tpu.matmul %360, %7, %cst_114 {dimension_numbers = #tpu.dot_dimension_numbers<[1], [0], [0], [1], [0, 0, 1, 1], [], []>} : vector<2x32xf32>, vector<32x32xf32>, vector<2x32xf32> -> vector<2x32xf32>
    %363 = arith.addf %361, %362 : vector<2x32xf32>
    %364 = math.tanh %363 : vector<2x32xf32>
    %cst_115 = arith.constant dense<0.000000e+00> : vector<2x128xf32>
    %365 = tpu.matmul %364, %8, %cst_115 {dimension_numbers = #tpu.dot_dimension_numbers<[1], [0], [0], [1], [0, 0, 1, 1], [], []>} : vector<2x32xf32>, vector<32x128xf32>, vector<2x128xf32> -> vector<2x128xf32>
    %366 = vector.broadcast %9 : vector<1x128xf32> to vector<2x128xf32>
    %367 = arith.addf %365, %366 : vector<2x128xf32>
    %cst_116 = arith.constant dense<0xFF800000> : vector<2xf32>
    %368 = vector.multi_reduction <maximumf>, %367, %cst_116 [1] : vector<2x128xf32> to vector<2xf32>
    %369 = vector.shape_cast %368 : vector<2xf32> to vector<2x1xf32>
    %370 = vector.broadcast %369 : vector<2x1xf32> to vector<2x128xf32>
    %371 = arith.subf %367, %370 : vector<2x128xf32>
    %372 = math.exp %371 : vector<2x128xf32>
    %cst_117 = arith.constant dense<0.000000e+00> : vector<2xf32>
    %373 = vector.multi_reduction <add>, %372, %cst_117 [1] : vector<2x128xf32> to vector<2xf32>
    %374 = vector.shape_cast %373 : vector<2xf32> to vector<2x1xf32>
    %375 = math.log %374 : vector<2x1xf32>
    %376 = vector.broadcast %375 : vector<2x1xf32> to vector<2x128xf32>
    %377 = arith.subf %371, %376 : vector<2x128xf32>
    %c4_118 = arith.constant 4 : index
    %c0_119 = arith.constant 0 : index
    %c0_120 = arith.constant 0 : index
    %378 = vector.load %arg12[%c4_118, %c0_119, %c0_120] : memref<8x2x128xf32, #tpu.memory_space<vmem>>, vector<1x2x128xf32>
    %379 = vector.shape_cast %378 : vector<1x2x128xf32> to vector<2x128xf32>
    %380 = vector.shape_cast %377 : vector<2x128xf32> to vector<1x2x128xf32>
    tpu.vector_store %arg12[%c4_118, %c0_119, %c0_120], %380 {strides = array<i32>} : memref<8x2x128xf32, #tpu.memory_space<vmem>>, vector<1x2x128xf32>,
    %381 = vector.broadcast %369 : vector<2x1xf32> to vector<2x128xf32>
    %382 = arith.cmpf oge, %367, %381 : vector<2x128xf32>
    %c128_i32_121 = arith.constant 128 : i32
    %383 = vector.broadcast %c128_i32_121 : i32 to vector<2x128xi32>
    %384 = arith.select %382, %12, %383 : vector<2x128xi1>, vector<2x128xi32>
    %cst_122 = arith.constant dense<2147483647> : vector<2xi32>
    %385 = vector.multi_reduction <minsi>, %384, %cst_122 [1] : vector<2x128xi32> to vector<2xi32>
    %386 = vector.shape_cast %385 : vector<2xi32> to vector<2x1xi32>
    %387 = vector.broadcast %386 : vector<2x1xi32> to vector<2x128xi32>
    %388 = arith.cmpi eq, %12, %387 : vector<2x128xi32>
    %389 = arith.extui %388 : vector<2x128xi1> to vector<2x128xi32>
    %390 = arith.sitofp %389 : vector<2x128xi32> to vector<2x128xf32>
    %cst_123 = arith.constant dense<0.000000e+00> : vector<2x32xf32>
    %391 = tpu.matmul %390, %11, %cst_123 {dimension_numbers = #tpu.dot_dimension_numbers<[1], [0], [0], [1], [0, 0, 1, 1], [], []>} : vector<2x128xf32>, vector<128x32xf32>, vector<2x32xf32> -> vector<2x32xf32>
    %c5 = arith.constant 5 : index
    %c0_124 = arith.constant 0 : index
    %c0_125 = arith.constant 0 : index
    %392 = vector.load %arg1[%c5, %c0_124, %c0_125] : memref<8x2x32xf32, #tpu.memory_space<vmem>>, vector<1x2x32xf32>
    %393 = vector.shape_cast %392 : vector<1x2x32xf32> to vector<2x32xf32>
    %394 = vector.broadcast %1 : f32 to vector<2x32xf32>
    %395 = arith.mulf %394, %393 : vector<2x32xf32>
    %cst_126 = arith.constant 1.000000e+00 : f32
    %396 = arith.subf %cst_126, %1 : f32
    %397 = vector.broadcast %396 : f32 to vector<2x32xf32>
    %398 = arith.mulf %397, %391 : vector<2x32xf32>
    %399 = arith.addf %395, %398 : vector<2x32xf32>
    %cst_127 = arith.constant dense<0.000000e+00> : vector<2x96xf32>
    %400 = tpu.matmul %399, %2, %cst_127 {dimension_numbers = #tpu.dot_dimension_numbers<[1], [0], [0], [1], [0, 0, 1, 1], [], []>} : vector<2x32xf32>, vector<32x96xf32>, vector<2x96xf32> -> vector<2x96xf32>
    %401 = vector.extract_strided_slice %400 {offsets = [0, 0], sizes = [2, 64], strides = [1, 1]} : vector<2x96xf32> to vector<2x64xf32>
    %402 = vector.broadcast %3 : vector<1x64xf32> to vector<2x64xf32>
    %403 = arith.addf %401, %402 : vector<2x64xf32>
    %404 = arith.negf %403 : vector<2x64xf32>
    %405 = math.exp %404 : vector<2x64xf32>
    %cst_128 = arith.constant 1.000000e+00 : f32
    %406 = vector.broadcast %cst_128 : f32 to vector<2x64xf32>
    %407 = arith.addf %406, %405 : vector<2x64xf32>
    %408 = arith.divf %406, %407 : vector<2x64xf32>
    %409 = vector.extract_strided_slice %408 {offsets = [0, 0], sizes = [2, 32], strides = [1, 1]} : vector<2x64xf32> to vector<2x32xf32>
    %410 = vector.extract_strided_slice %408 {offsets = [0, 32], sizes = [2, 32], strides = [1, 1]} : vector<2x64xf32> to vector<2x32xf32>
    %411 = vector.extract_strided_slice %400 {offsets = [0, 64], sizes = [2, 32], strides = [1, 1]} : vector<2x96xf32> to vector<2x32xf32>
    %412 = vector.broadcast %4 : vector<1x32xf32> to vector<2x32xf32>
    %413 = arith.addf %411, %412 : vector<2x32xf32>
    %414 = vector.broadcast %5 : vector<1x32xf32> to vector<2x32xf32>
    %415 = arith.mulf %409, %414 : vector<2x32xf32>
    %416 = arith.addf %413, %415 : vector<2x32xf32>
    %417 = math.tanh %416 : vector<2x32xf32>
    %cst_129 = arith.constant 1.000000e+00 : f32
    %418 = vector.broadcast %cst_129 : f32 to vector<2x32xf32>
    %419 = arith.subf %418, %410 : vector<2x32xf32>
    %420 = arith.mulf %419, %417 : vector<2x32xf32>
    %421 = vector.shape_cast %420 : vector<2x32xf32> to vector<2x1x32xf32>
    %422 = vector.broadcast %421 : vector<2x1x32xf32> to vector<2x8x32xf32>
    %423 = arith.mulf %10, %422 : vector<2x8x32xf32>
    %cst_130 = arith.constant dense<0.000000e+00> : vector<2x8xf32>
    %424 = vector.multi_reduction <add>, %423, %cst_130 [2] : vector<2x8x32xf32> to vector<2x8xf32>
    %cst_131 = arith.constant dense<0xFF800000> : vector<2xf32>
    %425 = vector.multi_reduction <maximumf>, %424, %cst_131 [1] : vector<2x8xf32> to vector<2xf32>
    %426 = vector.shape_cast %425 : vector<2xf32> to vector<2x1xf32>
    %427 = vector.broadcast %426 : vector<2x1xf32> to vector<2x8xf32>
    %428 = arith.subf %424, %427 : vector<2x8xf32>
    %429 = math.exp %428 : vector<2x8xf32>
    %cst_132 = arith.constant dense<0.000000e+00> : vector<2xf32>
    %430 = vector.multi_reduction <add>, %429, %cst_132 [1] : vector<2x8xf32> to vector<2xf32>
    %431 = vector.shape_cast %430 : vector<2xf32> to vector<2x1xf32>
    %432 = vector.broadcast %431 : vector<2x1xf32> to vector<2x8xf32>
    %433 = arith.divf %429, %432 : vector<2x8xf32>
    %434 = vector.shape_cast %433 : vector<2x8xf32> to vector<2x8x1xf32>
    %435 = vector.broadcast %434 : vector<2x8x1xf32> to vector<2x8x32xf32>
    %436 = arith.mulf %435, %10 : vector<2x8x32xf32>
    %cst_133 = arith.constant dense<0.000000e+00> : vector<2x32xf32>
    %437 = vector.multi_reduction <add>, %436, %cst_133 [1] : vector<2x8x32xf32> to vector<2x32xf32>
    %cst_134 = arith.constant dense<0.000000e+00> : vector<2x32xf32>
    %438 = tpu.matmul %420, %6, %cst_134 {dimension_numbers = #tpu.dot_dimension_numbers<[1], [0], [0], [1], [0, 0, 1, 1], [], []>} : vector<2x32xf32>, vector<32x32xf32>, vector<2x32xf32> -> vector<2x32xf32>
    %cst_135 = arith.constant dense<0.000000e+00> : vector<2x32xf32>
    %439 = tpu.matmul %437, %7, %cst_135 {dimension_numbers = #tpu.dot_dimension_numbers<[1], [0], [0], [1], [0, 0, 1, 1], [], []>} : vector<2x32xf32>, vector<32x32xf32>, vector<2x32xf32> -> vector<2x32xf32>
    %440 = arith.addf %438, %439 : vector<2x32xf32>
    %441 = math.tanh %440 : vector<2x32xf32>
    %cst_136 = arith.constant dense<0.000000e+00> : vector<2x128xf32>
    %442 = tpu.matmul %441, %8, %cst_136 {dimension_numbers = #tpu.dot_dimension_numbers<[1], [0], [0], [1], [0, 0, 1, 1], [], []>} : vector<2x32xf32>, vector<32x128xf32>, vector<2x128xf32> -> vector<2x128xf32>
    %443 = vector.broadcast %9 : vector<1x128xf32> to vector<2x128xf32>
    %444 = arith.addf %442, %443 : vector<2x128xf32>
    %cst_137 = arith.constant dense<0xFF800000> : vector<2xf32>
    %445 = vector.multi_reduction <maximumf>, %444, %cst_137 [1] : vector<2x128xf32> to vector<2xf32>
    %446 = vector.shape_cast %445 : vector<2xf32> to vector<2x1xf32>
    %447 = vector.broadcast %446 : vector<2x1xf32> to vector<2x128xf32>
    %448 = arith.subf %444, %447 : vector<2x128xf32>
    %449 = math.exp %448 : vector<2x128xf32>
    %cst_138 = arith.constant dense<0.000000e+00> : vector<2xf32>
    %450 = vector.multi_reduction <add>, %449, %cst_138 [1] : vector<2x128xf32> to vector<2xf32>
    %451 = vector.shape_cast %450 : vector<2xf32> to vector<2x1xf32>
    %452 = math.log %451 : vector<2x1xf32>
    %453 = vector.broadcast %452 : vector<2x1xf32> to vector<2x128xf32>
    %454 = arith.subf %448, %453 : vector<2x128xf32>
    %c5_139 = arith.constant 5 : index
    %c0_140 = arith.constant 0 : index
    %c0_141 = arith.constant 0 : index
    %455 = vector.load %arg12[%c5_139, %c0_140, %c0_141] : memref<8x2x128xf32, #tpu.memory_space<vmem>>, vector<1x2x128xf32>
    %456 = vector.shape_cast %455 : vector<1x2x128xf32> to vector<2x128xf32>
    %457 = vector.shape_cast %454 : vector<2x128xf32> to vector<1x2x128xf32>
    tpu.vector_store %arg12[%c5_139, %c0_140, %c0_141], %457 {strides = array<i32>} : memref<8x2x128xf32, #tpu.memory_space<vmem>>, vector<1x2x128xf32>,
    %458 = vector.broadcast %446 : vector<2x1xf32> to vector<2x128xf32>
    %459 = arith.cmpf oge, %444, %458 : vector<2x128xf32>
    %c128_i32_142 = arith.constant 128 : i32
    %460 = vector.broadcast %c128_i32_142 : i32 to vector<2x128xi32>
    %461 = arith.select %459, %12, %460 : vector<2x128xi1>, vector<2x128xi32>
    %cst_143 = arith.constant dense<2147483647> : vector<2xi32>
    %462 = vector.multi_reduction <minsi>, %461, %cst_143 [1] : vector<2x128xi32> to vector<2xi32>
    %463 = vector.shape_cast %462 : vector<2xi32> to vector<2x1xi32>
    %464 = vector.broadcast %463 : vector<2x1xi32> to vector<2x128xi32>
    %465 = arith.cmpi eq, %12, %464 : vector<2x128xi32>
    %466 = arith.extui %465 : vector<2x128xi1> to vector<2x128xi32>
    %467 = arith.sitofp %466 : vector<2x128xi32> to vector<2x128xf32>
    %cst_144 = arith.constant dense<0.000000e+00> : vector<2x32xf32>
    %468 = tpu.matmul %467, %11, %cst_144 {dimension_numbers = #tpu.dot_dimension_numbers<[1], [0], [0], [1], [0, 0, 1, 1], [], []>} : vector<2x128xf32>, vector<128x32xf32>, vector<2x32xf32> -> vector<2x32xf32>
    %c6 = arith.constant 6 : index
    %c0_145 = arith.constant 0 : index
    %c0_146 = arith.constant 0 : index
    %469 = vector.load %arg1[%c6, %c0_145, %c0_146] : memref<8x2x32xf32, #tpu.memory_space<vmem>>, vector<1x2x32xf32>
    %470 = vector.shape_cast %469 : vector<1x2x32xf32> to vector<2x32xf32>
    %471 = vector.broadcast %1 : f32 to vector<2x32xf32>
    %472 = arith.mulf %471, %470 : vector<2x32xf32>
    %cst_147 = arith.constant 1.000000e+00 : f32
    %473 = arith.subf %cst_147, %1 : f32
    %474 = vector.broadcast %473 : f32 to vector<2x32xf32>
    %475 = arith.mulf %474, %468 : vector<2x32xf32>
    %476 = arith.addf %472, %475 : vector<2x32xf32>
    %cst_148 = arith.constant dense<0.000000e+00> : vector<2x96xf32>
    %477 = tpu.matmul %476, %2, %cst_148 {dimension_numbers = #tpu.dot_dimension_numbers<[1], [0], [0], [1], [0, 0, 1, 1], [], []>} : vector<2x32xf32>, vector<32x96xf32>, vector<2x96xf32> -> vector<2x96xf32>
    %478 = vector.extract_strided_slice %477 {offsets = [0, 0], sizes = [2, 64], strides = [1, 1]} : vector<2x96xf32> to vector<2x64xf32>
    %479 = vector.broadcast %3 : vector<1x64xf32> to vector<2x64xf32>
    %480 = arith.addf %478, %479 : vector<2x64xf32>
    %481 = arith.negf %480 : vector<2x64xf32>
    %482 = math.exp %481 : vector<2x64xf32>
    %cst_149 = arith.constant 1.000000e+00 : f32
    %483 = vector.broadcast %cst_149 : f32 to vector<2x64xf32>
    %484 = arith.addf %483, %482 : vector<2x64xf32>
    %485 = arith.divf %483, %484 : vector<2x64xf32>
    %486 = vector.extract_strided_slice %485 {offsets = [0, 0], sizes = [2, 32], strides = [1, 1]} : vector<2x64xf32> to vector<2x32xf32>
    %487 = vector.extract_strided_slice %485 {offsets = [0, 32], sizes = [2, 32], strides = [1, 1]} : vector<2x64xf32> to vector<2x32xf32>
    %488 = vector.extract_strided_slice %477 {offsets = [0, 64], sizes = [2, 32], strides = [1, 1]} : vector<2x96xf32> to vector<2x32xf32>
    %489 = vector.broadcast %4 : vector<1x32xf32> to vector<2x32xf32>
    %490 = arith.addf %488, %489 : vector<2x32xf32>
    %491 = vector.broadcast %5 : vector<1x32xf32> to vector<2x32xf32>
    %492 = arith.mulf %486, %491 : vector<2x32xf32>
    %493 = arith.addf %490, %492 : vector<2x32xf32>
    %494 = math.tanh %493 : vector<2x32xf32>
    %cst_150 = arith.constant 1.000000e+00 : f32
    %495 = vector.broadcast %cst_150 : f32 to vector<2x32xf32>
    %496 = arith.subf %495, %487 : vector<2x32xf32>
    %497 = arith.mulf %496, %494 : vector<2x32xf32>
    %498 = vector.shape_cast %497 : vector<2x32xf32> to vector<2x1x32xf32>
    %499 = vector.broadcast %498 : vector<2x1x32xf32> to vector<2x8x32xf32>
    %500 = arith.mulf %10, %499 : vector<2x8x32xf32>
    %cst_151 = arith.constant dense<0.000000e+00> : vector<2x8xf32>
    %501 = vector.multi_reduction <add>, %500, %cst_151 [2] : vector<2x8x32xf32> to vector<2x8xf32>
    %cst_152 = arith.constant dense<0xFF800000> : vector<2xf32>
    %502 = vector.multi_reduction <maximumf>, %501, %cst_152 [1] : vector<2x8xf32> to vector<2xf32>
    %503 = vector.shape_cast %502 : vector<2xf32> to vector<2x1xf32>
    %504 = vector.broadcast %503 : vector<2x1xf32> to vector<2x8xf32>
    %505 = arith.subf %501, %504 : vector<2x8xf32>
    %506 = math.exp %505 : vector<2x8xf32>
    %cst_153 = arith.constant dense<0.000000e+00> : vector<2xf32>
    %507 = vector.multi_reduction <add>, %506, %cst_153 [1] : vector<2x8xf32> to vector<2xf32>
    %508 = vector.shape_cast %507 : vector<2xf32> to vector<2x1xf32>
    %509 = vector.broadcast %508 : vector<2x1xf32> to vector<2x8xf32>
    %510 = arith.divf %506, %509 : vector<2x8xf32>
    %511 = vector.shape_cast %510 : vector<2x8xf32> to vector<2x8x1xf32>
    %512 = vector.broadcast %511 : vector<2x8x1xf32> to vector<2x8x32xf32>
    %513 = arith.mulf %512, %10 : vector<2x8x32xf32>
    %cst_154 = arith.constant dense<0.000000e+00> : vector<2x32xf32>
    %514 = vector.multi_reduction <add>, %513, %cst_154 [1] : vector<2x8x32xf32> to vector<2x32xf32>
    %cst_155 = arith.constant dense<0.000000e+00> : vector<2x32xf32>
    %515 = tpu.matmul %497, %6, %cst_155 {dimension_numbers = #tpu.dot_dimension_numbers<[1], [0], [0], [1], [0, 0, 1, 1], [], []>} : vector<2x32xf32>, vector<32x32xf32>, vector<2x32xf32> -> vector<2x32xf32>
    %cst_156 = arith.constant dense<0.000000e+00> : vector<2x32xf32>
    %516 = tpu.matmul %514, %7, %cst_156 {dimension_numbers = #tpu.dot_dimension_numbers<[1], [0], [0], [1], [0, 0, 1, 1], [], []>} : vector<2x32xf32>, vector<32x32xf32>, vector<2x32xf32> -> vector<2x32xf32>
    %517 = arith.addf %515, %516 : vector<2x32xf32>
    %518 = math.tanh %517 : vector<2x32xf32>
    %cst_157 = arith.constant dense<0.000000e+00> : vector<2x128xf32>
    %519 = tpu.matmul %518, %8, %cst_157 {dimension_numbers = #tpu.dot_dimension_numbers<[1], [0], [0], [1], [0, 0, 1, 1], [], []>} : vector<2x32xf32>, vector<32x128xf32>, vector<2x128xf32> -> vector<2x128xf32>
    %520 = vector.broadcast %9 : vector<1x128xf32> to vector<2x128xf32>
    %521 = arith.addf %519, %520 : vector<2x128xf32>
    %cst_158 = arith.constant dense<0xFF800000> : vector<2xf32>
    %522 = vector.multi_reduction <maximumf>, %521, %cst_158 [1] : vector<2x128xf32> to vector<2xf32>
    %523 = vector.shape_cast %522 : vector<2xf32> to vector<2x1xf32>
    %524 = vector.broadcast %523 : vector<2x1xf32> to vector<2x128xf32>
    %525 = arith.subf %521, %524 : vector<2x128xf32>
    %526 = math.exp %525 : vector<2x128xf32>
    %cst_159 = arith.constant dense<0.000000e+00> : vector<2xf32>
    %527 = vector.multi_reduction <add>, %526, %cst_159 [1] : vector<2x128xf32> to vector<2xf32>
    %528 = vector.shape_cast %527 : vector<2xf32> to vector<2x1xf32>
    %529 = math.log %528 : vector<2x1xf32>
    %530 = vector.broadcast %529 : vector<2x1xf32> to vector<2x128xf32>
    %531 = arith.subf %525, %530 : vector<2x128xf32>
    %c6_160 = arith.constant 6 : index
    %c0_161 = arith.constant 0 : index
    %c0_162 = arith.constant 0 : index
    %532 = vector.load %arg12[%c6_160, %c0_161, %c0_162] : memref<8x2x128xf32, #tpu.memory_space<vmem>>, vector<1x2x128xf32>
    %533 = vector.shape_cast %532 : vector<1x2x128xf32> to vector<2x128xf32>
    %534 = vector.shape_cast %531 : vector<2x128xf32> to vector<1x2x128xf32>
    tpu.vector_store %arg12[%c6_160, %c0_161, %c0_162], %534 {strides = array<i32>} : memref<8x2x128xf32, #tpu.memory_space<vmem>>, vector<1x2x128xf32>,
    %535 = vector.broadcast %523 : vector<2x1xf32> to vector<2x128xf32>
    %536 = arith.cmpf oge, %521, %535 : vector<2x128xf32>
    %c128_i32_163 = arith.constant 128 : i32
    %537 = vector.broadcast %c128_i32_163 : i32 to vector<2x128xi32>
    %538 = arith.select %536, %12, %537 : vector<2x128xi1>, vector<2x128xi32>
    %cst_164 = arith.constant dense<2147483647> : vector<2xi32>
    %539 = vector.multi_reduction <minsi>, %538, %cst_164 [1] : vector<2x128xi32> to vector<2xi32>
    %540 = vector.shape_cast %539 : vector<2xi32> to vector<2x1xi32>
    %541 = vector.broadcast %540 : vector<2x1xi32> to vector<2x128xi32>
    %542 = arith.cmpi eq, %12, %541 : vector<2x128xi32>
    %543 = arith.extui %542 : vector<2x128xi1> to vector<2x128xi32>
    %544 = arith.sitofp %543 : vector<2x128xi32> to vector<2x128xf32>
    %cst_165 = arith.constant dense<0.000000e+00> : vector<2x32xf32>
    %545 = tpu.matmul %544, %11, %cst_165 {dimension_numbers = #tpu.dot_dimension_numbers<[1], [0], [0], [1], [0, 0, 1, 1], [], []>} : vector<2x128xf32>, vector<128x32xf32>, vector<2x32xf32> -> vector<2x32xf32>
    %c7 = arith.constant 7 : index
    %c0_166 = arith.constant 0 : index
    %c0_167 = arith.constant 0 : index
    %546 = vector.load %arg1[%c7, %c0_166, %c0_167] : memref<8x2x32xf32, #tpu.memory_space<vmem>>, vector<1x2x32xf32>
    %547 = vector.shape_cast %546 : vector<1x2x32xf32> to vector<2x32xf32>
    %548 = vector.broadcast %1 : f32 to vector<2x32xf32>
    %549 = arith.mulf %548, %547 : vector<2x32xf32>
    %cst_168 = arith.constant 1.000000e+00 : f32
    %550 = arith.subf %cst_168, %1 : f32
    %551 = vector.broadcast %550 : f32 to vector<2x32xf32>
    %552 = arith.mulf %551, %545 : vector<2x32xf32>
    %553 = arith.addf %549, %552 : vector<2x32xf32>
    %cst_169 = arith.constant dense<0.000000e+00> : vector<2x96xf32>
    %554 = tpu.matmul %553, %2, %cst_169 {dimension_numbers = #tpu.dot_dimension_numbers<[1], [0], [0], [1], [0, 0, 1, 1], [], []>} : vector<2x32xf32>, vector<32x96xf32>, vector<2x96xf32> -> vector<2x96xf32>
    %555 = vector.extract_strided_slice %554 {offsets = [0, 0], sizes = [2, 64], strides = [1, 1]} : vector<2x96xf32> to vector<2x64xf32>
    %556 = vector.broadcast %3 : vector<1x64xf32> to vector<2x64xf32>
    %557 = arith.addf %555, %556 : vector<2x64xf32>
    %558 = arith.negf %557 : vector<2x64xf32>
    %559 = math.exp %558 : vector<2x64xf32>
    %cst_170 = arith.constant 1.000000e+00 : f32
    %560 = vector.broadcast %cst_170 : f32 to vector<2x64xf32>
    %561 = arith.addf %560, %559 : vector<2x64xf32>
    %562 = arith.divf %560, %561 : vector<2x64xf32>
    %563 = vector.extract_strided_slice %562 {offsets = [0, 0], sizes = [2, 32], strides = [1, 1]} : vector<2x64xf32> to vector<2x32xf32>
    %564 = vector.extract_strided_slice %562 {offsets = [0, 32], sizes = [2, 32], strides = [1, 1]} : vector<2x64xf32> to vector<2x32xf32>
    %565 = vector.extract_strided_slice %554 {offsets = [0, 64], sizes = [2, 32], strides = [1, 1]} : vector<2x96xf32> to vector<2x32xf32>
    %566 = vector.broadcast %4 : vector<1x32xf32> to vector<2x32xf32>
    %567 = arith.addf %565, %566 : vector<2x32xf32>
    %568 = vector.broadcast %5 : vector<1x32xf32> to vector<2x32xf32>
    %569 = arith.mulf %563, %568 : vector<2x32xf32>
    %570 = arith.addf %567, %569 : vector<2x32xf32>
    %571 = math.tanh %570 : vector<2x32xf32>
    %cst_171 = arith.constant 1.000000e+00 : f32
    %572 = vector.broadcast %cst_171 : f32 to vector<2x32xf32>
    %573 = arith.subf %572, %564 : vector<2x32xf32>
    %574 = arith.mulf %573, %571 : vector<2x32xf32>
    %575 = vector.shape_cast %574 : vector<2x32xf32> to vector<2x1x32xf32>
    %576 = vector.broadcast %575 : vector<2x1x32xf32> to vector<2x8x32xf32>
    %577 = arith.mulf %10, %576 : vector<2x8x32xf32>
    %cst_172 = arith.constant dense<0.000000e+00> : vector<2x8xf32>
    %578 = vector.multi_reduction <add>, %577, %cst_172 [2] : vector<2x8x32xf32> to vector<2x8xf32>
    %cst_173 = arith.constant dense<0xFF800000> : vector<2xf32>
    %579 = vector.multi_reduction <maximumf>, %578, %cst_173 [1] : vector<2x8xf32> to vector<2xf32>
    %580 = vector.shape_cast %579 : vector<2xf32> to vector<2x1xf32>
    %581 = vector.broadcast %580 : vector<2x1xf32> to vector<2x8xf32>
    %582 = arith.subf %578, %581 : vector<2x8xf32>
    %583 = math.exp %582 : vector<2x8xf32>
    %cst_174 = arith.constant dense<0.000000e+00> : vector<2xf32>
    %584 = vector.multi_reduction <add>, %583, %cst_174 [1] : vector<2x8xf32> to vector<2xf32>
    %585 = vector.shape_cast %584 : vector<2xf32> to vector<2x1xf32>
    %586 = vector.broadcast %585 : vector<2x1xf32> to vector<2x8xf32>
    %587 = arith.divf %583, %586 : vector<2x8xf32>
    %588 = vector.shape_cast %587 : vector<2x8xf32> to vector<2x8x1xf32>
    %589 = vector.broadcast %588 : vector<2x8x1xf32> to vector<2x8x32xf32>
    %590 = arith.mulf %589, %10 : vector<2x8x32xf32>
    %cst_175 = arith.constant dense<0.000000e+00> : vector<2x32xf32>
    %591 = vector.multi_reduction <add>, %590, %cst_175 [1] : vector<2x8x32xf32> to vector<2x32xf32>
    %cst_176 = arith.constant dense<0.000000e+00> : vector<2x32xf32>
    %592 = tpu.matmul %574, %6, %cst_176 {dimension_numbers = #tpu.dot_dimension_numbers<[1], [0], [0], [1], [0, 0, 1, 1], [], []>} : vector<2x32xf32>, vector<32x32xf32>, vector<2x32xf32> -> vector<2x32xf32>
    %cst_177 = arith.constant dense<0.000000e+00> : vector<2x32xf32>
    %593 = tpu.matmul %591, %7, %cst_177 {dimension_numbers = #tpu.dot_dimension_numbers<[1], [0], [0], [1], [0, 0, 1, 1], [], []>} : vector<2x32xf32>, vector<32x32xf32>, vector<2x32xf32> -> vector<2x32xf32>
    %594 = arith.addf %592, %593 : vector<2x32xf32>
    %595 = math.tanh %594 : vector<2x32xf32>
    %cst_178 = arith.constant dense<0.000000e+00> : vector<2x128xf32>
    %596 = tpu.matmul %595, %8, %cst_178 {dimension_numbers = #tpu.dot_dimension_numbers<[1], [0], [0], [1], [0, 0, 1, 1], [], []>} : vector<2x32xf32>, vector<32x128xf32>, vector<2x128xf32> -> vector<2x128xf32>
    %597 = vector.broadcast %9 : vector<1x128xf32> to vector<2x128xf32>
    %598 = arith.addf %596, %597 : vector<2x128xf32>
    %cst_179 = arith.constant dense<0xFF800000> : vector<2xf32>
    %599 = vector.multi_reduction <maximumf>, %598, %cst_179 [1] : vector<2x128xf32> to vector<2xf32>
    %600 = vector.shape_cast %599 : vector<2xf32> to vector<2x1xf32>
    %601 = vector.broadcast %600 : vector<2x1xf32> to vector<2x128xf32>
    %602 = arith.subf %598, %601 : vector<2x128xf32>
    %603 = math.exp %602 : vector<2x128xf32>
    %cst_180 = arith.constant dense<0.000000e+00> : vector<2xf32>
    %604 = vector.multi_reduction <add>, %603, %cst_180 [1] : vector<2x128xf32> to vector<2xf32>
    %605 = vector.shape_cast %604 : vector<2xf32> to vector<2x1xf32>
    %606 = math.log %605 : vector<2x1xf32>
    %607 = vector.broadcast %606 : vector<2x1xf32> to vector<2x128xf32>
    %608 = arith.subf %602, %607 : vector<2x128xf32>
    %c7_181 = arith.constant 7 : index
    %c0_182 = arith.constant 0 : index
    %c0_183 = arith.constant 0 : index
    %609 = vector.load %arg12[%c7_181, %c0_182, %c0_183] : memref<8x2x128xf32, #tpu.memory_space<vmem>>, vector<1x2x128xf32>
    %610 = vector.shape_cast %609 : vector<1x2x128xf32> to vector<2x128xf32>
    %611 = vector.shape_cast %608 : vector<2x128xf32> to vector<1x2x128xf32>
    tpu.vector_store %arg12[%c7_181, %c0_182, %c0_183], %611 {strides = array<i32>} : memref<8x2x128xf32, #tpu.memory_space<vmem>>, vector<1x2x128xf32>,
    %c0_184 = arith.constant 0 : index
    %c0_185 = arith.constant 0 : index
    %612 = vector.load %arg13[%c0_184, %c0_185] : memref<2x32xf32, #tpu.memory_space<vmem>>, vector<2x32xf32>
    tpu.vector_store %arg13[%c0_184, %c0_185], %574 {strides = array<i32>} : memref<2x32xf32, #tpu.memory_space<vmem>>, vector<2x32xf32>,
    return
  }
}

</mosaic_0001>

<bundles_post_ra>
// kernel: _decoder_forward_jit.1
= control target key start
LH: loop header
LB: loop body
LE: loop exit
PB: predicated region body
PF: predicated region fallthrough
CT: control target
= control target key end

     0   :  { %s3937_s0 = inlined_call_operand.<no memory space> [shape: s32[1], index: 0, kind: input, shape index: {}]   ;;  %s3938_s1 = inlined_call_operand.vmem [shape: f32[8,2,32], index: 1, kind: input, shape index: {}]   ;;  %s3939_s2 = inlined_call_operand.vmem [shape: f32[2,8,32], index: 2, kind: input, shape index: {}]   ;;  %s3940_s3 = inlined_call_operand.vmem [shape: f32[128,32], index: 3, kind: input, shape index: {}]   ;;  %s3941_s4 = inlined_call_operand.vmem [shape: f32[32,96], index: 4, kind: input, shape index: {}]   ;;  %s3942_s5 = inlined_call_operand.vmem [shape: f32[1,64], index: 5, kind: input, shape index: {}]   ;;  %s3943_s6 = inlined_call_operand.vmem [shape: f32[1,32], index: 6, kind: input, shape index: {}]   ;;  %s3944_s7 = inlined_call_operand.vmem [shape: f32[1,32], index: 7, kind: input, shape index: {}]   ;;  %s3945_s8 = inlined_call_operand.vmem [shape: f32[32,32], index: 8, kind: input, shape index: {}]   ;;  %s3946_s9 = inlined_call_operand.vmem [shape: f32[32,32], index: 9, kind: input, shape index: {}]   ;;  %s3947_s10 = inlined_call_operand.vmem [shape: f32[32,128], index: 10, kind: input, shape index: {}]   ;;  %s3948_s11 = inlined_call_operand.vmem [shape: f32[1,128], index: 11, kind: input, shape index: {}]   ;;  %s3949_s12 = inlined_call_operand.vmem [shape: f32[8,2,128], index: 12, kind: output, shape index: {0}]   ;;  %s3950_s13 = inlined_call_operand.hbm [shape: f32[2,32], index: 13, kind: output, shape index: {1}]  }
   0x1   :  { %v2896_v0 = vld [vmem:[%s3941_s4 + $0x18] sm:$0xff]  ;;  %v2901_v1 = vld [vmem:[%s3941_s4 + $0x10] sm:$0xff]  ;;  %v2907_v2 = vld [vmem:[%s3941_s4 + $0x8] sm:$0xff] }
   0x2   :  { %104 = vmatpush.msra.mxu0 %v2896_v0  ;;  %v2586_v3 = vld [vmem:[%s3943_s6] ss:$0 sm:$0xff] }
   0x4   :  { %105 = vmatpush.msra.mxu0 %v2901_v1 }
   0x5   :  { %20 = vsyncpa [#allocation4], 0  ;;  %v2916_v4 = vld [vmem:[%s3941_s4] sm:$0xff]  ;;  %s2818_s18 = smov 64   ;;  %vm88_vm0 = vcmask 261120   ;;  %s2819_s24 = smov 96   ;;  %v85_v43 = vlaneseq }
   0x6   :  { %137 = vrot.lane.b32.xlu0 %v2586_v3, %s2818_s18  ;;  %106 = vmatpush.msra.mxu0 %v2907_v2  ;;  %v87_v5 = vld [vmem:[%s3938_s1] sm:$0x3]  ;;  %v2951_v35 = vld [vmem:[%s3939_s2 + $0x8] sm:$0xff]  ;;  %vm179_vm5 = vcmask 1041409   ;;  %vm182_vm6 = vcmask 58368   ;;  %v2820_v51 = vmov 0   ;;  %s46_s23 = scvt.s32.f32 %s3937_s0 }
   0x7   :  { %v2928_v6 = vld [vmem:[%s3942_s5] ss:$0 sm:$0xff]  ;;  %v2962_v44 = vand.u32 127, %v85_v43  ;;  %2584 = vset.pattern.permute.xlu0 %v2820_v51  ;;  %2583 = vset.pattern.permute.xlu2 %v2820_v51  ;;  %v3015_v43 = vld [vmem:[%s3946_s9 + $0x10] sm:$0xff]  ;;  %vm349_vm15 = vcmask 1041408   ;;  %s2822_s26 = smov [#allocation3]  }
   0x8   :  { %107 = vmatpush.msra.mxu0 %v2916_v4  ;;  %v2934_v19 = vld [vmem:[%s3944_s7] ss:$0 sm:$0xff]  ;;  %2585 = vset.pattern.permute.xlu1 %v2820_v51  ;;  %s407_s25 = ssub.f32 1.0, %s46_s23  ;;  %s2499_s0 = sshll.u32 %s3950_s13, 4  ;;  %s2500_s0 = int_to_ptr.hbm [resolvable:$true] %s2499_s0 }
   0x9   :  { %2510 = vmatmul.msk.f32.vlgmr.msra.gmra.mxu0 %vm88_vm0, %v87_v5  ;;  %v2958_v39 = vld [vmem:[%s3939_s2] sm:$0xff] }
  0x78   :  { %v2938_v24 = vpop.permute.xlu0 %137 }
  0x86   :  { %v109_v7 = vpop.f32.mrf.mxu0 }
  0x87   :  { %v115_v8 = vadd.f32 %v2928_v6, %v109_v7  ;;  %v140_v25 = vadd.f32 %v2938_v24, %v109_v7 }
  0x89   :  { %v2511_v9 = vmul.f32 -1.442695, %v115_v8 }
  0x8b   :  { %2590 = vpow2.f32 %v2511_v9 }
  0x91   :  { %v2591_v10 = vpop.eup %2590 }
  0x92   :  { %v119_v11 = vadd.f32 1.0, %v2591_v10 }
  0x94   :  { %2592 = vrcp.f32 %v119_v11  ;;  %v131_v15 = vand.u32 2147483648, %v119_v11  ;;  %v129_v17 = vand.u32 2147483647, %v119_v11  ;;  %vm125_vm2 = vweird.f32 %v119_v11 }
  0x96   :  { %v132_v20 = vor.u32 1.1754944e-38, %v131_v15  ;;  %vm130_vm4 = vcmp.eq.f32.partialorder %v129_v17, 8.507059e+37 }
  0x9a   :  { %v2593_v12 = vpop.eup %2592 }
  0x9b   :  { %v121_v13 = vmul.f32 %v2593_v12, %v119_v11  ;;  %vm126_vm1 = vweird.f32 %v2593_v12 }
  0x9c   :  { %vm127_vm3 = vmor %vm125_vm2, %vm126_vm1 }
  0x9d   :  { %v122_v14 = vsub.f32 1.0, %v121_v13 }
  0x9f   :  { %v123_v16 = vmul.f32 %v2593_v12, %v122_v14 }
  0xa1   :  { %v124_v18 = vadd.f32 %v2593_v12, %v123_v16 }
  0xa3   :  { %v128_v21 = vsel %vm127_vm3, %v2593_v12, %v124_v18 }
  0xa4   :  { %v133_v22 = vsel %vm130_vm4, %v132_v20, %v128_v21 }
  0xa5   :  { %v144_v23 = vmul.f32 %v2934_v19, %v133_v22  ;;  %v151_v29 = vsub.f32 1.0, %v133_v22 }
  0xa7   :  { %146 = vrot.lane.b32.xlu0 %v144_v23, %s2818_s18 }
 0x119   :  { %v147_v26 = vpop.permute.xlu0 %146 }
 0x11a   :  { %v149_v27 = vadd.f32 %v147_v26, %v140_v25 }
 0x11c   :  { %2594 = vtanh.f32 %v149_v27 }
 0x122   :  { %v2595_v28 = vpop.eup %2594 }
 0x123   :  { %153 = vrot.lane.b32.xlu1 %v2595_v28, %s2819_s24 }
 0x195   :  { %v154_v30 = vpop.permute.xlu1 %153 }
 0x196   :  { %v2942_v31 = vmul.f32 %v154_v30, %v151_v29 }
 0x198   :  { %v159_v32 = vperm.slane %v2942_v31, 0  ;;  %v158_v33 = vrot.slane %v2942_v31, 1 }
 0x19a   :  { %161 = vrot.lane.b32.xlu1 %v159_v32, %s2819_s24  ;;  %v160_v34 = vperm.slane %v158_v33, 0 }
 0x19c   :  { %163 = vrot.lane.b32.xlu2 %v160_v34, %s2819_s24 }
 0x1f6   :  { %v164_v36 = vpop.permute.xlu2 %163 }
 0x1f7   :  { %v168_v37 = vmul.f32 %v164_v36, %v2951_v35 }
 0x1f9   :  { %v172_v38 = vsel %vm88_vm0, %v168_v37, 0.0  ;;  %v2977_v37 = vld [vmem:[%s3945_s8 + $0x18] sm:$0xff] }
 0x1fa   :  { %173 = vadd.xlane.f32.xlu0 %v172_v38  ;;  %314 = vmatpush.msra.mxu2 %v2977_v37  ;;  %v2984_v38 = vld [vmem:[%s3945_s8 + $0x10] sm:$0xff] }
 0x1fb   :  { %623 = vmatpush.msra.mxu3 %v2977_v37 }
 0x1fc   :  { %315 = vmatpush.msra.mxu2 %v2984_v38 }
 0x1fd   :  { %624 = vmatpush.msra.mxu3 %v2984_v38 }
 0x20c   :  { %v162_v40 = vpop.permute.xlu1 %161 }
 0x20d   :  { %v167_v41 = vmul.f32 %v162_v40, %v2958_v39  ;;  %v2998_v40 = vld [vmem:[%s3945_s8] sm:$0xff] }
 0x20f   :  { %v169_v42 = vsel %vm88_vm0, %v167_v41, 0.0 }
 0x210   :  { %170 = vadd.xlane.f32.xlu2 %v169_v42  ;;  %v3009_v42 = vld [vmem:[%s3946_s9 + $0x18] sm:$0xff] }
 0x211   :  { %290 = vmatpush.msra.mxu1 %v3009_v42 }
 0x213   :  { %291 = vmatpush.msra.mxu1 %v3015_v43 }
 0x26d   :  { %v174_v45 = vpop.xlane.xlu0 %173 }
 0x26e   :  { %v178_v47 = vperm.slane %v174_v45, %v2962_v44 }
 0x283   :  { %v171_v46 = vpop.xlane.xlu2 %170 }
 0x284   :  { %v177_v48 = vperm.slane %v171_v46, %v2962_v44 }
 0x286   :  { %v180_v49 = vsel %vm179_vm5, %v178_v47, %v177_v48 }
 0x287   :  { %v183_v50 = vsel %vm182_vm6, %v180_v49, -inf }
 0x288   :  { %184 = vmax.xlane.f32.xlu1 %v183_v50 }
 0x2fb   :  { %v185_v52 = vpop.xlane.xlu1 %184 }
 0x2fc   :  { %v187_v53 = vperm.slane %v185_v52, 0  ;;  %v188_v54 = vperm.slane %v185_v52, 1 }
 0x2fe   :  { %v191_v55 = vsub.f32 %v171_v46, %v187_v53  ;;  %v192_v56 = vsub.f32 %v174_v45, %v188_v54  ;;  %v3020_v45 = vld [vmem:[%s3946_s9 + $0x8] sm:$0xff]  ;;  %v3026_v46 = vld [vmem:[%s3946_s9] sm:$0xff] }
 0x2ff   :  { %292 = vmatpush.msra.mxu1 %v3020_v45 }
 0x300   :  { %v193_v57 = vmul.f32 1.442695, %v191_v55  ;;  %v195_v58 = vmul.f32 1.442695, %v192_v56 }
 0x301   :  { %293 = vmatpush.msra.mxu1 %v3026_v46 }
 0x302   :  { %2596 = vpow2.f32 %v193_v57 }
 0x303   :  { %2598 = vpow2.f32 %v195_v58  ;;  %426 = vmatpush.msrb.mxu1 %v2896_v0 }
 0x305   :  { %427 = vmatpush.msrb.mxu1 %v2901_v1 }
 0x307   :  { %428 = vmatpush.msrb.mxu1 %v2907_v2 }
 0x308   :  { %v2597_v59 = vpop.eup %2596 }
 0x309   :  { %v2599_v60 = vpop.eup %2598  ;;  %200 = vperm.xlu2 %2583, %v2597_v59   ;;  %429 = vmatpush.msrb.mxu1 %v2916_v4 }
 0x30a   :  { %203 = vperm.xlu0 %2584, %v2599_v60  }
 0x363   :  { %v201_v61 = vpop.permute.xlu2 %200 }
 0x364   :  { %v205_v63 = vperm.slane %v201_v61, %v2962_v44 }
 0x37c   :  { %v204_v62 = vpop.permute.xlu0 %203 }
 0x37d   :  { %v206_v3 = vperm.slane %v204_v62, %v2962_v44 }
 0x37f   :  { %v207_v5 = vsel %vm179_vm5, %v206_v3, %v205_v63 }
 0x380   :  { %v209_v7 = vsel %vm182_vm6, %v207_v5, 0.0 }
 0x381   :  { %210 = vadd.xlane.f32.xlu1 %v209_v7  ;;  %v3044_v7 = vld [vmem:[%s3947_s10 + $0x18] sm:$0xff] }
 0x3f4   :  { %v211_v8 = vpop.xlane.xlu1 %210 }
 0x3f5   :  { %v213_v9 = vperm.slane %v211_v8, 0  ;;  %v214_v10 = vperm.slane %v211_v8, 1  ;;  %v3049_v8 = vld [vmem:[%s3947_s10 + $0x10] sm:$0xff] }
 0x3f7   :  { %2600 = vrcp.f32 %v213_v9  ;;  %v228_v17 = vand.u32 2147483648, %v213_v9  ;;  %v243_v18 = vand.u32 2147483648, %v214_v10  ;;  %v226_v21 = vand.u32 2147483647, %v213_v9 }
 0x3f8   :  { %2602 = vrcp.f32 %v214_v10  ;;  %v241_v23 = vand.u32 2147483647, %v214_v10  ;;  %vm222_vm9 = vweird.f32 %v213_v9  ;;  %vm237_vm10 = vweird.f32 %v214_v10 }
 0x3f9   :  { %v229_v27 = vor.u32 1.1754944e-38, %v228_v17  ;;  %v244_v28 = vor.u32 1.1754944e-38, %v243_v18  ;;  %vm227_vm13 = vcmp.eq.f32.partialorder %v226_v21, 8.507059e+37 }
 0x3fa   :  { %vm242_vm14 = vcmp.eq.f32.partialorder %v241_v23, 8.507059e+37 }
 0x3fd   :  { %v2601_v11 = vpop.eup %2600 }
 0x3fe   :  { %v2603_v12 = vpop.eup %2602  ;;  %v218_v13 = vmul.f32 %v2601_v11, %v213_v9  ;;  %vm223_vm7 = vweird.f32 %v2601_v11  ;;  %v3056_v9 = vld [vmem:[%s3947_s10 + $0x8] sm:$0xff] }
 0x3ff   :  { %v233_v14 = vmul.f32 %v2603_v12, %v214_v10  ;;  %vm238_vm8 = vweird.f32 %v2603_v12  ;;  %vm224_vm11 = vmor %vm222_vm9, %vm223_vm7  ;;  %v3063_v10 = vld [vmem:[%s3947_s10] sm:$0xff] }
 0x400   :  { %v219_v15 = vsub.f32 1.0, %v218_v13  ;;  %vm239_vm12 = vmor %vm237_vm10, %vm238_vm8 }
 0x401   :  { %v234_v16 = vsub.f32 1.0, %v233_v14 }
 0x402   :  { %v220_v20 = vmul.f32 %v2601_v11, %v219_v15  ;;  %v3077_v15 = vld [vmem:[%s3948_s11] ss:$0 sm:$0xff] }
 0x403   :  { %v235_v22 = vmul.f32 %v2603_v12, %v234_v16 }
 0x404   :  { %v221_v25 = vadd.f32 %v2601_v11, %v220_v20 }
 0x405   :  { %v236_v26 = vadd.f32 %v2603_v12, %v235_v22 }
 0x406   :  { %v225_v29 = vsel %vm224_vm11, %v2601_v11, %v221_v25 }
 0x407   :  { %v240_v30 = vsel %vm239_vm12, %v2603_v12, %v236_v26  ;;  %v230_v32 = vsel %vm227_vm13, %v229_v27, %v225_v29  ;;  %v3093_v26 = vld [vmem:[%s3940_s3 + $0x78] sm:$0xff]  ;;  %v3098_v27 = vld [vmem:[%s3940_s3 + $0x70] sm:$0xff]  ;;  %v3112_v29 = vld [vmem:[%s3940_s3 + $0x60] sm:$0xff] }
 0x408   :  { %v245_v33 = vsel %vm242_vm14, %v244_v28, %v240_v30  ;;  %v231_v34 = vmul.f32 %v2597_v59, %v230_v32  ;;  %383 = vmatpush.msrb.mxu0 %v3093_v26  ;;  %v3105_v28 = vld [vmem:[%s3940_s3 + $0x68] sm:$0xff]  ;;  %v3119_v30 = vld [vmem:[%s3940_s3 + $0x58] sm:$0xff]  ;;  %v3126_v32 = vld [vmem:[%s3940_s3 + $0x50] sm:$0xff] }
 0x409   :  { %v246_v36 = vmul.f32 %v2599_v60, %v245_v33  ;;  %v3133_v33 = vld [vmem:[%s3940_s3 + $0x48] sm:$0xff] }
 0x40a   :  { %249 = vperm.xlu1 %2585, %v231_v34   ;;  %384 = vmatpush.msrb.mxu0 %v3098_v27  ;;  %v3140_v34 = vld [vmem:[%s3940_s3 + $0x40] sm:$0xff] }
 0x40b   :  { %254 = vperm.xlu2 %2583, %v246_v36   ;;  %v3147_v36 = vld [vmem:[%s3940_s3 + $0x38] sm:$0xff] }
 0x40c   :  { %385 = vmatpush.msrb.mxu0 %v3105_v28 }
 0x40e   :  { %386 = vmatpush.msrb.mxu0 %v3112_v29 }
 0x410   :  { %387 = vmatpush.msrb.mxu0 %v3119_v30 }
 0x412   :  { %388 = vmatpush.msrb.mxu0 %v3126_v32 }
 0x413   :  { %298 = vrot.lane.b32.xlu2 %v2942_v31, %s2819_s24  ;;  %v2991_v31 = vld [vmem:[%s3945_s8 + $0x8] sm:$0xff] }
 0x414   :  { %316 = vmatpush.msra.mxu2 %v2991_v31  ;;  %625 = vmatpush.msra.mxu3 %v2991_v31 }
 0x415   :  { %389 = vmatpush.msrb.mxu0 %v3133_v33 }
 0x416   :  { %317 = vmatpush.msra.mxu2 %v2998_v40  ;;  %626 = vmatpush.msra.mxu3 %v2998_v40 }
 0x417   :  { %390 = vmatpush.msrb.mxu0 %v3140_v34 }
 0x418   :  { %729 = vmatpush.msrb.mxu3 %v2896_v0  ;;  %341 = vmatpush.msrb.mxu2 %v3044_v7 }
 0x419   :  { %391 = vmatpush.msrb.mxu0 %v3147_v36 }
 0x41a   :  { %730 = vmatpush.msrb.mxu3 %v2901_v1  ;;  %342 = vmatpush.msrb.mxu2 %v3049_v8 }
 0x41c   :  { %731 = vmatpush.msrb.mxu3 %v2907_v2  ;;  %343 = vmatpush.msrb.mxu2 %v3056_v9 }
 0x41e   :  { %732 = vmatpush.msrb.mxu3 %v2916_v4  ;;  %344 = vmatpush.msrb.mxu2 %v3063_v10 }
 0x465   :  { %v255_v41 = vpop.permute.xlu2 %254 }
 0x466   :  { %v258_v48 = vmul.f32 %v255_v41, %v2951_v35  ;;  %v3154_v41 = vld [vmem:[%s3940_s3 + $0x30] sm:$0xff] }
 0x467   :  { %392 = vmatpush.msrb.mxu0 %v3154_v41 }
 0x468   :  { %v266_v49 = vsel %vm88_vm0, %v258_v48, 0.0  ;;  %v3168_v48 = vld [vmem:[%s3940_s3 + $0x20] sm:$0xff] }
 0x469   :  { %v267_v50 = vrot.slane %v266_v49, 4 }
 0x46b   :  { %v268_v51 = vadd.f32 %v267_v50, %v266_v49  ;;  %v3175_v49 = vld [vmem:[%s3940_s3 + $0x18] sm:$0xff] }
 0x46d   :  { %v299_v47 = vpop.permute.xlu2 %298  ;;  %v269_v54 = vrot.slane %v268_v51, 2 }
 0x46e   :  { %2513 = vmatmul.msk.f32.vlgmr.msra.gmra.mxu2 %vm88_vm0, %v299_v47  ;;  %v3161_v47 = vld [vmem:[%s3940_s3 + $0x28] sm:$0xff] }
 0x46f   :  { %v270_v57 = vadd.f32 %v269_v54, %v268_v51  ;;  %599 = vmatpush.msra.mxu2 %v3009_v42  ;;  %393 = vmatpush.msrb.mxu0 %v3161_v47  ;;  %v3184_v54 = vld [vmem:[%s3940_s3 + $0x10] sm:$0xff] }
 0x471   :  { %v271_v60 = vrot.slane %v270_v57, 1  ;;  %600 = vmatpush.msra.mxu2 %v3015_v43  ;;  %394 = vmatpush.msrb.mxu0 %v3168_v48 }
 0x473   :  { %v272_v3 = vadd.f32 %v271_v60, %v270_v57  ;;  %601 = vmatpush.msra.mxu2 %v3020_v45  ;;  %395 = vmatpush.msrb.mxu0 %v3175_v49 }
 0x475   :  { %602 = vmatpush.msra.mxu2 %v3026_v46  ;;  %396 = vmatpush.msrb.mxu0 %v3184_v54 }
 0x47c   :  { %v250_v52 = vpop.permute.xlu1 %249 }
 0x47d   :  { %v257_v53 = vmul.f32 %v250_v52, %v2958_v39 }
 0x47f   :  { %v259_v55 = vsel %vm88_vm0, %v257_v53, 0.0 }
 0x480   :  { %v260_v56 = vrot.slane %v259_v55, 4 }
 0x482   :  { %v261_v58 = vadd.f32 %v260_v56, %v259_v55  ;;  %v3191_v55 = vld [vmem:[%s3940_s3 + $0x8] sm:$0xff]  ;;  %v3196_v56 = vld [vmem:[%s3940_s3] sm:$0xff] }
 0x483   :  { %397 = vmatpush.msrb.mxu0 %v3191_v55 }
 0x484   :  { %v262_v59 = vrot.slane %v261_v58, 2 }
 0x485   :  { %398 = vmatpush.msrb.mxu0 %v3196_v56 }
 0x486   :  { %v263_v61 = vadd.f32 %v262_v59, %v261_v58 }
 0x487   :  { %1032 = vmatpush.msra.mxu0 %v2896_v0  ;;  %v2517_v0 = vld [vmem:[%s3938_s1 + $0x2] sm:$0x3] }
 0x488   :  { %v264_v62 = vrot.slane %v263_v61, 1 }
 0x489   :  { %1033 = vmatpush.msra.mxu0 %v2901_v1  ;;  %v3218_v1 = vstv %s46_s23 }
 0x48a   :  { %v265_v63 = vadd.f32 %v264_v62, %v263_v61  ;;  %v2821_v62 = vmov 1.0  }
 0x48b   :  { %1034 = vmatpush.msra.mxu0 %v2907_v2  ;;  %v3220_v2 = vstv %s407_s25 }
 0x48c   :  { %v275_v5 = vsel %vm179_vm5, %v272_v3, %v265_v63 }
 0x48d   :  { %2512 = vmatmul.msk.f32.vlgmr.msra.gmra.mxu1 %vm88_vm0, %v275_v5  ;;  %1035 = vmatpush.msra.mxu0 %v2916_v4  ;;  %v406_v4 = vmul.f32 %v2517_v0, %v3218_v1 }
 0x48e   :  { %647 = vmatpush.msra.mxu1 %v3044_v7 }
 0x490   :  { %648 = vmatpush.msra.mxu1 %v3049_v8 }
 0x492   :  { %649 = vmatpush.msra.mxu1 %v3056_v9 }
 0x494   :  { %650 = vmatpush.msra.mxu1 %v3063_v10 }
 0x4f1   :  { %v319_v11 = vpop.f32.mrf.mxu2 }
 0x50a   :  { %v295_v12 = vpop.f32.mrf.mxu1 }
 0x50b   :  { %v320_v13 = vadd.f32 %v319_v11, %v295_v12 }
 0x50d   :  { %2604 = vtanh.f32 %v320_v13 }
 0x513   :  { %v2605_v14 = vpop.eup %2604 }
 0x514   :  { %2514 = vmatmul.msk.f32.vlgmr.msrb.gmra.mxu2 %vm88_vm0, %v2605_v14 }
 0x515   :  { %689 = vmatpush.msrb.mxu2 %v3093_v26 }
 0x517   :  { %690 = vmatpush.msrb.mxu2 %v3098_v27 }
 0x519   :  { %691 = vmatpush.msrb.mxu2 %v3105_v28 }
 0x51b   :  { %692 = vmatpush.msrb.mxu2 %v3112_v29 }
 0x51d   :  { %693 = vmatpush.msrb.mxu2 %v3119_v30 }
 0x51f   :  { %694 = vmatpush.msrb.mxu2 %v3126_v32 }
 0x521   :  { %695 = vmatpush.msrb.mxu2 %v3133_v33 }
 0x523   :  { %696 = vmatpush.msrb.mxu2 %v3140_v34 }
 0x525   :  { %697 = vmatpush.msrb.mxu2 %v3147_v36 }
 0x527   :  { %698 = vmatpush.msrb.mxu2 %v3154_v41 }
 0x529   :  { %699 = vmatpush.msrb.mxu2 %v3161_v47 }
 0x52b   :  { %700 = vmatpush.msrb.mxu2 %v3168_v48 }
 0x52d   :  { %701 = vmatpush.msrb.mxu2 %v3175_v49 }
 0x52f   :  { %702 = vmatpush.msrb.mxu2 %v3184_v54 }
 0x531   :  { %703 = vmatpush.msrb.mxu2 %v3191_v55 }
 0x533   :  { %704 = vmatpush.msrb.mxu2 %v3196_v56 }
 0x597   :  { %v346_v16 = vpop.f32.mrf.mxu2 }
 0x598   :  { %v3080_v17 = vadd.f32 %v3077_v15, %v346_v16 }
 0x59a   :  { %v350_v18 = vsel %vm349_vm15, %v3080_v17, -inf }
 0x59b   :  { %351 = vmax.xlane.f32.xlu2 %v350_v18 }
 0x60e   :  { %v3084_v20 = vpop.xlane.xlu2 %351 }
 0x60f   :  { %vm363_vm1 = vcmp.ge.f32.partialorder %v3080_v17, %v3084_v20 }
 0x610   :  { %v364_v21 = vsel %vm363_vm1, %v2962_v44, 128 }
 0x611   :  { %v365_v22 = vsel %vm349_vm15, %v364_v21, 2147483647 }
 0x612   :  { %v367_v23 = vshra.s32 %v365_v22, 16  ;;  %v366_v50 = vand.u32 65535, %v365_v22 }
 0x614   :  { %v369_v25 = vcvt.s32.f32 %v367_v23  ;;  %v368_v52 = vcvt.s32.f32 %v366_v50 }
 0x616   :  { %370 = vmin.xlane.f32.xlu1 %v369_v25 }
 0x689   :  { %v371_v51 = vpop.xlane.xlu1 %370 }
 0x68a   :  { %vm372_vm2 = vcmp.eq.f32.partialorder %v369_v25, %v371_v51  ;;  %v377_v57 = vcvt.f32.s32 %v371_v51 }
 0x68b   :  { %v373_v53 = vsel %vm372_vm2, %v368_v52, inf }
 0x68c   :  { %374 = vmin.xlane.f32.xlu0 %v373_v53  ;;  %v378_v59 = vshll.u32 %v377_v57, 16 }
 0x6ff   :  { %v375_v58 = vpop.xlane.xlu0 %374 }
 0x700   :  { %v376_v60 = vcvt.f32.s32 %v375_v58 }
 0x702   :  { %v379_v61 = vadd.s32 %v378_v59, %v376_v60 }
 0x704   :  { %vm380_vm3 = vcmp.eq.s32.totalorder %v2962_v44, %v379_v61 }
 0x705   :  { %2516 = vmatmul.msk.f32.vlgmr.msrb.gmra.mxu0 %vm380_vm3, %v2821_v62 }
 0x706   :  { %1229 = vmatpush.msrb.mxu0 %v2977_v37 }
 0x708   :  { %1230 = vmatpush.msrb.mxu0 %v2984_v38 }
 0x70a   :  { %1231 = vmatpush.msrb.mxu0 %v2991_v31 }
 0x70c   :  { %1232 = vmatpush.msrb.mxu0 %v2998_v40 }
 0x782   :  { %v400_v63 = vpop.f32.mrf.mxu0 }
 0x783   :  { %v409_v3 = vmul.f32 %v3220_v2, %v400_v63 }
 0x785   :  { %v410_v5 = vadd.f32 %v409_v3, %v406_v4 }
 0x787   :  { %2518 = vmatmul.msk.f32.vlgmr.msrb.gmra.mxu1 %vm88_vm0, %v410_v5 }
 0x788   :  { %902 = vmatpush.msrb.mxu1 %v3009_v42 }
 0x78a   :  { %903 = vmatpush.msrb.mxu1 %v3015_v43 }
 0x78c   :  { %904 = vmatpush.msrb.mxu1 %v3020_v45 }
 0x78e   :  { %905 = vmatpush.msrb.mxu1 %v3026_v46 }
 0x804   :  { %v431_v11 = vpop.f32.mrf.mxu1 }
 0x805   :  { %v434_v12 = vadd.f32 %v2928_v6, %v431_v11  ;;  %v454_v51 = vadd.f32 %v431_v11, %v2938_v24 }
 0x807   :  { %v2519_v13 = vmul.f32 -1.442695, %v434_v12 }
 0x809   :  { %2606 = vpow2.f32 %v2519_v13 }
 0x80f   :  { %v2607_v14 = vpop.eup %2606 }
 0x810   :  { %v438_v16 = vadd.f32 1.0, %v2607_v14 }
 0x812   :  { %2608 = vrcp.f32 %v438_v16  ;;  %v450_v23 = vand.u32 2147483648, %v438_v16  ;;  %v448_v42 = vand.u32 2147483647, %v438_v16  ;;  %vm444_vm7 = vweird.f32 %v438_v16 }
 0x814   :  { %v451_v45 = vor.u32 1.1754944e-38, %v450_v23  ;;  %vm449_vm9 = vcmp.eq.f32.partialorder %v448_v42, 8.507059e+37 }
 0x818   :  { %v2609_v18 = vpop.eup %2608 }
 0x819   :  { %v440_v21 = vmul.f32 %v2609_v18, %v438_v16  ;;  %vm445_vm4 = vweird.f32 %v2609_v18 }
 0x81a   :  { %vm446_vm8 = vmor %vm444_vm7, %vm445_vm4 }
 0x81b   :  { %v441_v22 = vsub.f32 1.0, %v440_v21 }
 0x81d   :  { %v442_v25 = vmul.f32 %v2609_v18, %v441_v22 }
 0x81f   :  { %v443_v43 = vadd.f32 %v2609_v18, %v442_v25 }
 0x821   :  { %v447_v46 = vsel %vm446_vm8, %v2609_v18, %v443_v43 }
 0x822   :  { %v452_v50 = vsel %vm449_vm9, %v451_v45, %v447_v46 }
 0x823   :  { %v455_v6 = vmul.f32 %v2934_v19, %v452_v50  ;;  %v462_v58 = vsub.f32 1.0, %v452_v50 }
 0x825   :  { %457 = vrot.lane.b32.xlu2 %v455_v6, %s2818_s18 }
 0x87f   :  { %v458_v52 = vpop.permute.xlu2 %457 }
 0x880   :  { %v460_v53 = vadd.f32 %v458_v52, %v454_v51 }
 0x882   :  { %2610 = vtanh.f32 %v460_v53 }
 0x888   :  { %v2611_v57 = vpop.eup %2610 }
 0x889   :  { %464 = vrot.lane.b32.xlu1 %v2611_v57, %s2819_s24 }
 0x8fb   :  { %v465_v59 = vpop.permute.xlu1 %464 }
 0x8fc   :  { %v467_v60 = vmul.f32 %v465_v59, %v462_v58 }
 0x8fe   :  { %v470_v61 = vperm.slane %v467_v60, 0  ;;  %v469_v0 = vrot.slane %v467_v60, 1 }
 0x900   :  { %472 = vrot.lane.b32.xlu0 %v470_v61, %s2819_s24  ;;  %v471_v4 = vperm.slane %v469_v0, 0 }
 0x902   :  { %474 = vrot.lane.b32.xlu2 %v471_v4, %s2819_s24 }
 0x95c   :  { %v475_v19 = vpop.permute.xlu2 %474 }
 0x95d   :  { %v479_v63 = vmul.f32 %v475_v19, %v2951_v35 }
 0x95f   :  { %v483_v3 = vsel %vm88_vm0, %v479_v63, 0.0 }
 0x960   :  { %484 = vadd.xlane.f32.xlu0 %v483_v3 }
 0x972   :  { %v473_v5 = vpop.permute.xlu0 %472 }
 0x973   :  { %v478_v11 = vmul.f32 %v473_v5, %v2958_v39 }
 0x975   :  { %v480_v12 = vsel %vm88_vm0, %v478_v11, 0.0 }
 0x976   :  { %481 = vadd.xlane.f32.xlu1 %v480_v12 }
 0x9d3   :  { %v485_v13 = vpop.xlane.xlu0 %484 }
 0x9d4   :  { %v489_v16 = vperm.slane %v485_v13, %v2962_v44 }
 0x9e9   :  { %v482_v14 = vpop.xlane.xlu1 %481 }
 0x9ea   :  { %v488_v18 = vperm.slane %v482_v14, %v2962_v44 }
 0x9ec   :  { %v490_v21 = vsel %vm179_vm5, %v489_v16, %v488_v18 }
 0x9ed   :  { %v492_v22 = vsel %vm182_vm6, %v490_v21, -inf }
 0x9ee   :  { %493 = vmax.xlane.f32.xlu2 %v492_v22 }
 0xa61   :  { %v494_v23 = vpop.xlane.xlu2 %493 }
 0xa62   :  { %v496_v25 = vperm.slane %v494_v23, 0  ;;  %v497_v42 = vperm.slane %v494_v23, 1 }
 0xa64   :  { %v500_v43 = vsub.f32 %v482_v14, %v496_v25  ;;  %v501_v45 = vsub.f32 %v485_v13, %v497_v42 }
 0xa66   :  { %v502_v46 = vmul.f32 1.442695, %v500_v43  ;;  %v504_v50 = vmul.f32 1.442695, %v501_v45 }
 0xa68   :  { %2612 = vpow2.f32 %v502_v46 }
 0xa69   :  { %2614 = vpow2.f32 %v504_v50 }
 0xa6e   :  { %v2613_v6 = vpop.eup %2612 }
 0xa6f   :  { %v2615_v51 = vpop.eup %2614  ;;  %509 = vperm.xlu1 %2585, %v2613_v6  }
 0xa70   :  { %512 = vperm.xlu0 %2584, %v2615_v51  }
 0xa77   :  { %607 = vrot.lane.b32.xlu1 %v467_v60, %s2819_s24 }
 0xae1   :  { %v510_v52 = vpop.permute.xlu1 %509 }
 0xae2   :  { %v513_v53 = vpop.permute.xlu0 %512  ;;  %v514_v57 = vperm.slane %v510_v52, %v2962_v44 }
 0xae3   :  { %v515_v58 = vperm.slane %v513_v53, %v2962_v44 }
 0xae5   :  { %v516_v59 = vsel %vm179_vm5, %v515_v58, %v514_v57 }
 0xae6   :  { %v518_v61 = vsel %vm182_vm6, %v516_v59, 0.0 }
 0xae7   :  { %519 = vadd.xlane.f32.xlu2 %v518_v61 }
 0xae9   :  { %v608_v0 = vpop.permute.xlu1 %607 }
 0xaea   :  { %2521 = vmatmul.msk.f32.vlgmr.msra.gmra.mxu3 %vm88_vm0, %v608_v0 }
 0xaeb   :  { %926 = vmatpush.msra.mxu3 %v2977_v37 }
 0xaed   :  { %927 = vmatpush.msra.mxu3 %v2984_v38 }
 0xaef   :  { %928 = vmatpush.msra.mxu3 %v2991_v31 }
 0xaf1   :  { %929 = vmatpush.msra.mxu3 %v2998_v40 }
 0xb5a   :  { %v520_v60 = vpop.xlane.xlu2 %519 }
 0xb5b   :  { %v522_v4 = vperm.slane %v520_v60, 0  ;;  %v523_v19 = vperm.slane %v520_v60, 1 }
 0xb5d   :  { %2616 = vrcp.f32 %v522_v4  ;;  %v537_v14 = vand.u32 2147483648, %v522_v4  ;;  %v552_v16 = vand.u32 2147483648, %v523_v19  ;;  %v535_v38 = vand.u32 2147483647, %v522_v4 }
 0xb5e   :  { %2618 = vrcp.f32 %v523_v19  ;;  %v550_v31 = vand.u32 2147483647, %v523_v19  ;;  %vm531_vm12 = vweird.f32 %v522_v4  ;;  %vm546_vm13 = vweird.f32 %v523_v19 }
 0xb5f   :  { %v538_v22 = vor.u32 1.1754944e-38, %v537_v14  ;;  %v553_v23 = vor.u32 1.1754944e-38, %v552_v16  ;;  %vm536_vm2 = vcmp.eq.f32.partialorder %v535_v38, 8.507059e+37 }
 0xb60   :  { %vm551_vm3 = vcmp.eq.f32.partialorder %v550_v31, 8.507059e+37 }
 0xb63   :  { %v2617_v63 = vpop.eup %2616 }
 0xb64   :  { %v2619_v3 = vpop.eup %2618  ;;  %v527_v5 = vmul.f32 %v2617_v63, %v522_v4  ;;  %vm532_vm10 = vweird.f32 %v2617_v63 }
 0xb65   :  { %v542_v11 = vmul.f32 %v2619_v3, %v523_v19  ;;  %vm547_vm11 = vweird.f32 %v2619_v3  ;;  %vm533_vm14 = vmor %vm531_vm12, %vm532_vm10 }
 0xb66   :  { %v528_v12 = vsub.f32 1.0, %v527_v5  ;;  %vm548_vm1 = vmor %vm546_vm13, %vm547_vm11 }
 0xb67   :  { %v543_v13 = vsub.f32 1.0, %v542_v11 }
 0xb68   :  { %v529_v37 = vmul.f32 %v2617_v63, %v528_v12 }
 0xb69   :  { %v544_v18 = vmul.f32 %v2619_v3, %v543_v13 }
 0xb6a   :  { %v530_v40 = vadd.f32 %v2617_v63, %v529_v37 }
 0xb6b   :  { %v545_v21 = vadd.f32 %v2619_v3, %v544_v18 }
 0xb6c   :  { %v534_v25 = vsel %vm533_vm14, %v2617_v63, %v530_v40 }
 0xb6d   :  { %v549_v42 = vsel %vm548_vm1, %v2619_v3, %v545_v21  ;;  %v539_v43 = vsel %vm536_vm2, %v538_v22, %v534_v25 }
 0xb6e   :  { %v554_v45 = vsel %vm551_vm3, %v553_v23, %v549_v42  ;;  %v540_v46 = vmul.f32 %v2613_v6, %v539_v43 }
 0xb6f   :  { %v555_v50 = vmul.f32 %v2615_v51, %v554_v45 }
 0xb70   :  { %558 = vperm.xlu2 %2583, %v540_v46  }
 0xb71   :  { %563 = vperm.xlu0 %2584, %v555_v50  }
 0xbca   :  { %v559_v52 = vpop.permute.xlu2 %558 }
 0xbcb   :  { %v566_v53 = vmul.f32 %v559_v52, %v2958_v39 }
 0xbcd   :  { %v568_v57 = vsel %vm88_vm0, %v566_v53, 0.0 }
 0xbce   :  { %v569_v58 = vrot.slane %v568_v57, 4 }
 0xbd0   :  { %v570_v59 = vadd.f32 %v569_v58, %v568_v57 }
 0xbd2   :  { %v571_v60 = vrot.slane %v570_v59, 2 }
 0xbd4   :  { %v572_v63 = vadd.f32 %v571_v60, %v570_v59 }
 0xbd6   :  { %v573_v51 = vrot.slane %v572_v63, 1 }
 0xbd8   :  { %v574_v12 = vadd.f32 %v573_v51, %v572_v63 }
 0xbe3   :  { %v564_v61 = vpop.permute.xlu0 %563 }
 0xbe4   :  { %v567_v0 = vmul.f32 %v564_v61, %v2951_v35  ;;  %v628_v35 = vpop.f32.mrf.mxu3  ;;  %v2526_v61 = vld [vmem:[%s3938_s1 + $0x4] sm:$0x3] }
 0xbe6   :  { %v575_v4 = vsel %vm88_vm0, %v567_v0, 0.0  ;;  %v711_v0 = vmul.f32 %v2526_v61, %v3218_v1 }
 0xbe7   :  { %v576_v19 = vrot.slane %v575_v4, 4 }
 0xbe9   :  { %v577_v3 = vadd.f32 %v576_v19, %v575_v4 }
 0xbeb   :  { %v578_v6 = vrot.slane %v577_v3, 2 }
 0xbed   :  { %v579_v5 = vadd.f32 %v578_v6, %v577_v3  ;;  %v3335_v3 = vld [vmem:[%s3942_s5] ss:$0 sm:$0xff] }
 0xbef   :  { %v580_v11 = vrot.slane %v579_v5, 1 }
 0xbf1   :  { %v581_v13 = vadd.f32 %v580_v11, %v579_v5 }
 0xbf3   :  { %v584_v14 = vsel %vm179_vm5, %v581_v13, %v574_v12 }
 0xbf4   :  { %2520 = vmatmul.msk.f32.vlgmr.msra.gmra.mxu2 %vm88_vm0, %v584_v14 }
 0xbf5   :  { %1295 = vmatpush.msra.mxu2 %v3093_v26 }
 0xbf7   :  { %1296 = vmatpush.msra.mxu2 %v3098_v27 }
 0xbf9   :  { %1297 = vmatpush.msra.mxu2 %v3105_v28 }
 0xbfb   :  { %1298 = vmatpush.msra.mxu2 %v3112_v29 }
 0xbfd   :  { %1299 = vmatpush.msra.mxu2 %v3119_v30 }
 0xbff   :  { %1300 = vmatpush.msra.mxu2 %v3126_v32 }
 0xc01   :  { %1301 = vmatpush.msra.mxu2 %v3133_v33 }
 0xc03   :  { %1302 = vmatpush.msra.mxu2 %v3140_v34 }
 0xc05   :  { %1303 = vmatpush.msra.mxu2 %v3147_v36 }
 0xc07   :  { %1304 = vmatpush.msra.mxu2 %v3154_v41 }
 0xc09   :  { %1305 = vmatpush.msra.mxu2 %v3161_v47 }
 0xc0b   :  { %1306 = vmatpush.msra.mxu2 %v3168_v48 }
 0xc0d   :  { %1307 = vmatpush.msra.mxu2 %v3175_v49 }
 0xc0f   :  { %1308 = vmatpush.msra.mxu2 %v3184_v54 }
 0xc11   :  { %1309 = vmatpush.msra.mxu2 %v3191_v55 }
 0xc13   :  { %1310 = vmatpush.msra.mxu2 %v3196_v56 }
 0xc77   :  { %v604_v16 = vpop.f32.mrf.mxu2 }
 0xc78   :  { %v629_v37 = vadd.f32 %v628_v35, %v604_v16 }
 0xc7a   :  { %2620 = vtanh.f32 %v629_v37 }
 0xc80   :  { %v2621_v38 = vpop.eup %2620 }
 0xc81   :  { %2522 = vmatmul.msk.f32.vlgmr.msra.gmra.mxu1 %vm88_vm0, %v2621_v38 }
 0xc82   :  { %950 = vmatpush.msra.mxu1 %v3044_v7 }
 0xc84   :  { %951 = vmatpush.msra.mxu1 %v3049_v8 }
 0xc86   :  { %952 = vmatpush.msra.mxu1 %v3056_v9 }
 0xc88   :  { %953 = vmatpush.msra.mxu1 %v3063_v10 }
 0xcfe   :  { %v652_v18 = vpop.f32.mrf.mxu1 }
 0xcff   :  { %v3282_v31 = vadd.f32 %v3077_v15, %v652_v18 }
 0xd01   :  { %v655_v40 = vsel %vm349_vm15, %v3282_v31, -inf }
 0xd02   :  { %656 = vmax.xlane.f32.xlu0 %v655_v40 }
 0xd75   :  { %v3286_v21 = vpop.xlane.xlu0 %656 }
 0xd76   :  { %vm669_vm4 = vcmp.ge.f32.partialorder %v3282_v31, %v3286_v21 }
 0xd77   :  { %v670_v22 = vsel %vm669_vm4, %v2962_v44, 128 }
 0xd78   :  { %v671_v23 = vsel %vm349_vm15, %v670_v22, 2147483647 }
 0xd79   :  { %v673_v25 = vshra.s32 %v671_v23, 16  ;;  %v672_v43 = vand.u32 65535, %v671_v23  ;;  %v3341_v23 = vld [vmem:[%s3944_s7] ss:$0 sm:$0xff] }
 0xd7b   :  { %v675_v42 = vcvt.s32.f32 %v673_v25  ;;  %v674_v46 = vcvt.s32.f32 %v672_v43 }
 0xd7d   :  { %676 = vmin.xlane.f32.xlu1 %v675_v42 }
 0xdf0   :  { %v677_v45 = vpop.xlane.xlu1 %676 }
 0xdf1   :  { %vm678_vm7 = vcmp.eq.f32.partialorder %v675_v42, %v677_v45  ;;  %v683_v52 = vcvt.f32.s32 %v677_v45 }
 0xdf2   :  { %v679_v50 = vsel %vm678_vm7, %v674_v46, inf }
 0xdf3   :  { %680 = vmin.xlane.f32.xlu2 %v679_v50  ;;  %v684_v57 = vshll.u32 %v683_v52, 16 }
 0xe66   :  { %v681_v53 = vpop.xlane.xlu2 %680 }
 0xe67   :  { %v682_v58 = vcvt.f32.s32 %v681_v53 }
 0xe69   :  { %v685_v59 = vadd.s32 %v684_v57, %v682_v58 }
 0xe6b   :  { %vm686_vm8 = vcmp.eq.s32.totalorder %v2962_v44, %v685_v59 }
 0xe6c   :  { %2525 = vmatmul.msk.f32.vlgmr.msrb.gmra.mxu2 %vm686_vm8, %v2821_v62 }
 0xe6d   :  { %1901 = vmatpush.msrb.mxu2 %v3093_v26 }
 0xe6f   :  { %1902 = vmatpush.msrb.mxu2 %v3098_v27 }
 0xe71   :  { %1903 = vmatpush.msrb.mxu2 %v3105_v28 }
 0xe73   :  { %1904 = vmatpush.msrb.mxu2 %v3112_v29 }
 0xe75   :  { %1905 = vmatpush.msrb.mxu2 %v3119_v30 }
 0xe77   :  { %1906 = vmatpush.msrb.mxu2 %v3126_v32 }
 0xe79   :  { %1907 = vmatpush.msrb.mxu2 %v3133_v33 }
 0xe7b   :  { %1908 = vmatpush.msrb.mxu2 %v3140_v34 }
 0xe7d   :  { %1909 = vmatpush.msrb.mxu2 %v3147_v36 }
 0xe7f   :  { %1910 = vmatpush.msrb.mxu2 %v3154_v41 }
 0xe81   :  { %1911 = vmatpush.msrb.mxu2 %v3161_v47 }
 0xe83   :  { %1912 = vmatpush.msrb.mxu2 %v3168_v48 }
 0xe85   :  { %1913 = vmatpush.msrb.mxu2 %v3175_v49 }
 0xe87   :  { %1914 = vmatpush.msrb.mxu2 %v3184_v54 }
 0xe89   :  { %1915 = vmatpush.msrb.mxu2 %v3191_v55 }
 0xe8b   :  { %1916 = vmatpush.msrb.mxu2 %v3196_v56 }
 0xeef   :  { %v706_v60 = vpop.f32.mrf.mxu2 }
 0xef0   :  { %v712_v4 = vmul.f32 %v706_v60, %v3220_v2 }
 0xef2   :  { %v713_v19 = vadd.f32 %v712_v4, %v711_v0 }
 0xef4   :  { %2527 = vmatmul.msk.f32.vlgmr.msrb.gmra.mxu3 %vm88_vm0, %v713_v19  ;;  %v3354_v19 = vld [vmem:[%s3939_s2 + $0x8] sm:$0xff] }
 0xef5   :  { %992 = vmatpush.msrb.mxu3 %v3093_v26 }
 0xef7   :  { %993 = vmatpush.msrb.mxu3 %v3098_v27 }
 0xef9   :  { %994 = vmatpush.msrb.mxu3 %v3105_v28 }
 0xefb   :  { %995 = vmatpush.msrb.mxu3 %v3112_v29 }
 0xefd   :  { %996 = vmatpush.msrb.mxu3 %v3119_v30 }
 0xeff   :  { %997 = vmatpush.msrb.mxu3 %v3126_v32 }
 0xf01   :  { %998 = vmatpush.msrb.mxu3 %v3133_v33 }
 0xf03   :  { %999 = vmatpush.msrb.mxu3 %v3140_v34 }
 0xf05   :  { %1000 = vmatpush.msrb.mxu3 %v3147_v36 }
 0xf07   :  { %1001 = vmatpush.msrb.mxu3 %v3154_v41 }
 0xf09   :  { %1002 = vmatpush.msrb.mxu3 %v3161_v47 }
 0xf0b   :  { %1003 = vmatpush.msrb.mxu3 %v3168_v48 }
 0xf0d   :  { %1004 = vmatpush.msrb.mxu3 %v3175_v49 }
 0xf0f   :  { %1005 = vmatpush.msrb.mxu3 %v3184_v54 }
 0xf11   :  { %1006 = vmatpush.msrb.mxu3 %v3191_v55 }
 0xf13   :  { %1007 = vmatpush.msrb.mxu3 %v3196_v56 }
 0xf77   :  { %v734_v63 = vpop.f32.mrf.mxu3 }
 0xf78   :  { %v737_v6 = vadd.f32 %v3335_v3, %v734_v63  ;;  %v757_v42 = vadd.f32 %v734_v63, %v2938_v24 }
 0xf7a   :  { %v2528_v51 = vmul.f32 -1.442695, %v737_v6 }
 0xf7c   :  { %2622 = vpow2.f32 %v2528_v51 }
 0xf82   :  { %v2623_v5 = vpop.eup %2622 }
 0xf83   :  { %v741_v11 = vadd.f32 1.0, %v2623_v5 }
 0xf85   :  { %2624 = vrcp.f32 %v741_v11  ;;  %v753_v35 = vand.u32 2147483648, %v741_v11  ;;  %v751_v37 = vand.u32 2147483647, %v741_v11  ;;  %vm747_vm10 = vweird.f32 %v741_v11 }
 0xf87   :  { %v754_v18 = vor.u32 1.1754944e-38, %v753_v35  ;;  %vm752_vm12 = vcmp.eq.f32.partialorder %v751_v37, 8.507059e+37 }
 0xf8b   :  { %v2625_v12 = vpop.eup %2624 }
 0xf8c   :  { %v743_v13 = vmul.f32 %v2625_v12, %v741_v11  ;;  %vm748_vm9 = vweird.f32 %v2625_v12 }
 0xf8d   :  { %vm749_vm11 = vmor %vm747_vm10, %vm748_vm9 }
 0xf8e   :  { %v744_v14 = vsub.f32 1.0, %v743_v13 }
 0xf90   :  { %v745_v16 = vmul.f32 %v2625_v12, %v744_v14 }
 0xf92   :  { %v746_v38 = vadd.f32 %v2625_v12, %v745_v16 }
 0xf94   :  { %v750_v40 = vsel %vm749_vm11, %v2625_v12, %v746_v38 }
 0xf95   :  { %v755_v22 = vsel %vm752_vm12, %v754_v18, %v750_v40 }
 0xf96   :  { %v758_v25 = vmul.f32 %v3341_v23, %v755_v22  ;;  %v765_v50 = vsub.f32 1.0, %v755_v22 }
 0xf98   :  { %760 = vrot.lane.b32.xlu0 %v758_v25, %s2818_s18 }
0x100a   :  { %v761_v43 = vpop.permute.xlu0 %760 }
0x100b   :  { %v763_v45 = vadd.f32 %v761_v43, %v757_v42 }
0x100d   :  { %2626 = vtanh.f32 %v763_v45 }
0x1013   :  { %v2627_v46 = vpop.eup %2626 }
0x1014   :  { %767 = vrot.lane.b32.xlu1 %v2627_v46, %s2819_s24 }
0x1086   :  { %v768_v52 = vpop.permute.xlu1 %767 }
0x1087   :  { %v770_v53 = vmul.f32 %v768_v52, %v765_v50 }
0x1089   :  { %v773_v57 = vperm.slane %v770_v53, 0  ;;  %v772_v58 = vrot.slane %v770_v53, 1 }
0x108b   :  { %775 = vrot.lane.b32.xlu2 %v773_v57, %s2819_s24  ;;  %v774_v59 = vperm.slane %v772_v58, 0 }
0x108d   :  { %777 = vrot.lane.b32.xlu0 %v774_v59, %s2819_s24 }
0x10e5   :  { %v776_v61 = vpop.permute.xlu2 %775 }
0x10e6   :  { %v781_v0 = vmul.f32 %v776_v61, %v2958_v39 }
0x10e8   :  { %v783_v60 = vsel %vm88_vm0, %v781_v0, 0.0 }
0x10e9   :  { %784 = vadd.xlane.f32.xlu0 %v783_v60 }
0x10ff   :  { %v778_v4 = vpop.permute.xlu0 %777 }
0x1100   :  { %v782_v63 = vmul.f32 %v3354_v19, %v778_v4 }
0x1102   :  { %v786_v6 = vsel %vm88_vm0, %v782_v63, 0.0 }
0x1103   :  { %787 = vadd.xlane.f32.xlu1 %v786_v6 }
0x115c   :  { %v785_v51 = vpop.xlane.xlu0 %784 }
0x115d   :  { %v791_v11 = vperm.slane %v785_v51, %v2962_v44 }
0x1176   :  { %v788_v5 = vpop.xlane.xlu1 %787 }
0x1177   :  { %v792_v39 = vperm.slane %v788_v5, %v2962_v44 }
0x1179   :  { %v793_v12 = vsel %vm179_vm5, %v792_v39, %v791_v11 }
0x117a   :  { %v795_v13 = vsel %vm182_vm6, %v793_v12, -inf }
0x117b   :  { %796 = vmax.xlane.f32.xlu2 %v795_v13 }
0x11ee   :  { %v797_v14 = vpop.xlane.xlu2 %796 }
0x11ef   :  { %v799_v35 = vperm.slane %v797_v14, 0  ;;  %v800_v16 = vperm.slane %v797_v14, 1 }
0x11f1   :  { %v803_v37 = vsub.f32 %v785_v51, %v799_v35  ;;  %v804_v38 = vsub.f32 %v788_v5, %v800_v16 }
0x11f3   :  { %v805_v18 = vmul.f32 1.442695, %v803_v37  ;;  %v807_v40 = vmul.f32 1.442695, %v804_v38 }
0x11f5   :  { %2628 = vpow2.f32 %v805_v18 }
0x11f6   :  { %2630 = vpow2.f32 %v807_v40 }
0x11fb   :  { %v3362_v22 = vpop.eup %2628 }
0x11fc   :  { %v3364_v25 = vpop.eup %2630  ;;  %812 = vperm.xlu2 %2583, %v3362_v22  }
0x11fd   :  { %815 = vperm.xlu0 %2584, %v3364_v25  }
0x1204   :  { %910 = vrot.lane.b32.xlu2 %v770_v53, %s2819_s24 }
0x1256   :  { %v813_v42 = vpop.permute.xlu2 %812 }
0x1257   :  { %v817_v46 = vperm.slane %v813_v42, %v2962_v44 }
0x125e   :  { %v911_v43 = vpop.permute.xlu2 %910 }
0x125f   :  { %2530 = vmatmul.msk.f32.vlgmr.msra.gmra.mxu3 %vm88_vm0, %v911_v43 }
0x1260   :  { %1598 = vmatpush.msra.mxu3 %v3093_v26 }
0x1262   :  { %1599 = vmatpush.msra.mxu3 %v3098_v27 }
0x1264   :  { %1600 = vmatpush.msra.mxu3 %v3105_v28 }
0x1266   :  { %1601 = vmatpush.msra.mxu3 %v3112_v29 }
0x1268   :  { %1602 = vmatpush.msra.mxu3 %v3119_v30 }
0x126a   :  { %1603 = vmatpush.msra.mxu3 %v3126_v32 }
0x126c   :  { %1604 = vmatpush.msra.mxu3 %v3133_v33 }
0x126e   :  { %1605 = vmatpush.msra.mxu3 %v3140_v34 }
0x126f   :  { %v816_v45 = vpop.permute.xlu0 %815 }
0x1270   :  { %v818_v50 = vperm.slane %v816_v45, %v2962_v44  ;;  %1606 = vmatpush.msra.mxu3 %v3147_v36 }
0x1272   :  { %v819_v52 = vsel %vm179_vm5, %v818_v50, %v817_v46  ;;  %1607 = vmatpush.msra.mxu3 %v3154_v41 }
0x1273   :  { %v821_v53 = vsel %vm182_vm6, %v819_v52, 0.0  ;;  %v3395_v52 = vld [vmem:[%s3939_s2] sm:$0xff] }
0x1274   :  { %822 = vadd.xlane.f32.xlu1 %v821_v53  ;;  %1608 = vmatpush.msra.mxu3 %v3161_v47 }
0x1276   :  { %1609 = vmatpush.msra.mxu3 %v3168_v48 }
0x1278   :  { %1610 = vmatpush.msra.mxu3 %v3175_v49 }
0x127a   :  { %1611 = vmatpush.msra.mxu3 %v3184_v54 }
0x127c   :  { %1612 = vmatpush.msra.mxu3 %v3191_v55 }
0x127e   :  { %1613 = vmatpush.msra.mxu3 %v3196_v56 }
0x12e7   :  { %v823_v57 = vpop.xlane.xlu1 %822 }
0x12e8   :  { %v825_v58 = vperm.slane %v823_v57, 0  ;;  %v826_v59 = vperm.slane %v823_v57, 1 }
0x12ea   :  { %2632 = vrcp.f32 %v825_v58  ;;  %v840_v51 = vand.u32 2147483648, %v825_v58  ;;  %v855_v5 = vand.u32 2147483648, %v826_v59  ;;  %v838_v39 = vand.u32 2147483647, %v825_v58 }
0x12eb   :  { %2634 = vrcp.f32 %v826_v59  ;;  %v853_v13 = vand.u32 2147483647, %v826_v59  ;;  %vm834_vm1 = vweird.f32 %v825_v58  ;;  %vm849_vm2 = vweird.f32 %v826_v59 }
0x12ec   :  { %v841_v16 = vor.u32 1.1754944e-38, %v840_v51  ;;  %v856_v37 = vor.u32 1.1754944e-38, %v855_v5  ;;  %vm839_vm7 = vcmp.eq.f32.partialorder %v838_v39, 8.507059e+37 }
0x12ed   :  { %vm854_vm8 = vcmp.eq.f32.partialorder %v853_v13, 8.507059e+37  ;;  %v3406_v13 = vld [vmem:[%s3946_s9 + $0x18] sm:$0xff] }
0x12f0   :  { %v2633_v61 = vpop.eup %2632 }
0x12f1   :  { %v2635_v0 = vpop.eup %2634  ;;  %v830_v60 = vmul.f32 %v2633_v61, %v825_v58  ;;  %vm835_vm13 = vweird.f32 %v2633_v61 }
0x12f2   :  { %v845_v4 = vmul.f32 %v2635_v0, %v826_v59  ;;  %vm850_vm14 = vweird.f32 %v2635_v0  ;;  %vm836_vm3 = vmor %vm834_vm1, %vm835_vm13 }
0x12f3   :  { %v831_v63 = vsub.f32 1.0, %v830_v60  ;;  %vm851_vm4 = vmor %vm849_vm2, %vm850_vm14 }
0x12f4   :  { %v846_v6 = vsub.f32 1.0, %v845_v4 }
0x12f5   :  { %v832_v11 = vmul.f32 %v2633_v61, %v831_v63 }
0x12f6   :  { %v847_v12 = vmul.f32 %v2635_v0, %v846_v6 }
0x12f7   :  { %v833_v14 = vadd.f32 %v2633_v61, %v832_v11 }
0x12f8   :  { %v848_v35 = vadd.f32 %v2635_v0, %v847_v12 }
0x12f9   :  { %v837_v38 = vsel %vm836_vm3, %v2633_v61, %v833_v14  ;;  %v3412_v14 = vld [vmem:[%s3946_s9 + $0x10] sm:$0xff] }
0x12fa   :  { %v852_v18 = vsel %vm851_vm4, %v2635_v0, %v848_v35  ;;  %v842_v40 = vsel %vm839_vm7, %v841_v16, %v837_v38  ;;  %v3418_v35 = vld [vmem:[%s3946_s9 + $0x8] sm:$0xff]  ;;  %v3424_v16 = vld [vmem:[%s3946_s9] sm:$0xff] }
0x12fb   :  { %v857_v42 = vsel %vm854_vm8, %v856_v37, %v852_v18  ;;  %v843_v43 = vmul.f32 %v3362_v22, %v842_v40  ;;  %v931_v37 = vpop.f32.mrf.mxu3 }
0x12fc   :  { %v858_v45 = vmul.f32 %v3364_v25, %v857_v42 }
0x12fd   :  { %861 = vperm.xlu1 %2585, %v843_v43  }
0x12fe   :  { %866 = vperm.xlu0 %2584, %v858_v45  }
0x136f   :  { %v862_v46 = vpop.permute.xlu1 %861 }
0x1370   :  { %v867_v50 = vpop.permute.xlu0 %866  ;;  %v869_v53 = vmul.f32 %v3395_v52, %v862_v46 }
0x1371   :  { %v870_v57 = vmul.f32 %v3354_v19, %v867_v50 }
0x1372   :  { %v871_v58 = vsel %vm88_vm0, %v869_v53, 0.0 }
0x1373   :  { %v878_v59 = vsel %vm88_vm0, %v870_v57, 0.0  ;;  %v872_v22 = vrot.slane %v871_v58, 4 }
0x1374   :  { %v879_v61 = vrot.slane %v878_v59, 4 }
0x1375   :  { %v873_v25 = vadd.f32 %v872_v22, %v871_v58 }
0x1376   :  { %v880_v0 = vadd.f32 %v879_v61, %v878_v59 }
0x1377   :  { %v874_v60 = vrot.slane %v873_v25, 2 }
0x1378   :  { %v881_v4 = vrot.slane %v880_v0, 2 }
0x1379   :  { %v875_v63 = vadd.f32 %v874_v60, %v873_v25 }
0x137a   :  { %v882_v6 = vadd.f32 %v881_v4, %v880_v0 }
0x137b   :  { %v876_v51 = vrot.slane %v875_v63, 1 }
0x137c   :  { %v883_v5 = vrot.slane %v882_v6, 1 }
0x137d   :  { %v877_v11 = vadd.f32 %v876_v51, %v875_v63 }
0x137e   :  { %v884_v39 = vadd.f32 %v883_v5, %v882_v6 }
0x1380   :  { %v887_v12 = vsel %vm179_vm5, %v884_v39, %v877_v11 }
0x1381   :  { %2529 = vmatmul.msk.f32.vlgmr.msrb.gmra.mxu1 %vm88_vm0, %v887_v12 }
0x1382   :  { %1205 = vmatpush.msrb.mxu1 %v3406_v13 }
0x1384   :  { %1206 = vmatpush.msrb.mxu1 %v3412_v14 }
0x1386   :  { %1207 = vmatpush.msrb.mxu1 %v3418_v35 }
0x1388   :  { %1208 = vmatpush.msrb.mxu1 %v3424_v16 }
0x13fe   :  { %v907_v38 = vpop.f32.mrf.mxu1 }
0x13ff   :  { %v932_v18 = vadd.f32 %v931_v37, %v907_v38 }
0x1401   :  { %2636 = vtanh.f32 %v932_v18 }
0x1407   :  { %v2637_v40 = vpop.eup %2636 }
0x1408   :  { %2531 = vmatmul.msk.f32.vlgmr.msra.gmra.mxu1 %vm88_vm0, %v2637_v40 }
0x1409   :  { %1253 = vmatpush.msra.mxu1 %v3044_v7 }
0x140b   :  { %1254 = vmatpush.msra.mxu1 %v3049_v8 }
0x140d   :  { %1255 = vmatpush.msra.mxu1 %v3056_v9 }
0x140f   :  { %1256 = vmatpush.msra.mxu1 %v3063_v10 }
0x1485   :  { %v955_v42 = vpop.f32.mrf.mxu1 }
0x1486   :  { %v3433_v43 = vadd.f32 %v3077_v15, %v955_v42 }
0x1488   :  { %v958_v45 = vsel %vm349_vm15, %v3433_v43, -inf }
0x1489   :  { %959 = vmax.xlane.f32.xlu0 %v958_v45 }
0x14fc   :  { %v3437_v46 = vpop.xlane.xlu0 %959 }
0x14fd   :  { %vm972_vm9 = vcmp.ge.f32.partialorder %v3433_v43, %v3437_v46 }
0x14fe   :  { %v973_v7 = vsel %vm972_vm9, %v2962_v44, 128 }
0x14ff   :  { %v974_v8 = vsel %vm349_vm15, %v973_v7, 2147483647 }
0x1500   :  { %v976_v9 = vshra.s32 %v974_v8, 16  ;;  %v975_v10 = vand.u32 65535, %v974_v8 }
0x1502   :  { %v978_v50 = vcvt.s32.f32 %v976_v9  ;;  %v977_v15 = vcvt.s32.f32 %v975_v10 }
0x1504   :  { %979 = vmin.xlane.f32.xlu2 %v978_v50 }
0x1577   :  { %v980_v53 = vpop.xlane.xlu2 %979 }
0x1578   :  { %vm981_vm10 = vcmp.eq.f32.partialorder %v978_v50, %v980_v53  ;;  %v986_v58 = vcvt.f32.s32 %v980_v53 }
0x1579   :  { %v982_v57 = vsel %vm981_vm10, %v977_v15, inf }
0x157a   :  { %983 = vmin.xlane.f32.xlu1 %v982_v57  ;;  %v987_v22 = vshll.u32 %v986_v58, 16 }
0x15ed   :  { %v984_v59 = vpop.xlane.xlu1 %983 }
0x15ee   :  { %v985_v61 = vcvt.f32.s32 %v984_v59 }
0x15f0   :  { %v988_v25 = vadd.s32 %v987_v22, %v985_v61 }
0x15f2   :  { %vm989_vm11 = vcmp.eq.s32.totalorder %v2962_v44, %v988_v25 }
0x15f3   :  { %2534 = vmatmul.msk.f32.vlgmr.msrb.gmra.mxu3 %vm989_vm11, %v2821_v62 }
0x15f4   :  { %2204 = vmatpush.msrb.mxu3 %v3093_v26  ;;  %v2535_v26 = vld [vmem:[%s3938_s1 + $0x6] sm:$0x3] }
0x15f6   :  { %2205 = vmatpush.msrb.mxu3 %v3098_v27  ;;  %v1014_v27 = vmul.f32 %v2535_v26, %v3218_v1 }
0x15f8   :  { %2206 = vmatpush.msrb.mxu3 %v3105_v28 }
0x15fa   :  { %2207 = vmatpush.msrb.mxu3 %v3112_v29 }
0x15fc   :  { %2208 = vmatpush.msrb.mxu3 %v3119_v30 }
0x15fe   :  { %2209 = vmatpush.msrb.mxu3 %v3126_v32  ;;  %v3470_v32 = vld [vmem:[%s3941_s4 + $0x18] sm:$0xff] }
0x1600   :  { %2210 = vmatpush.msrb.mxu3 %v3133_v33  ;;  %v3476_v33 = vld [vmem:[%s3941_s4 + $0x10] sm:$0xff] }
0x1602   :  { %2211 = vmatpush.msrb.mxu3 %v3140_v34  ;;  %v3482_v34 = vld [vmem:[%s3941_s4 + $0x8] sm:$0xff] }
0x1604   :  { %2212 = vmatpush.msrb.mxu3 %v3147_v36  ;;  %v3488_v36 = vld [vmem:[%s3941_s4] sm:$0xff] }
0x1606   :  { %2213 = vmatpush.msrb.mxu3 %v3154_v41 }
0x1608   :  { %2214 = vmatpush.msrb.mxu3 %v3161_v47 }
0x160a   :  { %2215 = vmatpush.msrb.mxu3 %v3168_v48 }
0x160c   :  { %2216 = vmatpush.msrb.mxu3 %v3175_v49 }
0x160e   :  { %2217 = vmatpush.msrb.mxu3 %v3184_v54 }
0x1610   :  { %2218 = vmatpush.msrb.mxu3 %v3191_v55 }
0x1612   :  { %2219 = vmatpush.msrb.mxu3 %v3196_v56 }
0x1676   :  { %v1009_v28 = vpop.f32.mrf.mxu3 }
0x1677   :  { %v1015_v29 = vmul.f32 %v1009_v28, %v3220_v2 }
0x1679   :  { %v1016_v30 = vadd.f32 %v1015_v29, %v1014_v27 }
0x167b   :  { %2536 = vmatmul.msk.f32.vlgmr.msra.gmra.mxu0 %vm88_vm0, %v1016_v30 }
0x167c   :  { %1335 = vmatpush.msra.mxu0 %v3470_v32 }
0x167e   :  { %1336 = vmatpush.msra.mxu0 %v3476_v33 }
0x1680   :  { %1337 = vmatpush.msra.mxu0 %v3482_v34 }
0x1682   :  { %1338 = vmatpush.msra.mxu0 %v3488_v36 }
0x16f8   :  { %v1037_v41 = vpop.f32.mrf.mxu0 }
0x16f9   :  { %v1040_v47 = vadd.f32 %v3335_v3, %v1037_v41  ;;  %v1060_v12 = vadd.f32 %v1037_v41, %v2938_v24 }
0x16fb   :  { %v2537_v48 = vmul.f32 -1.442695, %v1040_v47 }
0x16fd   :  { %2638 = vpow2.f32 %v2537_v48 }
0x1703   :  { %v2639_v49 = vpop.eup %2638 }
0x1704   :  { %v1044_v54 = vadd.f32 1.0, %v2639_v49 }
0x1706   :  { %2640 = vrcp.f32 %v1044_v54  ;;  %v1056_v60 = vand.u32 2147483648, %v1044_v54  ;;  %v1054_v63 = vand.u32 2147483647, %v1044_v54  ;;  %vm1050_vm13 = vweird.f32 %v1044_v54 }
0x1708   :  { %v1057_v51 = vor.u32 1.1754944e-38, %v1056_v60  ;;  %vm1055_vm1 = vcmp.eq.f32.partialorder %v1054_v63, 8.507059e+37  ;;  %v3511_v60 = vld [vmem:[%s3945_s8 + $0x18] sm:$0xff]  ;;  %v3523_v63 = vld [vmem:[%s3945_s8 + $0x8] sm:$0xff] }
0x170c   :  { %v2641_v55 = vpop.eup %2640 }
0x170d   :  { %v1046_v56 = vmul.f32 %v2641_v55, %v1044_v54  ;;  %vm1051_vm12 = vweird.f32 %v2641_v55 }
0x170e   :  { %vm1052_vm14 = vmor %vm1050_vm13, %vm1051_vm12 }
0x170f   :  { %v1047_v0 = vsub.f32 1.0, %v1046_v56 }
0x1711   :  { %v1048_v4 = vmul.f32 %v2641_v55, %v1047_v0 }
0x1713   :  { %v1049_v6 = vadd.f32 %v2641_v55, %v1048_v4  ;;  %v3517_v4 = vld [vmem:[%s3945_s8 + $0x10] sm:$0xff] }
0x1715   :  { %v1053_v5 = vsel %vm1052_vm14, %v2641_v55, %v1049_v6  ;;  %v3529_v6 = vld [vmem:[%s3945_s8] sm:$0xff] }
0x1716   :  { %v1058_v11 = vsel %vm1055_vm1, %v1057_v51, %v1053_v5 }
0x1717   :  { %v1061_v39 = vmul.f32 %v3341_v23, %v1058_v11  ;;  %v1068_v40 = vsub.f32 1.0, %v1058_v11 }
0x1719   :  { %1063 = vrot.lane.b32.xlu0 %v1061_v39, %s2818_s18 }
0x178b   :  { %v1064_v37 = vpop.permute.xlu0 %1063 }
0x178c   :  { %v1066_v38 = vadd.f32 %v1064_v37, %v1060_v12 }
0x178e   :  { %2642 = vtanh.f32 %v1066_v38 }
0x1794   :  { %v2643_v18 = vpop.eup %2642 }
0x1795   :  { %1070 = vrot.lane.b32.xlu2 %v2643_v18, %s2819_s24 }
0x17ef   :  { %v1071_v42 = vpop.permute.xlu2 %1070 }
0x17f0   :  { %v1073_v45 = vmul.f32 %v1071_v42, %v1068_v40 }
0x17f2   :  { %v1076_v7 = vperm.slane %v1073_v45, 0  ;;  %v1075_v8 = vrot.slane %v1073_v45, 1 }
0x17f4   :  { %1078 = vrot.lane.b32.xlu1 %v1076_v7, %s2819_s24  ;;  %v1077_v9 = vperm.slane %v1075_v8, 0 }
0x17f6   :  { %1080 = vrot.lane.b32.xlu0 %v1077_v9, %s2819_s24 }
0x1866   :  { %v1079_v50 = vpop.permute.xlu1 %1078 }
0x1867   :  { %v1084_v10 = vmul.f32 %v3395_v52, %v1079_v50 }
0x1868   :  { %v1081_v53 = vpop.permute.xlu0 %1080 }
0x1869   :  { %v1085_v15 = vmul.f32 %v3354_v19, %v1081_v53  ;;  %v1086_v57 = vsel %vm88_vm0, %v1084_v10, 0.0 }
0x186a   :  { %1087 = vadd.xlane.f32.xlu2 %v1086_v57 }
0x186b   :  { %v1089_v58 = vsel %vm88_vm0, %v1085_v15, 0.0 }
0x186c   :  { %1090 = vadd.xlane.f32.xlu0 %v1089_v58 }
0x18dd   :  { %v1088_v59 = vpop.xlane.xlu2 %1087 }
0x18de   :  { %v1094_v61 = vperm.slane %v1088_v59, %v2962_v44 }
0x18df   :  { %v1091_v22 = vpop.xlane.xlu0 %1090 }
0x18e0   :  { %v1095_v25 = vperm.slane %v1091_v22, %v2962_v44 }
0x18e2   :  { %v1096_v26 = vsel %vm179_vm5, %v1095_v25, %v1094_v61 }
0x18e3   :  { %v1098_v27 = vsel %vm182_vm6, %v1096_v26, -inf }
0x18e4   :  { %1099 = vmax.xlane.f32.xlu1 %v1098_v27 }
0x1957   :  { %v1100_v28 = vpop.xlane.xlu1 %1099 }
0x1958   :  { %v1102_v29 = vperm.slane %v1100_v28, 0  ;;  %v1103_v30 = vperm.slane %v1100_v28, 1 }
0x195a   :  { %v1106_v41 = vsub.f32 %v1088_v59, %v1102_v29  ;;  %v1107_v47 = vsub.f32 %v1091_v22, %v1103_v30 }
0x195c   :  { %v1108_v48 = vmul.f32 1.442695, %v1106_v41  ;;  %v1110_v49 = vmul.f32 1.442695, %v1107_v47 }
0x195e   :  { %2644 = vpow2.f32 %v1108_v48 }
0x195f   :  { %2646 = vpow2.f32 %v1110_v49 }
0x1964   :  { %v2645_v54 = vpop.eup %2644 }
0x1965   :  { %v2647_v55 = vpop.eup %2646  ;;  %1115 = vperm.xlu2 %2583, %v2645_v54  }
0x1966   :  { %1118 = vperm.xlu0 %2584, %v2647_v55  }
0x196d   :  { %1213 = vrot.lane.b32.xlu2 %v1073_v45, %s2819_s24 }
0x19bf   :  { %v1116_v56 = vpop.permute.xlu2 %1115 }
0x19c0   :  { %v1120_v5 = vperm.slane %v1116_v56, %v2962_v44 }
0x19c7   :  { %v1214_v0 = vpop.permute.xlu2 %1213 }
0x19c8   :  { %2539 = vmatmul.msk.f32.vlgmr.msrb.gmra.mxu0 %vm88_vm0, %v1214_v0 }
0x19c9   :  { %1532 = vmatpush.msrb.mxu0 %v3511_v60 }
0x19cb   :  { %1533 = vmatpush.msrb.mxu0 %v3517_v4 }
0x19cd   :  { %1534 = vmatpush.msrb.mxu0 %v3523_v63 }
0x19cf   :  { %1535 = vmatpush.msrb.mxu0 %v3529_v6 }
0x19d8   :  { %v1119_v51 = vpop.permute.xlu0 %1118 }
0x19d9   :  { %v1121_v11 = vperm.slane %v1119_v51, %v2962_v44 }
0x19db   :  { %v1122_v39 = vsel %vm179_vm5, %v1121_v11, %v1120_v5 }
0x19dc   :  { %v1124_v12 = vsel %vm182_vm6, %v1122_v39, 0.0 }
0x19dd   :  { %1125 = vadd.xlane.f32.xlu1 %v1124_v12 }
0x1a50   :  { %v1126_v37 = vpop.xlane.xlu1 %1125 }
0x1a51   :  { %v1128_v38 = vperm.slane %v1126_v37, 0  ;;  %v1129_v18 = vperm.slane %v1126_v37, 1 }
0x1a53   :  { %2648 = vrcp.f32 %v1128_v38  ;;  %v1143_v50 = vand.u32 2147483648, %v1128_v38  ;;  %v1158_v10 = vand.u32 2147483648, %v1129_v18  ;;  %v1141_v15 = vand.u32 2147483647, %v1128_v38 }
0x1a54   :  { %2650 = vrcp.f32 %v1129_v18  ;;  %v1156_v58 = vand.u32 2147483647, %v1129_v18  ;;  %vm1137_vm4 = vweird.f32 %v1128_v38  ;;  %vm1152_vm7 = vweird.f32 %v1129_v18 }
0x1a55   :  { %v1144_v61 = vor.u32 1.1754944e-38, %v1143_v50  ;;  %v1159_v25 = vor.u32 1.1754944e-38, %v1158_v10  ;;  %vm1142_vm10 = vcmp.eq.f32.partialorder %v1141_v15, 8.507059e+37  ;;  %v3556_v15 = vld [vmem:[%s3947_s10 + $0x10] sm:$0xff] }
0x1a56   :  { %vm1157_vm11 = vcmp.eq.f32.partialorder %v1156_v58, 8.507059e+37  ;;  %v3568_v58 = vld [vmem:[%s3947_s10] sm:$0xff] }
0x1a59   :  { %v2649_v40 = vpop.eup %2648 }
0x1a5a   :  { %v2651_v42 = vpop.eup %2650  ;;  %v1133_v45 = vmul.f32 %v2649_v40, %v1128_v38  ;;  %vm1138_vm2 = vweird.f32 %v2649_v40 }
0x1a5b   :  { %v1148_v7 = vmul.f32 %v2651_v42, %v1129_v18  ;;  %vm1153_vm3 = vweird.f32 %v2651_v42  ;;  %vm1139_vm8 = vmor %vm1137_vm4, %vm1138_vm2 }
0x1a5c   :  { %v1134_v8 = vsub.f32 1.0, %v1133_v45  ;;  %vm1154_vm9 = vmor %vm1152_vm7, %vm1153_vm3 }
0x1a5d   :  { %v1149_v9 = vsub.f32 1.0, %v1148_v7 }
0x1a5e   :  { %v1135_v53 = vmul.f32 %v2649_v40, %v1134_v8  ;;  %v1234_v8 = vpop.f32.mrf.mxu0 }
0x1a5f   :  { %v1150_v57 = vmul.f32 %v2651_v42, %v1149_v9 }
0x1a60   :  { %v1136_v59 = vadd.f32 %v2649_v40, %v1135_v53  ;;  %v3550_v53 = vld [vmem:[%s3947_s10 + $0x18] sm:$0xff] }
0x1a61   :  { %v1151_v22 = vadd.f32 %v2651_v42, %v1150_v57  ;;  %v3562_v57 = vld [vmem:[%s3947_s10 + $0x8] sm:$0xff] }
0x1a62   :  { %v1140_v26 = vsel %vm1139_vm8, %v2649_v40, %v1136_v59 }
0x1a63   :  { %v1155_v27 = vsel %vm1154_vm9, %v2651_v42, %v1151_v22  ;;  %v1145_v28 = vsel %vm1142_vm10, %v1144_v61, %v1140_v26  ;;  %v3574_v22 = vld [vmem:[%s3948_s11] ss:$0 sm:$0xff] }
0x1a64   :  { %v1160_v29 = vsel %vm1157_vm11, %v1159_v25, %v1155_v27  ;;  %v1146_v30 = vmul.f32 %v2645_v54, %v1145_v28 }
0x1a65   :  { %v1161_v41 = vmul.f32 %v2647_v55, %v1160_v29 }
0x1a66   :  { %1164 = vperm.xlu1 %2585, %v1146_v30  }
0x1a67   :  { %1169 = vperm.xlu0 %2584, %v1161_v41  }
0x1ad8   :  { %v1165_v47 = vpop.permute.xlu1 %1164 }
0x1ad9   :  { %v1170_v48 = vpop.permute.xlu0 %1169  ;;  %v1172_v49 = vmul.f32 %v3395_v52, %v1165_v47 }
0x1ada   :  { %v1173_v56 = vmul.f32 %v3354_v19, %v1170_v48 }
0x1adb   :  { %v1174_v0 = vsel %vm88_vm0, %v1172_v49, 0.0 }
0x1adc   :  { %v1181_v51 = vsel %vm88_vm0, %v1173_v56, 0.0  ;;  %v1175_v5 = vrot.slane %v1174_v0, 4 }
0x1add   :  { %v1182_v11 = vrot.slane %v1181_v51, 4 }
0x1ade   :  { %v1176_v39 = vadd.f32 %v1175_v5, %v1174_v0 }
0x1adf   :  { %v1183_v12 = vadd.f32 %v1182_v11, %v1181_v51 }
0x1ae0   :  { %v1177_v37 = vrot.slane %v1176_v39, 2 }
0x1ae1   :  { %v1184_v38 = vrot.slane %v1183_v12, 2 }
0x1ae2   :  { %v1178_v54 = vadd.f32 %v1177_v37, %v1176_v39  ;;  %v2544_v39 = vld [vmem:[%s3938_s1 + $0x8] sm:$0x3] }
0x1ae3   :  { %v1185_v55 = vadd.f32 %v1184_v38, %v1183_v12  ;;  %v1317_v12 = vmul.f32 %v2544_v39, %v3218_v1 }
0x1ae4   :  { %v1179_v18 = vrot.slane %v1178_v54, 1 }
0x1ae5   :  { %v1186_v40 = vrot.slane %v1185_v55, 1 }
0x1ae6   :  { %v1180_v42 = vadd.f32 %v1179_v18, %v1178_v54 }
0x1ae7   :  { %v1187_v45 = vadd.f32 %v1186_v40, %v1185_v55 }
0x1ae9   :  { %v1190_v7 = vsel %vm179_vm5, %v1187_v45, %v1180_v42 }
0x1aea   :  { %2538 = vmatmul.msk.f32.vlgmr.msrb.gmra.mxu1 %vm88_vm0, %v1190_v7 }
0x1aeb   :  { %1508 = vmatpush.msrb.mxu1 %v3406_v13 }
0x1aed   :  { %1509 = vmatpush.msrb.mxu1 %v3412_v14 }
0x1aef   :  { %1510 = vmatpush.msrb.mxu1 %v3418_v35 }
0x1af1   :  { %1511 = vmatpush.msrb.mxu1 %v3424_v16 }
0x1b67   :  { %v1210_v9 = vpop.f32.mrf.mxu1 }
0x1b68   :  { %v1235_v50 = vadd.f32 %v1234_v8, %v1210_v9 }
0x1b6a   :  { %2652 = vtanh.f32 %v1235_v50 }
0x1b70   :  { %v2653_v10 = vpop.eup %2652 }
0x1b71   :  { %2540 = vmatmul.msk.f32.vlgmr.msra.gmra.mxu1 %vm88_vm0, %v2653_v10 }
0x1b72   :  { %1556 = vmatpush.msra.mxu1 %v3550_v53 }
0x1b74   :  { %1557 = vmatpush.msra.mxu1 %v3556_v15 }
0x1b76   :  { %1558 = vmatpush.msra.mxu1 %v3562_v57 }
0x1b78   :  { %1559 = vmatpush.msra.mxu1 %v3568_v58 }
0x1bee   :  { %v1258_v59 = vpop.f32.mrf.mxu1 }
0x1bef   :  { %v3577_v61 = vadd.f32 %v3574_v22, %v1258_v59 }
0x1bf1   :  { %v1261_v25 = vsel %vm349_vm15, %v3577_v61, -inf }
0x1bf2   :  { %1262 = vmax.xlane.f32.xlu0 %v1261_v25 }
0x1c65   :  { %v3581_v26 = vpop.xlane.xlu0 %1262 }
0x1c66   :  { %vm1275_vm12 = vcmp.ge.f32.partialorder %v3577_v61, %v3581_v26 }
0x1c67   :  { %v1276_v27 = vsel %vm1275_vm12, %v2962_v44, 128 }
0x1c68   :  { %v1277_v28 = vsel %vm349_vm15, %v1276_v27, 2147483647 }
0x1c69   :  { %v1279_v29 = vshra.s32 %v1277_v28, 16  ;;  %v1278_v41 = vand.u32 65535, %v1277_v28 }
0x1c6b   :  { %v1281_v30 = vcvt.s32.f32 %v1279_v29  ;;  %v1280_v48 = vcvt.s32.f32 %v1278_v41 }
0x1c6d   :  { %1282 = vmin.xlane.f32.xlu2 %v1281_v30 }
0x1ce0   :  { %v1283_v47 = vpop.xlane.xlu2 %1282 }
0x1ce1   :  { %vm1284_vm13 = vcmp.eq.f32.partialorder %v1281_v30, %v1283_v47  ;;  %v1289_v56 = vcvt.f32.s32 %v1283_v47 }
0x1ce2   :  { %v1285_v49 = vsel %vm1284_vm13, %v1280_v48, inf }
0x1ce3   :  { %1286 = vmin.xlane.f32.xlu1 %v1285_v49  ;;  %v1290_v51 = vshll.u32 %v1289_v56, 16 }
0x1d56   :  { %v1287_v0 = vpop.xlane.xlu1 %1286 }
0x1d57   :  { %v1288_v5 = vcvt.f32.s32 %v1287_v0 }
0x1d59   :  { %v1291_v11 = vadd.s32 %v1290_v51, %v1288_v5 }
0x1d5b   :  { %vm1292_vm14 = vcmp.eq.s32.totalorder %v2962_v44, %v1291_v11 }
0x1d5c   :  { %2543 = vmatmul.msk.f32.vlgmr.msra.gmra.mxu2 %vm1292_vm14, %v2821_v62 }
0x1ddf   :  { %v1312_v37 = vpop.f32.mrf.mxu2 }
0x1de0   :  { %v1318_v38 = vmul.f32 %v1312_v37, %v3220_v2 }
0x1de2   :  { %v1319_v54 = vadd.f32 %v1318_v38, %v1317_v12 }
0x1de4   :  { %2545 = vmatmul.msk.f32.vlgmr.msra.gmra.mxu0 %vm88_vm0, %v1319_v54 }
0x1de5   :  { %1638 = vmatpush.msra.mxu0 %v3470_v32 }
0x1de7   :  { %1639 = vmatpush.msra.mxu0 %v3476_v33 }
0x1de9   :  { %1640 = vmatpush.msra.mxu0 %v3482_v34 }
0x1deb   :  { %1641 = vmatpush.msra.mxu0 %v3488_v36 }
0x1e61   :  { %v1340_v55 = vpop.f32.mrf.mxu0 }
0x1e62   :  { %v1343_v18 = vadd.f32 %v3335_v3, %v1340_v55  ;;  %v1363_v30 = vadd.f32 %v1340_v55, %v2938_v24 }
0x1e64   :  { %v2546_v40 = vmul.f32 -1.442695, %v1343_v18 }
0x1e66   :  { %2654 = vpow2.f32 %v2546_v40 }
0x1e6c   :  { %v2655_v42 = vpop.eup %2654 }
0x1e6d   :  { %v1347_v45 = vadd.f32 1.0, %v2655_v42 }
0x1e6f   :  { %2656 = vrcp.f32 %v1347_v45  ;;  %v1359_v50 = vand.u32 2147483648, %v1347_v45  ;;  %v1357_v59 = vand.u32 2147483647, %v1347_v45  ;;  %vm1353_vm2 = vweird.f32 %v1347_v45 }
0x1e71   :  { %v1360_v27 = vor.u32 1.1754944e-38, %v1359_v50  ;;  %vm1358_vm4 = vcmp.eq.f32.partialorder %v1357_v59, 8.507059e+37 }
0x1e75   :  { %v2657_v7 = vpop.eup %2656 }
0x1e76   :  { %v1349_v8 = vmul.f32 %v2657_v7, %v1347_v45  ;;  %vm1354_vm1 = vweird.f32 %v2657_v7 }
0x1e77   :  { %vm1355_vm3 = vmor %vm1353_vm2, %vm1354_vm1 }
0x1e78   :  { %v1350_v9 = vsub.f32 1.0, %v1349_v8 }
0x1e7a   :  { %v1351_v10 = vmul.f32 %v2657_v7, %v1350_v9 }
0x1e7c   :  { %v1352_v25 = vadd.f32 %v2657_v7, %v1351_v10 }
0x1e7e   :  { %v1356_v28 = vsel %vm1355_vm3, %v2657_v7, %v1352_v25 }
0x1e7f   :  { %v1361_v29 = vsel %vm1358_vm4, %v1360_v27, %v1356_v28 }
0x1e80   :  { %v1364_v3 = vmul.f32 %v3341_v23, %v1361_v29  ;;  %v1371_v49 = vsub.f32 1.0, %v1361_v29 }
0x1e82   :  { %1366 = vrot.lane.b32.xlu0 %v1364_v3, %s2818_s18 }
0x1ef4   :  { %v1367_v41 = vpop.permute.xlu0 %1366 }
0x1ef5   :  { %v1369_v47 = vadd.f32 %v1367_v41, %v1363_v30 }
0x1ef7   :  { %2658 = vtanh.f32 %v1369_v47 }
0x1efd   :  { %v2659_v48 = vpop.eup %2658 }
0x1efe   :  { %1373 = vrot.lane.b32.xlu2 %v2659_v48, %s2819_s24 }
0x1f58   :  { %v1374_v56 = vpop.permute.xlu2 %1373 }
0x1f59   :  { %v1376_v0 = vmul.f32 %v1374_v56, %v1371_v49 }
0x1f5b   :  { %v1379_v51 = vperm.slane %v1376_v0, 0  ;;  %v1378_v5 = vrot.slane %v1376_v0, 1 }
0x1f5d   :  { %1381 = vrot.lane.b32.xlu1 %v1379_v51, %s2819_s24  ;;  %v1380_v11 = vperm.slane %v1378_v5, 0 }
0x1f5f   :  { %1383 = vrot.lane.b32.xlu0 %v1380_v11, %s2819_s24 }
0x1fcf   :  { %v1382_v23 = vpop.permute.xlu1 %1381 }
0x1fd0   :  { %v1387_v39 = vmul.f32 %v3395_v52, %v1382_v23 }
0x1fd1   :  { %v1384_v12 = vpop.permute.xlu0 %1383 }
0x1fd2   :  { %v1388_v37 = vmul.f32 %v3354_v19, %v1384_v12  ;;  %v1389_v38 = vsel %vm88_vm0, %v1387_v39, 0.0 }
0x1fd3   :  { %1390 = vadd.xlane.f32.xlu2 %v1389_v38 }
0x1fd4   :  { %v1392_v54 = vsel %vm88_vm0, %v1388_v37, 0.0 }
0x1fd5   :  { %1393 = vadd.xlane.f32.xlu0 %v1392_v54 }
0x2046   :  { %v1391_v55 = vpop.xlane.xlu2 %1390 }
0x2047   :  { %v1397_v40 = vperm.slane %v1391_v55, %v2962_v44 }
0x2048   :  { %v1394_v18 = vpop.xlane.xlu0 %1393 }
0x2049   :  { %v1398_v42 = vperm.slane %v1394_v18, %v2962_v44 }
0x204b   :  { %v1399_v45 = vsel %vm179_vm5, %v1398_v42, %v1397_v40 }
0x204c   :  { %v1401_v7 = vsel %vm182_vm6, %v1399_v45, -inf }
0x204d   :  { %1402 = vmax.xlane.f32.xlu1 %v1401_v7 }
0x20c0   :  { %v1403_v8 = vpop.xlane.xlu1 %1402 }
0x20c1   :  { %v1405_v9 = vperm.slane %v1403_v8, 0  ;;  %v1406_v50 = vperm.slane %v1403_v8, 1 }
0x20c3   :  { %v1409_v10 = vsub.f32 %v1391_v55, %v1405_v9  ;;  %v1410_v59 = vsub.f32 %v1394_v18, %v1406_v50 }
0x20c5   :  { %v1411_v25 = vmul.f32 1.442695, %v1409_v10  ;;  %v1413_v27 = vmul.f32 1.442695, %v1410_v59 }
0x20c7   :  { %2660 = vpow2.f32 %v1411_v25 }
0x20c8   :  { %2662 = vpow2.f32 %v1413_v27 }
0x20cd   :  { %v2661_v28 = vpop.eup %2660 }
0x20ce   :  { %v2663_v29 = vpop.eup %2662  ;;  %1418 = vperm.xlu2 %2583, %v2661_v28  }
0x20cf   :  { %1421 = vperm.xlu0 %2584, %v2663_v29  }
0x20d7   :  { %1516 = vrot.lane.b32.xlu0 %v1376_v0, %s2819_s24 }
0x2128   :  { %v1419_v3 = vpop.permute.xlu2 %1418 }
0x2129   :  { %v1423_v41 = vperm.slane %v1419_v3, %v2962_v44 }
0x2141   :  { %v1422_v30 = vpop.permute.xlu0 %1421 }
0x2142   :  { %v1424_v47 = vperm.slane %v1422_v30, %v2962_v44 }
0x2144   :  { %v1425_v48 = vsel %vm179_vm5, %v1424_v47, %v1423_v41 }
0x2145   :  { %v1427_v49 = vsel %vm182_vm6, %v1425_v48, 0.0 }
0x2146   :  { %1428 = vadd.xlane.f32.xlu1 %v1427_v49 }
0x2149   :  { %v1517_v56 = vpop.permute.xlu0 %1516 }
0x214a   :  { %2548 = vmatmul.msk.f32.vlgmr.msrb.gmra.mxu0 %vm88_vm0, %v1517_v56 }
0x214b   :  { %1835 = vmatpush.msrb.mxu0 %v3511_v60 }
0x214d   :  { %1836 = vmatpush.msrb.mxu0 %v3517_v4 }
0x214f   :  { %1837 = vmatpush.msrb.mxu0 %v3523_v63 }
0x2151   :  { %1838 = vmatpush.msrb.mxu0 %v3529_v6 }
0x21b9   :  { %v1429_v0 = vpop.xlane.xlu1 %1428 }
0x21ba   :  { %v1431_v51 = vperm.slane %v1429_v0, 0  ;;  %v1432_v5 = vperm.slane %v1429_v0, 1 }
0x21bc   :  { %2664 = vrcp.f32 %v1431_v51  ;;  %v1446_v54 = vand.u32 2147483648, %v1431_v51  ;;  %v1461_v55 = vand.u32 2147483648, %v1432_v5  ;;  %v1444_v40 = vand.u32 2147483647, %v1431_v51 }
0x21bd   :  { %2666 = vrcp.f32 %v1432_v5  ;;  %v1459_v45 = vand.u32 2147483647, %v1432_v5  ;;  %vm1440_vm9 = vweird.f32 %v1431_v51  ;;  %vm1455_vm10 = vweird.f32 %v1432_v5 }
0x21be   :  { %v1447_v9 = vor.u32 1.1754944e-38, %v1446_v54  ;;  %v1462_v50 = vor.u32 1.1754944e-38, %v1461_v55  ;;  %vm1445_vm13 = vcmp.eq.f32.partialorder %v1444_v40, 8.507059e+37 }
0x21bf   :  { %vm1460_vm14 = vcmp.eq.f32.partialorder %v1459_v45, 8.507059e+37 }
0x21c2   :  { %v2665_v11 = vpop.eup %2664 }
0x21c3   :  { %v2667_v23 = vpop.eup %2666  ;;  %v1436_v39 = vmul.f32 %v2665_v11, %v1431_v51  ;;  %vm1441_vm7 = vweird.f32 %v2665_v11 }
0x21c4   :  { %v1451_v12 = vmul.f32 %v2667_v23, %v1432_v5  ;;  %vm1456_vm8 = vweird.f32 %v2667_v23  ;;  %vm1442_vm11 = vmor %vm1440_vm9, %vm1441_vm7 }
0x21c5   :  { %v1437_v37 = vsub.f32 1.0, %v1436_v39  ;;  %vm1457_vm12 = vmor %vm1455_vm10, %vm1456_vm8 }
0x21c6   :  { %v1452_v38 = vsub.f32 1.0, %v1451_v12 }
0x21c7   :  { %v1438_v18 = vmul.f32 %v2665_v11, %v1437_v37 }
0x21c8   :  { %v1453_v42 = vmul.f32 %v2667_v23, %v1452_v38 }
0x21c9   :  { %v1439_v7 = vadd.f32 %v2665_v11, %v1438_v18  ;;  %v1537_v18 = vpop.f32.mrf.mxu0 }
0x21ca   :  { %v1454_v8 = vadd.f32 %v2667_v23, %v1453_v42 }
0x21cb   :  { %v1443_v10 = vsel %vm1442_vm11, %v2665_v11, %v1439_v7 }
0x21cc   :  { %v1458_v59 = vsel %vm1457_vm12, %v2667_v23, %v1454_v8  ;;  %v1448_v25 = vsel %vm1445_vm13, %v1447_v9, %v1443_v10 }
0x21cd   :  { %v1463_v27 = vsel %vm1460_vm14, %v1462_v50, %v1458_v59  ;;  %v1449_v3 = vmul.f32 %v2661_v28, %v1448_v25 }
0x21ce   :  { %v1464_v30 = vmul.f32 %v2663_v29, %v1463_v27 }
0x21cf   :  { %1467 = vperm.xlu1 %2585, %v1449_v3  }
0x21d0   :  { %1472 = vperm.xlu2 %2583, %v1464_v30  }
0x222a   :  { %v1473_v41 = vpop.permute.xlu2 %1472 }
0x222b   :  { %v1476_v47 = vmul.f32 %v3354_v19, %v1473_v41 }
0x222d   :  { %v1484_v48 = vsel %vm88_vm0, %v1476_v47, 0.0 }
0x222e   :  { %v1485_v49 = vrot.slane %v1484_v48, 4 }
0x2230   :  { %v1486_v56 = vadd.f32 %v1485_v49, %v1484_v48  ;;  %v2553_v49 = vld [vmem:[%s3938_s1 + $0xa] sm:$0x3] }
0x2232   :  { %v1487_v5 = vrot.slane %v1486_v56, 2 }
0x2234   :  { %v1488_v39 = vadd.f32 %v1487_v5, %v1486_v56  ;;  %v1620_v56 = vmul.f32 %v2553_v49, %v3218_v1 }
0x2236   :  { %v1489_v29 = vrot.slane %v1488_v39, 1 }
0x2238   :  { %v1490_v54 = vadd.f32 %v1489_v29, %v1488_v39 }
0x2241   :  { %v1468_v0 = vpop.permute.xlu1 %1467 }
0x2242   :  { %v1475_v51 = vmul.f32 %v3395_v52, %v1468_v0 }
0x2244   :  { %v1477_v11 = vsel %vm88_vm0, %v1475_v51, 0.0 }
0x2245   :  { %v1478_v23 = vrot.slane %v1477_v11, 4 }
0x2247   :  { %v1479_v12 = vadd.f32 %v1478_v23, %v1477_v11  ;;  %v3665_v23 = vld [vmem:[%s3942_s5] ss:$0 sm:$0xff] }
0x2249   :  { %v1480_v28 = vrot.slane %v1479_v12, 2 }
0x224b   :  { %v1481_v37 = vadd.f32 %v1480_v28, %v1479_v12 }
0x224d   :  { %v1482_v38 = vrot.slane %v1481_v37, 1 }
0x224f   :  { %v1483_v55 = vadd.f32 %v1482_v38, %v1481_v37 }
0x2251   :  { %v1493_v19 = vsel %vm179_vm5, %v1490_v54, %v1483_v55 }
0x2252   :  { %2547 = vmatmul.msk.f32.vlgmr.msrb.gmra.mxu1 %vm88_vm0, %v1493_v19 }
0x2253   :  { %1811 = vmatpush.msrb.mxu1 %v3406_v13 }
0x2255   :  { %1812 = vmatpush.msrb.mxu1 %v3412_v14 }
0x2257   :  { %1813 = vmatpush.msrb.mxu1 %v3418_v35 }
0x2259   :  { %1814 = vmatpush.msrb.mxu1 %v3424_v16 }
0x22cf   :  { %v1513_v40 = vpop.f32.mrf.mxu1 }
0x22d0   :  { %v1538_v42 = vadd.f32 %v1537_v18, %v1513_v40  ;;  %v3671_v40 = vld [vmem:[%s3944_s7] ss:$0 sm:$0xff] }
0x22d2   :  { %2668 = vtanh.f32 %v1538_v42 }
0x22d8   :  { %v2669_v45 = vpop.eup %2668 }
0x22d9   :  { %2549 = vmatmul.msk.f32.vlgmr.msra.gmra.mxu1 %vm88_vm0, %v2669_v45 }
0x22da   :  { %1859 = vmatpush.msra.mxu1 %v3550_v53 }
0x22dc   :  { %1860 = vmatpush.msra.mxu1 %v3556_v15 }
0x22de   :  { %1861 = vmatpush.msra.mxu1 %v3562_v57 }
0x22e0   :  { %1862 = vmatpush.msra.mxu1 %v3568_v58 }
0x2356   :  { %v1561_v13 = vpop.f32.mrf.mxu1 }
0x2357   :  { %v3640_v14 = vadd.f32 %v3574_v22, %v1561_v13 }
0x2359   :  { %v1564_v35 = vsel %vm349_vm15, %v3640_v14, -inf }
0x235a   :  { %1565 = vmax.xlane.f32.xlu2 %v1564_v35 }
0x23cd   :  { %v3644_v16 = vpop.xlane.xlu2 %1565 }
0x23ce   :  { %vm1578_vm1 = vcmp.ge.f32.partialorder %v3640_v14, %v3644_v16 }
0x23cf   :  { %v1579_v7 = vsel %vm1578_vm1, %v2962_v44, 128 }
0x23d0   :  { %v1580_v8 = vsel %vm349_vm15, %v1579_v7, 2147483647 }
0x23d1   :  { %v1582_v9 = vshra.s32 %v1580_v8, 16  ;;  %v1581_v10 = vand.u32 65535, %v1580_v8 }
0x23d3   :  { %v1584_v50 = vcvt.s32.f32 %v1582_v9  ;;  %v1583_v25 = vcvt.s32.f32 %v1581_v10 }
0x23d5   :  { %1585 = vmin.xlane.f32.xlu0 %v1584_v50 }
0x2448   :  { %v1586_v59 = vpop.xlane.xlu0 %1585 }
0x2449   :  { %vm1587_vm2 = vcmp.eq.f32.partialorder %v1584_v50, %v1586_v59  ;;  %v1592_v3 = vcvt.f32.s32 %v1586_v59 }
0x244a   :  { %v1588_v27 = vsel %vm1587_vm2, %v1583_v25, inf }
0x244b   :  { %1589 = vmin.xlane.f32.xlu1 %v1588_v27  ;;  %v1593_v41 = vshll.u32 %v1592_v3, 16 }
0x24be   :  { %v1590_v30 = vpop.xlane.xlu1 %1589 }
0x24bf   :  { %v1591_v47 = vcvt.f32.s32 %v1590_v30 }
0x24c1   :  { %v1594_v48 = vadd.s32 %v1593_v41, %v1591_v47  ;;  %v3683_v41 = vld [vmem:[%s3939_s2 + $0x8] sm:$0xff] }
0x24c3   :  { %vm1595_vm3 = vcmp.eq.s32.totalorder %v2962_v44, %v1594_v48 }
0x24c4   :  { %2552 = vmatmul.msk.f32.vlgmr.msra.gmra.mxu3 %vm1595_vm3, %v2821_v62 }
0x2547   :  { %v1615_v0 = vpop.f32.mrf.mxu3 }
0x2548   :  { %v1621_v51 = vmul.f32 %v1615_v0, %v3220_v2 }
0x254a   :  { %v1622_v5 = vadd.f32 %v1621_v51, %v1620_v56 }
0x254c   :  { %2554 = vmatmul.msk.f32.vlgmr.msra.gmra.mxu0 %vm88_vm0, %v1622_v5 }
0x254d   :  { %1941 = vmatpush.msra.mxu0 %v3470_v32 }
0x254f   :  { %1942 = vmatpush.msra.mxu0 %v3476_v33 }
0x2551   :  { %1943 = vmatpush.msra.mxu0 %v3482_v34 }
0x2553   :  { %1944 = vmatpush.msra.mxu0 %v3488_v36 }
0x25c9   :  { %v1643_v11 = vpop.f32.mrf.mxu0 }
0x25ca   :  { %v1646_v39 = vadd.f32 %v3665_v23, %v1643_v11  ;;  %v1666_v45 = vadd.f32 %v1643_v11, %v2938_v24 }
0x25cc   :  { %v2555_v12 = vmul.f32 -1.442695, %v1646_v39 }
0x25ce   :  { %2670 = vpow2.f32 %v2555_v12 }
0x25d4   :  { %v2671_v28 = vpop.eup %2670 }
0x25d5   :  { %v1650_v29 = vadd.f32 1.0, %v2671_v28 }
0x25d7   :  { %2672 = vrcp.f32 %v1650_v29  ;;  %v1662_v38 = vand.u32 2147483648, %v1650_v29  ;;  %v1660_v36 = vand.u32 2147483647, %v1650_v29  ;;  %vm1656_vm7 = vweird.f32 %v1650_v29 }
0x25d9   :  { %v1663_v55 = vor.u32 1.1754944e-38, %v1662_v38  ;;  %vm1661_vm9 = vcmp.eq.f32.partialorder %v1660_v36, 8.507059e+37 }
0x25dd   :  { %v2673_v32 = vpop.eup %2672 }
0x25de   :  { %v1652_v37 = vmul.f32 %v2673_v32, %v1650_v29  ;;  %vm1657_vm4 = vweird.f32 %v2673_v32 }
0x25df   :  { %vm1658_vm8 = vmor %vm1656_vm7, %vm1657_vm4 }
0x25e0   :  { %v1653_v33 = vsub.f32 1.0, %v1652_v37 }
0x25e2   :  { %v1654_v34 = vmul.f32 %v2673_v32, %v1653_v33 }
0x25e4   :  { %v1655_v54 = vadd.f32 %v2673_v32, %v1654_v34 }
0x25e6   :  { %v1659_v19 = vsel %vm1658_vm8, %v2673_v32, %v1655_v54 }
0x25e7   :  { %v1664_v18 = vsel %vm1661_vm9, %v1663_v55, %v1659_v19 }
0x25e8   :  { %v1667_v42 = vmul.f32 %v3671_v40, %v1664_v18  ;;  %v1674_v8 = vsub.f32 1.0, %v1664_v18 }
0x25ea   :  { %1669 = vrot.lane.b32.xlu2 %v1667_v42, %s2818_s18 }
0x2644   :  { %v1670_v13 = vpop.permute.xlu2 %1669 }
0x2645   :  { %v1672_v35 = vadd.f32 %v1670_v13, %v1666_v45 }
0x2647   :  { %2674 = vtanh.f32 %v1672_v35 }
0x264d   :  { %v2675_v7 = vpop.eup %2674 }
0x264e   :  { %1676 = vrot.lane.b32.xlu0 %v2675_v7, %s2819_s24 }
0x26c0   :  { %v1677_v9 = vpop.permute.xlu0 %1676 }
0x26c1   :  { %v1679_v50 = vmul.f32 %v1677_v9, %v1674_v8 }
0x26c3   :  { %v1682_v10 = vperm.slane %v1679_v50, 0  ;;  %v1681_v59 = vrot.slane %v1679_v50, 1 }
0x26c5   :  { %1684 = vrot.lane.b32.xlu1 %v1682_v10, %s2819_s24  ;;  %v1683_v25 = vperm.slane %v1681_v59, 0 }
0x26c7   :  { %1686 = vrot.lane.b32.xlu0 %v1683_v25, %s2819_s24 }
0x2737   :  { %v1685_v27 = vpop.permute.xlu1 %1684 }
0x2738   :  { %v1690_v3 = vmul.f32 %v3395_v52, %v1685_v27 }
0x2739   :  { %v1687_v30 = vpop.permute.xlu0 %1686 }
0x273a   :  { %v1691_v47 = vmul.f32 %v3683_v41, %v1687_v30  ;;  %v1692_v48 = vsel %vm88_vm0, %v1690_v3, 0.0 }
0x273b   :  { %1693 = vadd.xlane.f32.xlu2 %v1692_v48 }
0x273c   :  { %v1695_v49 = vsel %vm88_vm0, %v1691_v47, 0.0 }
0x273d   :  { %1696 = vadd.xlane.f32.xlu0 %v1695_v49 }
0x27ae   :  { %v1694_v56 = vpop.xlane.xlu2 %1693 }
0x27af   :  { %v1700_v51 = vperm.slane %v1694_v56, %v2962_v44 }
0x27b0   :  { %v1697_v0 = vpop.xlane.xlu0 %1696 }
0x27b1   :  { %v1701_v52 = vperm.slane %v1697_v0, %v2962_v44 }
0x27b3   :  { %v1702_v5 = vsel %vm179_vm5, %v1701_v52, %v1700_v51 }
0x27b4   :  { %v1704_v11 = vsel %vm182_vm6, %v1702_v5, -inf }
0x27b5   :  { %1705 = vmax.xlane.f32.xlu1 %v1704_v11 }
0x2828   :  { %v1706_v39 = vpop.xlane.xlu1 %1705 }
0x2829   :  { %v1708_v12 = vperm.slane %v1706_v39, 0  ;;  %v1709_v28 = vperm.slane %v1706_v39, 1 }
0x282b   :  { %v1712_v29 = vsub.f32 %v1694_v56, %v1708_v12  ;;  %v1713_v32 = vsub.f32 %v1697_v0, %v1709_v28 }
0x282d   :  { %v1714_v37 = vmul.f32 1.442695, %v1712_v29  ;;  %v1716_v33 = vmul.f32 1.442695, %v1713_v32 }
0x282f   :  { %2676 = vpow2.f32 %v1714_v37 }
0x2830   :  { %2678 = vpow2.f32 %v1716_v33  ;;  %v3707_v33 = vld [vmem:[%s3939_s2] sm:$0xff] }
0x2835   :  { %v2677_v38 = vpop.eup %2676 }
0x2836   :  { %v2679_v34 = vpop.eup %2678  ;;  %1721 = vperm.xlu2 %2583, %v2677_v38  }
0x2837   :  { %1724 = vperm.xlu0 %2584, %v2679_v34  }
0x283f   :  { %1819 = vrot.lane.b32.xlu0 %v1679_v50, %s2819_s24 }
0x2890   :  { %v1722_v36 = vpop.permute.xlu2 %1721 }
0x2891   :  { %v1726_v55 = vperm.slane %v1722_v36, %v2962_v44 }
0x28a9   :  { %v1725_v54 = vpop.permute.xlu0 %1724 }
0x28aa   :  { %v1727_v19 = vperm.slane %v1725_v54, %v2962_v44 }
0x28ac   :  { %v1728_v18 = vsel %vm179_vm5, %v1727_v19, %v1726_v55 }
0x28ad   :  { %v1730_v42 = vsel %vm182_vm6, %v1728_v18, 0.0 }
0x28ae   :  { %1731 = vadd.xlane.f32.xlu1 %v1730_v42 }
0x28b1   :  { %v1820_v45 = vpop.permute.xlu0 %1819 }
0x28b2   :  { %2557 = vmatmul.msk.f32.vlgmr.msrb.gmra.mxu0 %vm88_vm0, %v1820_v45 }
0x28b3   :  { %2138 = vmatpush.msrb.mxu0 %v3511_v60 }
0x28b5   :  { %2139 = vmatpush.msrb.mxu0 %v3517_v4 }
0x28b7   :  { %2140 = vmatpush.msrb.mxu0 %v3523_v63 }
0x28b9   :  { %2141 = vmatpush.msrb.mxu0 %v3529_v6 }
0x2921   :  { %v1732_v13 = vpop.xlane.xlu1 %1731 }
0x2922   :  { %v1734_v35 = vperm.slane %v1732_v13, 0  ;;  %v1735_v7 = vperm.slane %v1732_v13, 1 }
0x2924   :  { %2680 = vrcp.f32 %v1734_v35  ;;  %v1749_v27 = vand.u32 2147483648, %v1734_v35  ;;  %v1764_v3 = vand.u32 2147483648, %v1735_v7  ;;  %v1747_v4 = vand.u32 2147483647, %v1734_v35 }
0x2925   :  { %2682 = vrcp.f32 %v1735_v7  ;;  %v1762_v63 = vand.u32 2147483647, %v1735_v7  ;;  %vm1743_vm12 = vweird.f32 %v1734_v35  ;;  %vm1758_vm13 = vweird.f32 %v1735_v7 }
0x2926   :  { %v1750_v48 = vor.u32 1.1754944e-38, %v1749_v27  ;;  %v1765_v49 = vor.u32 1.1754944e-38, %v1764_v3  ;;  %vm1748_vm2 = vcmp.eq.f32.partialorder %v1747_v4, 8.507059e+37 }
0x2927   :  { %vm1763_vm3 = vcmp.eq.f32.partialorder %v1762_v63, 8.507059e+37 }
0x292a   :  { %v2681_v8 = vpop.eup %2680 }
0x292b   :  { %v2683_v9 = vpop.eup %2682  ;;  %v1739_v50 = vmul.f32 %v2681_v8, %v1734_v35  ;;  %vm1744_vm10 = vweird.f32 %v2681_v8 }
0x292c   :  { %v1754_v10 = vmul.f32 %v2683_v9, %v1735_v7  ;;  %vm1759_vm11 = vweird.f32 %v2683_v9  ;;  %vm1745_vm14 = vmor %vm1743_vm12, %vm1744_vm10 }
0x292d   :  { %v1740_v59 = vsub.f32 1.0, %v1739_v50  ;;  %vm1760_vm1 = vmor %vm1758_vm13, %vm1759_vm11  ;;  %v3722_v50 = vld [vmem:[%s3946_s9 + $0x10] sm:$0xff] }
0x292e   :  { %v1755_v25 = vsub.f32 1.0, %v1754_v10  ;;  %v3728_v10 = vld [vmem:[%s3946_s9 + $0x8] sm:$0xff] }
0x292f   :  { %v1741_v60 = vmul.f32 %v2681_v8, %v1740_v59  ;;  %v3734_v59 = vld [vmem:[%s3946_s9] sm:$0xff] }
0x2930   :  { %v1756_v30 = vmul.f32 %v2683_v9, %v1755_v25  ;;  %v1840_v25 = vpop.f32.mrf.mxu0 }
0x2931   :  { %v1742_v6 = vadd.f32 %v2681_v8, %v1741_v60 }
0x2932   :  { %v1757_v47 = vadd.f32 %v2683_v9, %v1756_v30 }
0x2933   :  { %v1746_v56 = vsel %vm1745_vm14, %v2681_v8, %v1742_v6 }
0x2934   :  { %v1761_v0 = vsel %vm1760_vm1, %v2683_v9, %v1757_v47  ;;  %v1751_v51 = vsel %vm1748_vm2, %v1750_v48, %v1746_v56  ;;  %v3716_v9 = vld [vmem:[%s3946_s9 + $0x18] sm:$0xff] }
0x2935   :  { %v1766_v52 = vsel %vm1763_vm3, %v1765_v49, %v1761_v0  ;;  %v1752_v5 = vmul.f32 %v2677_v38, %v1751_v51 }
0x2936   :  { %v1767_v11 = vmul.f32 %v2679_v34, %v1766_v52 }
0x2937   :  { %1770 = vperm.xlu1 %2585, %v1752_v5  }
0x2938   :  { %1775 = vperm.xlu2 %2583, %v1767_v11   ;;  %v2562_v11 = vld [vmem:[%s3938_s1 + $0xc] sm:$0x3] }
0x2992   :  { %v1776_v39 = vpop.permute.xlu2 %1775 }
0x2993   :  { %v1779_v12 = vmul.f32 %v3683_v41, %v1776_v39  ;;  %v1923_v39 = vmul.f32 %v2562_v11, %v3218_v1 }
0x2995   :  { %v1787_v28 = vsel %vm88_vm0, %v1779_v12, 0.0 }
0x2996   :  { %v1788_v29 = vrot.slane %v1787_v28, 4 }
0x2998   :  { %v1789_v32 = vadd.f32 %v1788_v29, %v1787_v28 }
0x299a   :  { %v1790_v54 = vrot.slane %v1789_v32, 2 }
0x299c   :  { %v1791_v55 = vadd.f32 %v1790_v54, %v1789_v32  ;;  %v2779_v32 = vld [vmem:[%s3941_s4 + $0x18] sm:$0xff]  ;;  %v2782_v54 = vld [vmem:[%s3941_s4] sm:$0xff] }
0x299e   :  { %v1792_v42 = vrot.slane %v1791_v55, 1 }
0x29a0   :  { %v1793_v35 = vadd.f32 %v1792_v42, %v1791_v55 }
0x29a9   :  { %v1771_v37 = vpop.permute.xlu1 %1770 }
0x29aa   :  { %v1778_v36 = vmul.f32 %v3707_v33, %v1771_v37  ;;  %v2780_v37 = vld [vmem:[%s3941_s4 + $0x10] sm:$0xff] }
0x29ac   :  { %v1780_v38 = vsel %vm88_vm0, %v1778_v36, 0.0  ;;  %v2781_v36 = vld [vmem:[%s3941_s4 + $0x8] sm:$0xff]  ;;  %s2497_s4 = sshll.u32 %s2822_s26, 4  ;;  %s2498_s4 = int_to_ptr.vmem [resolvable:$true] %s2497_s4 }
0x29ad   :  { %v1781_v34 = vrot.slane %v1780_v38, 4 }
0x29af   :  { %v1782_v19 = vadd.f32 %v1781_v34, %v1780_v38 }
0x29b1   :  { %v1783_v18 = vrot.slane %v1782_v19, 2 }
0x29b3   :  { %v1784_v45 = vadd.f32 %v1783_v18, %v1782_v19 }
0x29b5   :  { %v1785_v13 = vrot.slane %v1784_v45, 1 }
0x29b7   :  { %v1786_v7 = vadd.f32 %v1785_v13, %v1784_v45 }
0x29b9   :  { %v1796_v8 = vsel %vm179_vm5, %v1793_v35, %v1786_v7 }
0x29ba   :  { %2556 = vmatmul.msk.f32.vlgmr.msrb.gmra.mxu1 %vm88_vm0, %v1796_v8 }
0x29bb   :  { %2114 = vmatpush.msrb.mxu1 %v3716_v9 }
0x29bd   :  { %2115 = vmatpush.msrb.mxu1 %v3722_v50 }
0x29bf   :  { %2116 = vmatpush.msrb.mxu1 %v3728_v10 }
0x29c1   :  { %2117 = vmatpush.msrb.mxu1 %v3734_v59 }
0x2a37   :  { %v1816_v27 = vpop.f32.mrf.mxu1 }
0x2a38   :  { %v1841_v3 = vadd.f32 %v1840_v25, %v1816_v27 }
0x2a3a   :  { %2684 = vtanh.f32 %v1841_v3 }
0x2a40   :  { %v2685_v60 = vpop.eup %2684 }
0x2a41   :  { %2558 = vmatmul.msk.f32.vlgmr.msra.gmra.mxu1 %vm88_vm0, %v2685_v60 }
0x2a42   :  { %2162 = vmatpush.msra.mxu1 %v3550_v53 }
0x2a44   :  { %2163 = vmatpush.msra.mxu1 %v3556_v15 }
0x2a46   :  { %2164 = vmatpush.msra.mxu1 %v3562_v57 }
0x2a48   :  { %2165 = vmatpush.msra.mxu1 %v3568_v58 }
0x2abe   :  { %v1864_v4 = vpop.f32.mrf.mxu1 }
0x2abf   :  { %v3743_v30 = vadd.f32 %v3574_v22, %v1864_v4 }
0x2ac1   :  { %v1867_v63 = vsel %vm349_vm15, %v3743_v30, -inf }
0x2ac2   :  { %1868 = vmax.xlane.f32.xlu2 %v1867_v63 }
0x2b35   :  { %v3747_v6 = vpop.xlane.xlu2 %1868 }
0x2b36   :  { %vm1881_vm4 = vcmp.ge.f32.partialorder %v3743_v30, %v3747_v6 }
0x2b37   :  { %v1882_v53 = vsel %vm1881_vm4, %v2962_v44, 128 }
0x2b38   :  { %v1883_v15 = vsel %vm349_vm15, %v1882_v53, 2147483647 }
0x2b39   :  { %v1885_v57 = vshra.s32 %v1883_v15, 16  ;;  %v1884_v58 = vand.u32 65535, %v1883_v15 }
0x2b3b   :  { %v1887_v47 = vcvt.s32.f32 %v1885_v57  ;;  %v1886_v22 = vcvt.s32.f32 %v1884_v58 }
0x2b3d   :  { %1888 = vmin.xlane.f32.xlu0 %v1887_v47 }
0x2bb0   :  { %v1889_v48 = vpop.xlane.xlu0 %1888 }
0x2bb1   :  { %vm1890_vm7 = vcmp.eq.f32.partialorder %v1887_v47, %v1889_v48  ;;  %v1895_v56 = vcvt.f32.s32 %v1889_v48 }
0x2bb2   :  { %v1891_v49 = vsel %vm1890_vm7, %v1886_v22, inf }
0x2bb3   :  { %1892 = vmin.xlane.f32.xlu1 %v1891_v49  ;;  %v1896_v51 = vshll.u32 %v1895_v56, 16 }
0x2c26   :  { %v1893_v0 = vpop.xlane.xlu1 %1892 }
0x2c27   :  { %v1894_v52 = vcvt.f32.s32 %v1893_v0 }
0x2c29   :  { %v1897_v5 = vadd.s32 %v1896_v51, %v1894_v52 }
0x2c2b   :  { %vm1898_vm8 = vcmp.eq.s32.totalorder %v2962_v44, %v1897_v5 }
0x2c2c   :  { %2561 = vmatmul.msk.f32.vlgmr.msrb.gmra.mxu2 %vm1898_vm8, %v2821_v62 }
0x2caf   :  { %v1918_v12 = vpop.f32.mrf.mxu2 }
0x2cb0   :  { %v1924_v28 = vmul.f32 %v1918_v12, %v3220_v2 }
0x2cb2   :  { %v1925_v29 = vadd.f32 %v1924_v28, %v1923_v39 }
0x2cb4   :  { %2563 = vmatmul.msk.f32.vlgmr.msra.gmra.mxu0 %vm88_vm0, %v1925_v29 }
0x2cb5   :  { %2244 = vmatpush.msra.mxu0 %v2779_v32 }
0x2cb7   :  { %2245 = vmatpush.msra.mxu0 %v2780_v37 }
0x2cb9   :  { %2246 = vmatpush.msra.mxu0 %v2781_v36 }
0x2cbb   :  { %2247 = vmatpush.msra.mxu0 %v2782_v54 }
0x2d31   :  { %v1946_v38 = vpop.f32.mrf.mxu0 }
0x2d32   :  { %v1949_v34 = vadd.f32 %v3665_v23, %v1946_v38  ;;  %v1969_v63 = vadd.f32 %v1946_v38, %v2938_v24 }
0x2d34   :  { %v2564_v55 = vmul.f32 -1.442695, %v1949_v34 }
0x2d36   :  { %2686 = vpow2.f32 %v2564_v55 }
0x2d3c   :  { %v2687_v19 = vpop.eup %2686 }
0x2d3d   :  { %v1953_v18 = vadd.f32 1.0, %v2687_v19 }
0x2d3f   :  { %2688 = vrcp.f32 %v1953_v18  ;;  %v1965_v35 = vand.u32 2147483648, %v1953_v18  ;;  %v1963_v8 = vand.u32 2147483647, %v1953_v18  ;;  %vm1959_vm10 = vweird.f32 %v1953_v18 }
0x2d41   :  { %v1966_v27 = vor.u32 1.1754944e-38, %v1965_v35  ;;  %vm1964_vm12 = vcmp.eq.f32.partialorder %v1963_v8, 8.507059e+37 }
0x2d45   :  { %v2689_v42 = vpop.eup %2688 }
0x2d46   :  { %v1955_v45 = vmul.f32 %v2689_v42, %v1953_v18  ;;  %vm1960_vm9 = vweird.f32 %v2689_v42 }
0x2d47   :  { %vm1961_vm11 = vmor %vm1959_vm10, %vm1960_vm9 }
0x2d48   :  { %v1956_v13 = vsub.f32 1.0, %v1955_v45 }
0x2d4a   :  { %v1957_v7 = vmul.f32 %v2689_v42, %v1956_v13 }
0x2d4c   :  { %v1958_v25 = vadd.f32 %v2689_v42, %v1957_v7 }
0x2d4e   :  { %v1962_v3 = vsel %vm1961_vm11, %v2689_v42, %v1958_v25 }
0x2d4f   :  { %v1967_v60 = vsel %vm1964_vm12, %v1966_v27, %v1962_v3 }
0x2d50   :  { %v1970_v4 = vmul.f32 %v3671_v40, %v1967_v60  ;;  %v1977_v47 = vsub.f32 1.0, %v1967_v60 }
0x2d52   :  { %1972 = vrot.lane.b32.xlu2 %v1970_v4, %s2818_s18  ;;  %v2783_v4 = vld [vmem:[%s3945_s8 + $0x18] sm:$0xff] }
0x2dac   :  { %v1973_v53 = vpop.permute.xlu2 %1972 }
0x2dad   :  { %v1975_v15 = vadd.f32 %v1973_v53, %v1969_v63  ;;  %v2784_v63 = vld [vmem:[%s3945_s8 + $0x10] sm:$0xff]  ;;  %v2785_v53 = vld [vmem:[%s3945_s8 + $0x8] sm:$0xff] }
0x2daf   :  { %2690 = vtanh.f32 %v1975_v15  ;;  %v2786_v15 = vld [vmem:[%s3945_s8] sm:$0xff] }
0x2db5   :  { %v2691_v57 = vpop.eup %2690 }
0x2db6   :  { %1979 = vrot.lane.b32.xlu0 %v2691_v57, %s2819_s24 }
0x2e28   :  { %v1980_v58 = vpop.permute.xlu0 %1979 }
0x2e29   :  { %v1982_v48 = vmul.f32 %v1980_v58, %v1977_v47 }
0x2e2b   :  { %v1985_v22 = vperm.slane %v1982_v48, 0  ;;  %v1984_v49 = vrot.slane %v1982_v48, 1 }
0x2e2d   :  { %1987 = vrot.lane.b32.xlu1 %v1985_v22, %s2819_s24  ;;  %v1986_v56 = vperm.slane %v1984_v49, 0 }
0x2e2f   :  { %1989 = vrot.lane.b32.xlu0 %v1986_v56, %s2819_s24 }
0x2e9f   :  { %v1988_v0 = vpop.permute.xlu1 %1987 }
0x2ea0   :  { %v1993_v51 = vmul.f32 %v3707_v33, %v1988_v0 }
0x2ea1   :  { %v1990_v52 = vpop.permute.xlu0 %1989 }
0x2ea2   :  { %v1994_v5 = vmul.f32 %v3683_v41, %v1990_v52  ;;  %v1995_v11 = vsel %vm88_vm0, %v1993_v51, 0.0 }
0x2ea3   :  { %1996 = vadd.xlane.f32.xlu2 %v1995_v11 }
0x2ea4   :  { %v1998_v39 = vsel %vm88_vm0, %v1994_v5, 0.0 }
0x2ea5   :  { %1999 = vadd.xlane.f32.xlu0 %v1998_v39 }
0x2f16   :  { %v1997_v12 = vpop.xlane.xlu2 %1996 }
0x2f17   :  { %v2003_v29 = vperm.slane %v1997_v12, %v2962_v44 }
0x2f18   :  { %v2000_v28 = vpop.xlane.xlu0 %1999 }
0x2f19   :  { %v2004_v32 = vperm.slane %v2000_v28, %v2962_v44 }
0x2f1b   :  { %v2005_v37 = vsel %vm179_vm5, %v2004_v32, %v2003_v29 }
0x2f1c   :  { %v2007_v36 = vsel %vm182_vm6, %v2005_v37, -inf }
0x2f1d   :  { %2008 = vmax.xlane.f32.xlu1 %v2007_v36 }
0x2f90   :  { %v2009_v54 = vpop.xlane.xlu1 %2008 }
0x2f91   :  { %v2011_v38 = vperm.slane %v2009_v54, 0  ;;  %v2012_v34 = vperm.slane %v2009_v54, 1 }
0x2f93   :  { %v2015_v55 = vsub.f32 %v1997_v12, %v2011_v38  ;;  %v2016_v19 = vsub.f32 %v2000_v28, %v2012_v34 }
0x2f95   :  { %v2017_v18 = vmul.f32 1.442695, %v2015_v55  ;;  %v2019_v42 = vmul.f32 1.442695, %v2016_v19 }
0x2f97   :  { %2692 = vpow2.f32 %v2017_v18 }
0x2f98   :  { %2694 = vpow2.f32 %v2019_v42 }
0x2f9d   :  { %v2693_v45 = vpop.eup %2692 }
0x2f9e   :  { %v2695_v13 = vpop.eup %2694  ;;  %2024 = vperm.xlu2 %2583, %v2693_v45  }
0x2f9f   :  { %2027 = vperm.xlu0 %2584, %v2695_v13  }
0x2fa7   :  { %2122 = vrot.lane.b32.xlu0 %v1982_v48, %s2819_s24 }
0x2ff8   :  { %v2025_v35 = vpop.permute.xlu2 %2024 }
0x2ff9   :  { %v2029_v8 = vperm.slane %v2025_v35, %v2962_v44 }
0x3011   :  { %v2028_v7 = vpop.permute.xlu0 %2027 }
0x3012   :  { %v2030_v25 = vperm.slane %v2028_v7, %v2962_v44 }
0x3014   :  { %v2031_v27 = vsel %vm179_vm5, %v2030_v25, %v2029_v8 }
0x3015   :  { %v2033_v3 = vsel %vm182_vm6, %v2031_v27, 0.0 }
0x3016   :  { %2034 = vadd.xlane.f32.xlu1 %v2033_v3 }
0x3019   :  { %v2123_v60 = vpop.permute.xlu0 %2122 }
0x301a   :  { %2566 = vmatmul.msk.f32.vlgmr.msrb.gmra.mxu0 %vm88_vm0, %v2123_v60 }
0x301b   :  { %2441 = vmatpush.msrb.mxu0 %v2783_v4 }
0x301d   :  { %2442 = vmatpush.msrb.mxu0 %v2784_v63 }
0x301f   :  { %2443 = vmatpush.msrb.mxu0 %v2785_v53 }
0x3021   :  { %2444 = vmatpush.msrb.mxu0 %v2786_v15 }
0x3089   :  { %v2035_v57 = vpop.xlane.xlu1 %2034 }
0x308a   :  { %v2037_v47 = vperm.slane %v2035_v57, 0  ;;  %v2038_v58 = vperm.slane %v2035_v57, 1 }
0x308c   :  { %2696 = vrcp.f32 %v2037_v47  ;;  %v2052_v52 = vand.u32 2147483648, %v2037_v47  ;;  %v2067_v5 = vand.u32 2147483648, %v2038_v58  ;;  %v2050_v39 = vand.u32 2147483647, %v2037_v47 }
0x308d   :  { %2698 = vrcp.f32 %v2038_v58  ;;  %v2065_v28 = vand.u32 2147483647, %v2038_v58  ;;  %vm2046_vm1 = vweird.f32 %v2037_v47  ;;  %vm2061_vm2 = vweird.f32 %v2038_v58 }
0x308e   :  { %v2053_v37 = vor.u32 1.1754944e-38, %v2052_v52  ;;  %v2068_v36 = vor.u32 1.1754944e-38, %v2067_v5  ;;  %vm2051_vm7 = vcmp.eq.f32.partialorder %v2050_v39, 8.507059e+37  ;;  %v2787_v52 = vld [vmem:[%s3947_s10 + $0x18] sm:$0xff]  ;;  %v3832_v5 = vld [vmem:[%s3948_s11] ss:$0 sm:$0xff] }
0x308f   :  { %vm2066_vm8 = vcmp.eq.f32.partialorder %v2065_v28, 8.507059e+37 }
0x3092   :  { %v2697_v48 = vpop.eup %2696 }
0x3093   :  { %v2699_v22 = vpop.eup %2698  ;;  %v2042_v49 = vmul.f32 %v2697_v48, %v2037_v47  ;;  %vm2047_vm13 = vweird.f32 %v2697_v48 }
0x3094   :  { %v2057_v56 = vmul.f32 %v2699_v22, %v2038_v58  ;;  %vm2062_vm14 = vweird.f32 %v2699_v22  ;;  %vm2048_vm3 = vmor %vm2046_vm1, %vm2047_vm13 }
0x3095   :  { %v2043_v0 = vsub.f32 1.0, %v2042_v49  ;;  %vm2063_vm4 = vmor %vm2061_vm2, %vm2062_vm14 }
0x3096   :  { %v2058_v51 = vsub.f32 1.0, %v2057_v56 }
0x3097   :  { %v2044_v11 = vmul.f32 %v2697_v48, %v2043_v0  ;;  %v2143_v49 = vpop.f32.mrf.mxu0 }
0x3098   :  { %v2059_v12 = vmul.f32 %v2699_v22, %v2058_v51 }
0x3099   :  { %v2045_v29 = vadd.f32 %v2697_v48, %v2044_v11 }
0x309a   :  { %v2060_v32 = vadd.f32 %v2699_v22, %v2059_v12 }
0x309b   :  { %v2049_v54 = vsel %vm2048_vm3, %v2697_v48, %v2045_v29 }
0x309c   :  { %v2064_v38 = vsel %vm2063_vm4, %v2699_v22, %v2060_v32  ;;  %v2054_v34 = vsel %vm2051_vm7, %v2053_v37, %v2049_v54 }
0x309d   :  { %v2069_v55 = vsel %vm2066_vm8, %v2068_v36, %v2064_v38  ;;  %v2055_v19 = vmul.f32 %v2693_v45, %v2054_v34 }
0x309e   :  { %v2070_v18 = vmul.f32 %v2695_v13, %v2069_v55 }
0x309f   :  { %2073 = vperm.xlu2 %2583, %v2055_v19  }
0x30a0   :  { %2078 = vperm.xlu1 %2585, %v2070_v18  }
0x30f9   :  { %v2074_v42 = vpop.permute.xlu2 %2073 }
0x30fa   :  { %v2081_v35 = vmul.f32 %v3707_v33, %v2074_v42 }
0x30fc   :  { %v2083_v7 = vsel %vm88_vm0, %v2081_v35, 0.0 }
0x30fd   :  { %v2084_v8 = vrot.slane %v2083_v7, 4 }
0x30ff   :  { %v2085_v25 = vadd.f32 %v2084_v8, %v2083_v7  ;;  %v2571_v7 = vld [vmem:[%s3938_s1 + $0xe] sm:$0x3] }
0x3100   :  { %v2226_v8 = vmul.f32 %v2571_v7, %v3218_v1 }
0x3101   :  { %v2086_v60 = vrot.slane %v2085_v25, 2 }
0x3103   :  { %v2087_v53 = vadd.f32 %v2086_v60, %v2085_v25 }
0x3105   :  { %v2088_v13 = vrot.slane %v2087_v53, 1 }
0x3107   :  { %v2089_v58 = vadd.f32 %v2088_v13, %v2087_v53 }
0x3112   :  { %v2079_v27 = vpop.permute.xlu1 %2078 }
0x3113   :  { %v2082_v3 = vmul.f32 %v3683_v41, %v2079_v27 }
0x3115   :  { %v2090_v4 = vsel %vm88_vm0, %v2082_v3, 0.0 }
0x3116   :  { %v2091_v63 = vrot.slane %v2090_v4, 4 }
0x3118   :  { %v2092_v15 = vadd.f32 %v2091_v63, %v2090_v4 }
0x311a   :  { %v2093_v45 = vrot.slane %v2092_v15, 2 }
0x311c   :  { %v2094_v57 = vadd.f32 %v2093_v45, %v2092_v15 }
0x311e   :  { %v2095_v47 = vrot.slane %v2094_v57, 1 }
0x3120   :  { %v2096_v48 = vadd.f32 %v2095_v47, %v2094_v57 }
0x3122   :  { %v2099_v22 = vsel %vm179_vm5, %v2096_v48, %v2089_v58 }
0x3123   :  { %2565 = vmatmul.msk.f32.vlgmr.msrb.gmra.mxu1 %vm88_vm0, %v2099_v22 }
0x3124   :  { %2417 = vmatpush.msrb.mxu1 %v3716_v9  ;;  %v2788_v9 = vld [vmem:[%s3947_s10 + $0x10] sm:$0xff] }
0x3126   :  { %2418 = vmatpush.msrb.mxu1 %v3722_v50  ;;  %v2789_v50 = vld [vmem:[%s3947_s10 + $0x8] sm:$0xff] }
0x3128   :  { %2419 = vmatpush.msrb.mxu1 %v3728_v10  ;;  %v2790_v10 = vld [vmem:[%s3947_s10] sm:$0xff] }
0x312a   :  { %2420 = vmatpush.msrb.mxu1 %v3734_v59 }
0x31a0   :  { %v2119_v56 = vpop.f32.mrf.mxu1 }
0x31a1   :  { %v2144_v0 = vadd.f32 %v2143_v49, %v2119_v56 }
0x31a3   :  { %2700 = vtanh.f32 %v2144_v0 }
0x31a9   :  { %v2701_v51 = vpop.eup %2700 }
0x31aa   :  { %2567 = vmatmul.msk.f32.vlgmr.msra.gmra.mxu1 %vm88_vm0, %v2701_v51 }
0x31ab   :  { %2465 = vmatpush.msra.mxu1 %v2787_v52 }
0x31ad   :  { %2466 = vmatpush.msra.mxu1 %v2788_v9 }
0x31af   :  { %2467 = vmatpush.msra.mxu1 %v2789_v50 }
0x31b1   :  { %2468 = vmatpush.msra.mxu1 %v2790_v10 }
0x3227   :  { %v2167_v59 = vpop.f32.mrf.mxu1 }
0x3228   :  { %v3835_v11 = vadd.f32 %v3832_v5, %v2167_v59 }
0x322a   :  { %v2170_v39 = vsel %vm349_vm15, %v3835_v11, -inf }
0x322b   :  { %2171 = vmax.xlane.f32.xlu2 %v2170_v39 }
0x329e   :  { %v3839_v12 = vpop.xlane.xlu2 %2171 }
0x329f   :  { %vm2184_vm9 = vcmp.ge.f32.partialorder %v3835_v11, %v3839_v12 }
0x32a0   :  { %v2185_v28 = vsel %vm2184_vm9, %v2962_v44, 128 }
0x32a1   :  { %v2186_v29 = vsel %vm349_vm15, %v2185_v28, 2147483647 }
0x32a2   :  { %v2188_v32 = vshra.s32 %v2186_v29, 16  ;;  %v2187_v36 = vand.u32 65535, %v2186_v29 }
0x32a4   :  { %v2190_v37 = vcvt.s32.f32 %v2188_v32  ;;  %v2189_v38 = vcvt.s32.f32 %v2187_v36 }
0x32a6   :  { %2191 = vmin.xlane.f32.xlu0 %v2190_v37 }
0x3319   :  { %v2192_v54 = vpop.xlane.xlu0 %2191 }
0x331a   :  { %vm2193_vm10 = vcmp.eq.f32.partialorder %v2190_v37, %v2192_v54  ;;  %v2198_v55 = vcvt.f32.s32 %v2192_v54 }
0x331b   :  { %v2194_v34 = vsel %vm2193_vm10, %v2189_v38, inf }
0x331c   :  { %2195 = vmin.xlane.f32.xlu1 %v2194_v34  ;;  %v2199_v18 = vshll.u32 %v2198_v55, 16 }
0x338f   :  { %v2196_v19 = vpop.xlane.xlu1 %2195 }
0x3390   :  { %v2197_v42 = vcvt.f32.s32 %v2196_v19 }
0x3392   :  { %v2200_v35 = vadd.s32 %v2199_v18, %v2197_v42 }
0x3394   :  { %vm2201_vm11 = vcmp.eq.s32.totalorder %v2962_v44, %v2200_v35 }
0x3395   :  { %2570 = vmatmul.msk.f32.vlgmr.msrb.gmra.mxu3 %vm2201_vm11, %v2821_v62  ;;  %vm2488_vm11 = vcmask 254976  }
0x3418   :  { %v2221_v25 = vpop.f32.mrf.mxu3 }
0x3419   :  { %v2227_v27 = vmul.f32 %v2221_v25, %v3220_v2 }
0x341b   :  { %v2228_v3 = vadd.f32 %v2227_v27, %v2226_v8 }
0x341d   :  { %2572 = vmatmul.msk.f32.vlgmr.msra.gmra.mxu0 %vm88_vm0, %v2228_v3 }
0x349a   :  { %v2249_v60 = vpop.f32.mrf.mxu0 }
0x349b   :  { %v2252_v4 = vadd.f32 %v3665_v23, %v2249_v60  ;;  %v2272_v49 = vadd.f32 %v2249_v60, %v2938_v24 }
0x349d   :  { %v2573_v63 = vmul.f32 -1.442695, %v2252_v4 }
0x349f   :  { %2702 = vpow2.f32 %v2573_v63 }
0x34a5   :  { %v2703_v53 = vpop.eup %2702 }
0x34a6   :  { %v2256_v15 = vadd.f32 1.0, %v2703_v53 }
0x34a8   :  { %2704 = vrcp.f32 %v2256_v15  ;;  %v2268_v57 = vand.u32 2147483648, %v2256_v15  ;;  %v2266_v1 = vand.u32 2147483647, %v2256_v15  ;;  %vm2262_vm13 = vweird.f32 %v2256_v15 }
0x34aa   :  { %v2269_v2 = vor.u32 1.1754944e-38, %v2268_v57  ;;  %vm2267_vm1 = vcmp.eq.f32.partialorder %v2266_v1, 8.507059e+37 }
0x34ae   :  { %v2705_v62 = vpop.eup %2704 }
0x34af   :  { %v2258_v45 = vmul.f32 %v2705_v62, %v2256_v15  ;;  %vm2263_vm12 = vweird.f32 %v2705_v62 }
0x34b0   :  { %vm2264_vm14 = vmor %vm2262_vm13, %vm2263_vm12 }
0x34b1   :  { %v2259_v13 = vsub.f32 1.0, %v2258_v45 }
0x34b3   :  { %v2260_v47 = vmul.f32 %v2705_v62, %v2259_v13 }
0x34b5   :  { %v2261_v58 = vadd.f32 %v2705_v62, %v2260_v47 }
0x34b7   :  { %v2265_v48 = vsel %vm2264_vm14, %v2705_v62, %v2261_v58 }
0x34b8   :  { %v2270_v22 = vsel %vm2267_vm1, %v2269_v2, %v2265_v48 }
0x34b9   :  { %v2273_v23 = vmul.f32 %v3671_v40, %v2270_v22  ;;  %v2280_v52 = vsub.f32 1.0, %v2270_v22 }
0x34bb   :  { %2275 = vrot.lane.b32.xlu2 %v2273_v23, %s2818_s18 }
0x3515   :  { %v2276_v56 = vpop.permute.xlu2 %2275 }
0x3516   :  { %v2278_v0 = vadd.f32 %v2276_v56, %v2272_v49 }
0x3518   :  { %2706 = vtanh.f32 %v2278_v0 }
0x351e   :  { %v2707_v51 = vpop.eup %2706 }
0x351f   :  { %2282 = vrot.lane.b32.xlu0 %v2707_v51, %s2819_s24 }
0x3591   :  { %v2283_v9 = vpop.permute.xlu0 %2282 }
0x3592   :  { %v3858_v50 = vmul.f32 %v2283_v9, %v2280_v52 }
0x3594   :  { %v2288_v10 = vperm.slane %v3858_v50, 0  ;;  %v2287_v59 = vrot.slane %v3858_v50, 1 }
0x3596   :  { %2290 = vrot.lane.b32.xlu1 %v2288_v10, %s2819_s24  ;;  %v2289_v40 = vperm.slane %v2287_v59, 0 }
0x3598   :  { %2292 = vrot.lane.b32.xlu2 %v2289_v40, %s2819_s24 }
0x35f2   :  { %v2293_v24 = vpop.permute.xlu2 %2292 }
0x35f3   :  { %v2297_v39 = vmul.f32 %v3683_v41, %v2293_v24 }
0x35f5   :  { %v2301_v28 = vsel %vm88_vm0, %v2297_v39, 0.0 }
0x35f6   :  { %2302 = vadd.xlane.f32.xlu2 %v2301_v28 }
0x3608   :  { %v2291_v29 = vpop.permute.xlu1 %2290 }
0x3609   :  { %v2296_v32 = vmul.f32 %v3707_v33, %v2291_v29 }
0x360b   :  { %v2298_v37 = vsel %vm88_vm0, %v2296_v32, 0.0 }
0x360c   :  { %2299 = vadd.xlane.f32.xlu0 %v2298_v37 }
0x3669   :  { %v2303_v36 = vpop.xlane.xlu2 %2302 }
0x366a   :  { %v2307_v38 = vperm.slane %v2303_v36, %v2962_v44 }
0x367f   :  { %v2300_v54 = vpop.xlane.xlu0 %2299 }
0x3680   :  { %v2306_v34 = vperm.slane %v2300_v54, %v2962_v44 }
0x3682   :  { %v2308_v55 = vsel %vm179_vm5, %v2307_v38, %v2306_v34  ;;  %v353_v38 = vsub.f32 %v3080_v17, %v3084_v20 }
0x3683   :  { %v2310_v19 = vsel %vm182_vm6, %v2308_v55, -inf }
0x3684   :  { %2311 = vmax.xlane.f32.xlu1 %v2310_v19  ;;  %v354_v34 = vmul.f32 1.442695, %v353_v38  ;;  %v1264_v19 = vsub.f32 %v3577_v61, %v3581_v26 }
0x36f7   :  { %v2312_v18 = vpop.xlane.xlu1 %2311 }
0x36f8   :  { %v2314_v42 = vperm.slane %v2312_v18, 0  ;;  %v2315_v35 = vperm.slane %v2312_v18, 1 }
0x36fa   :  { %v2318_v7 = vsub.f32 %v2300_v54, %v2314_v42  ;;  %v2319_v8 = vsub.f32 %v2303_v36, %v2315_v35  ;;  %v658_v36 = vsub.f32 %v3282_v31, %v3286_v21  ;;  %v1265_v42 = vmul.f32 1.442695, %v1264_v19 }
0x36fb   :  { %v1870_v31 = vsub.f32 %v3743_v30, %v3747_v6 }
0x36fc   :  { %v2320_v25 = vmul.f32 1.442695, %v2318_v7  ;;  %v2322_v27 = vmul.f32 1.442695, %v2319_v8  ;;  %v659_v54 = vmul.f32 1.442695, %v658_v36 }
0x36fd   :  { %v1871_v17 = vmul.f32 1.442695, %v1870_v31 }
0x36fe   :  { %2708 = vpow2.f32 %v2320_v25 }
0x36ff   :  { %2710 = vpow2.f32 %v2322_v27 }
0x3704   :  { %v2709_v3 = vpop.eup %2708 }
0x3705   :  { %v2711_v60 = vpop.eup %2710  ;;  %2327 = vperm.xlu0 %2584, %v2709_v3  }
0x3706   :  { %2330 = vperm.xlu2 %2583, %v2711_v60  }
0x3760   :  { %v2331_v4 = vpop.permute.xlu2 %2330 }
0x3761   :  { %v2333_v53 = vperm.slane %v2331_v4, %v2962_v44 }
0x3777   :  { %v2328_v63 = vpop.permute.xlu0 %2327 }
0x3778   :  { %v2332_v15 = vperm.slane %v2328_v63, %v2962_v44 }
0x377a   :  { %v2334_v62 = vsel %vm179_vm5, %v2333_v53, %v2332_v15 }
0x377b   :  { %v2336_v45 = vsel %vm182_vm6, %v2334_v62, 0.0 }
0x377c   :  { %2337 = vadd.xlane.f32.xlu1 %v2336_v45 }
0x37ef   :  { %v2338_v13 = vpop.xlane.xlu1 %2337 }
0x37f0   :  { %v2340_v57 = vperm.slane %v2338_v13, 0  ;;  %v2341_v47 = vperm.slane %v2338_v13, 1 }
0x37f2   :  { %2712 = vrcp.f32 %v2340_v57  ;;  %v2355_v49 = vand.u32 2147483648, %v2340_v57  ;;  %v2370_v56 = vand.u32 2147483648, %v2341_v47  ;;  %v2353_v44 = vand.u32 2147483647, %v2340_v57 }
0x37f3   :  { %2714 = vrcp.f32 %v2341_v47  ;;  %v2368_v52 = vand.u32 2147483647, %v2341_v47  ;;  %vm2349_vm6 = vweird.f32 %v2340_v57  ;;  %vm2364_vm4 = vweird.f32 %v2341_v47 }
0x37f4   :  { %v2356_v59 = vor.u32 1.1754944e-38, %v2355_v49  ;;  %v2371_v40 = vor.u32 1.1754944e-38, %v2370_v56  ;;  %vm2354_vm9 = vcmp.eq.f32.partialorder %v2353_v44, 8.507059e+37  ;;  %2716 = vpow2.f32 %v659_v54 }
0x37f5   :  { %vm2369_vm10 = vcmp.eq.f32.partialorder %v2368_v52, 8.507059e+37  ;;  %2718 = vpow2.f32 %v354_v34  ;;  %v1567_v34 = vsub.f32 %v3640_v14, %v3644_v16 }
0x37f6   :  { %2720 = vpow2.f32 %v1265_v42  ;;  %v2173_v42 = vsub.f32 %v3835_v11, %v3839_v12 }
0x37f7   :  { %2722 = vpow2.f32 %v1871_v17 }
0x37f8   :  { %v2713_v1 = vpop.eup %2712 }
0x37f9   :  { %v2715_v58 = vpop.eup %2714  ;;  %v2345_v2 = vmul.f32 %v2713_v1, %v2340_v57  ;;  %vm2350_vm2 = vweird.f32 %v2713_v1 }
0x37fa   :  { %v2360_v48 = vmul.f32 %v2715_v58, %v2341_v47  ;;  %vm2365_vm3 = vweird.f32 %v2715_v58  ;;  %vm2351_vm7 = vmor %vm2349_vm6, %vm2350_vm2  ;;  %v2717_v55 = vpop.eup %2716 }
0x37fb   :  { %v2346_v22 = vsub.f32 1.0, %v2345_v2  ;;  %vm2366_vm8 = vmor %vm2364_vm4, %vm2365_vm3  ;;  %v661_v18 = vsel %vm349_vm15, %v2717_v55, 0.0  ;;  %v2719_v35 = vpop.eup %2718 }
0x37fc   :  { %v2361_v23 = vsub.f32 1.0, %v2360_v48  ;;  %v356_v21 = vsel %vm349_vm15, %v2719_v35, 0.0  ;;  %v2721_v20 = vpop.eup %2720 }
0x37fd   :  { %v2347_v0 = vmul.f32 %v2713_v1, %v2346_v22  ;;  %v2723_v7 = vpop.eup %2722 }
0x37fe   :  { %v2362_v51 = vmul.f32 %v2715_v58, %v2361_v23  ;;  %v1873_v61 = vsel %vm349_vm15, %v2723_v7, 0.0 }
0x37ff   :  { %v2348_v9 = vadd.f32 %v2713_v1, %v2347_v0 }
0x3800   :  { %v2363_v10 = vadd.f32 %v2715_v58, %v2362_v51 }
0x3801   :  { %v2352_v24 = vsel %vm2351_vm7, %v2713_v1, %v2348_v9 }
0x3802   :  { %v2367_v39 = vsel %vm2366_vm8, %v2715_v58, %v2363_v10  ;;  %v2357_v28 = vsel %vm2354_vm9, %v2356_v59, %v2352_v24 }
0x3803   :  { %v2372_v29 = vsel %vm2369_vm10, %v2371_v40, %v2367_v39  ;;  %v2358_v32 = vmul.f32 %v2709_v3, %v2357_v28 }
0x3804   :  { %v2373_v37 = vmul.f32 %v2711_v60, %v2372_v29 }
0x3805   :  { %2376 = vperm.xlu0 %2584, %v2358_v32  }
0x3806   :  { %2381 = vperm.xlu1 %2585, %v2373_v37   ;;  %v961_v37 = vsub.f32 %v3433_v43, %v3437_v46  ;;  %v2174_v43 = vmul.f32 1.442695, %v2173_v42 }
0x380d   :  { %2425 = vrot.lane.b32.xlu0 %v3858_v50, %s2819_s24  ;;  %v1267_v50 = vsel %vm349_vm15, %v2721_v20, 0.0 }
0x3830   :  { %662 = vadd.xlane.f32.xlu1 %v661_v18 }
0x3837   :  { %357 = vadd.xlane.f32.xlu0 %v356_v21 }
0x383f   :  { %1268 = vadd.xlane.f32.xlu0 %v1267_v50 }
0x3847   :  { %1874 = vadd.xlane.f32.xlu0 %v1873_v61 }
0x3877   :  { %v2377_v26 = vpop.permute.xlu0 %2376 }
0x3878   :  { %v2382_v8 = vpop.permute.xlu1 %2381  ;;  %v2384_v25 = vmul.f32 %v3707_v33, %v2377_v26 }
0x3879   :  { %v2385_v27 = vmul.f32 %v3683_v41, %v2382_v8 }
0x387a   :  { %v2386_v30 = vsel %vm88_vm0, %v2384_v25, 0.0 }
0x387b   :  { %v2393_v6 = vsel %vm88_vm0, %v2385_v27, 0.0  ;;  %v2387_v3 = vrot.slane %v2386_v30, 4 }
0x387c   :  { %v2394_v60 = vrot.slane %v2393_v6, 4 }
0x387d   :  { %v2388_v4 = vadd.f32 %v2387_v3, %v2386_v30 }
0x387e   :  { %v2395_v63 = vadd.f32 %v2394_v60, %v2393_v6 }
0x387f   :  { %v2389_v53 = vrot.slane %v2388_v4, 2  ;;  %v2426_v15 = vpop.permute.xlu0 %2425 }
0x3880   :  { %v2396_v62 = vrot.slane %v2395_v63, 2  ;;  %2489 = vst.msk [vmem:[#allocation3] sm:$0x3] %vm2488_vm11, %v2426_v15  ;;  %2575 = vmatmul.msk.f32.vlgmr.msrb.gmra.mxu0 %vm88_vm0, %v2426_v15 }
0x3881   :  { %v2390_v45 = vadd.f32 %v2389_v53, %v2388_v4  ;;  %2502 = dma.vmem_to_hbm [thread:$0]  %s2498_s4, 32, %s2500_s0, [#allocation4]  }
0x3882   :  { %v2397_v13 = vadd.f32 %v2396_v62, %v2395_v63 }
0x3883   :  { %v2391_v33 = vrot.slane %v2390_v45, 1 }
0x3884   :  { %v2398_v57 = vrot.slane %v2397_v13, 1 }
0x3885   :  { %v2392_v41 = vadd.f32 %v2391_v33, %v2390_v45 }
0x3886   :  { %v2399_v47 = vadd.f32 %v2398_v57, %v2397_v13 }
0x3888   :  { %v2402_v1 = vsel %vm179_vm5, %v2399_v47, %v2392_v41 }
0x3889   :  { %2574 = vmatmul.msk.f32.vlgmr.msrb.gmra.mxu1 %vm88_vm0, %v2402_v1 }
0x38a3   :  { %v663_v58 = vpop.xlane.xlu1 %662 }
0x38a4   :  { %2724 = vlog2.f32 %v663_v58 }
0x38aa   :  { %v2725_v2 = vpop.eup %2724  ;;  %v358_v48 = vpop.xlane.xlu0 %357 }
0x38ab   :  { %v665_v22 = vmul.f32 0.6931472, %v2725_v2  ;;  %2726 = vlog2.f32 %v358_v48 }
0x38ad   :  { %v666_v23 = vsub.f32 %v658_v36, %v665_v22  ;;  %v962_v36 = vmul.f32 1.442695, %v961_v37 }
0x38af   :  { %2523 = vst [vmem:[%s3949_s12 + $0x2] sm:$0x3] %v666_v23 }
0x38b1   :  { %v2727_v49 = vpop.eup %2726 }
0x38b2   :  { %v360_v56 = vmul.f32 0.6931472, %v2727_v49  ;;  %v1269_v0 = vpop.xlane.xlu0 %1268 }
0x38b3   :  { %2728 = vlog2.f32 %v1269_v0 }
0x38b4   :  { %v361_v44 = vsub.f32 %v353_v38, %v360_v56 }
0x38b6   :  { %362 = vst [vmem:[%s3949_s12] sm:$0x3] %v361_v44 }
0x38b9   :  { %v2729_v51 = vpop.eup %2728 }
0x38ba   :  { %v1271_v52 = vmul.f32 0.6931472, %v2729_v51  ;;  %v1875_v9 = vpop.xlane.xlu0 %1874 }
0x38bb   :  { %2730 = vlog2.f32 %v1875_v9 }
0x38bc   :  { %v1272_v10 = vsub.f32 %v1264_v19, %v1271_v52  ;;  %v1568_v19 = vmul.f32 1.442695, %v1567_v34 }
0x38be   :  { %2541 = vst [vmem:[%s3949_s12 + $0x6] sm:$0x3] %v1272_v10 }
0x38c1   :  { %v2731_v59 = vpop.eup %2730 }
0x38c2   :  { %v1877_v40 = vmul.f32 0.6931472, %v2731_v59 }
0x38c4   :  { %v1878_v24 = vsub.f32 %v1870_v31, %v1877_v40 }
0x38c6   :  { %2559 = vst [vmem:[%s3949_s12 + $0xa] sm:$0x3] %v1878_v24 }
0x38fd   :  { %v2446_v39 = vpop.f32.mrf.mxu0 }
0x3906   :  { %v2422_v28 = vpop.f32.mrf.mxu1 }
0x3907   :  { %v2447_v29 = vadd.f32 %v2446_v39, %v2422_v28 }
0x3909   :  { %2732 = vtanh.f32 %v2447_v29 }
0x390a   :  { %2734 = vpow2.f32 %v962_v36 }
0x390b   :  { %2736 = vpow2.f32 %v1568_v19 }
0x390c   :  { %2738 = vpow2.f32 %v2174_v43 }
0x390f   :  { %v2733_v32 = vpop.eup %2732 }
0x3910   :  { %2576 = vmatmul.msk.f32.vlgmr.msra.gmra.mxu1 %vm88_vm0, %v2733_v32  ;;  %v2735_v18 = vpop.eup %2734 }
0x3911   :  { %v964_v35 = vsel %vm349_vm15, %v2735_v18, 0.0  ;;  %v2737_v46 = vpop.eup %2736 }
0x3912   :  { %v2739_v31 = vpop.eup %2738 }
0x3913   :  { %v2176_v14 = vsel %vm349_vm15, %v2739_v31, 0.0 }
0x398d   :  { %v2470_v54 = vpop.f32.mrf.mxu1 }
0x398e   :  { %v2471_v38 = vadd.f32 %v3832_v5, %v2470_v54  ;;  %v1570_v5 = vsel %vm349_vm15, %v2737_v46, 0.0 }
0x3990   :  { %v2473_v55 = vsel %vm349_vm15, %v2471_v38, -inf }
0x3991   :  { %2474 = vmax.xlane.f32.xlu2 %v2473_v55 }
0x3999   :  { %965 = vadd.xlane.f32.xlu2 %v964_v35 }
0x39a1   :  { %1571 = vadd.xlane.f32.xlu2 %v1570_v5 }
0x39a9   :  { %2177 = vadd.xlane.f32.xlu2 %v2176_v14 }
0x3a04   :  { %v2475_v16 = vpop.xlane.xlu2 %2474 }
0x3a05   :  { %v2476_v21 = vsub.f32 %v2471_v38, %v2475_v16 }
0x3a07   :  { %v2477_v17 = vmul.f32 1.442695, %v2476_v21 }
0x3a09   :  { %2740 = vpow2.f32 %v2477_v17 }
0x3a0c   :  { %v966_v20 = vpop.xlane.xlu2 %965 }
0x3a0d   :  { %2742 = vlog2.f32 %v966_v20 }
0x3a0f   :  { %v2741_v11 = vpop.eup %2740 }
0x3a10   :  { %v2479_v12 = vsel %vm349_vm15, %v2741_v11, 0.0 }
0x3a11   :  { %2480 = vadd.xlane.f32.xlu1 %v2479_v12 }
0x3a13   :  { %v2743_v50 = vpop.eup %2742 }
0x3a14   :  { %v968_v7 = vmul.f32 0.6931472, %v2743_v50  ;;  %v1572_v61 = vpop.xlane.xlu2 %1571 }
0x3a15   :  { %2744 = vlog2.f32 %v1572_v61 }
0x3a16   :  { %v969_v26 = vsub.f32 %v961_v37, %v968_v7 }
0x3a18   :  { %2532 = vst [vmem:[%s3949_s12 + $0x4] sm:$0x3] %v969_v26 }
0x3a1b   :  { %v2745_v8 = vpop.eup %2744 }
0x3a1c   :  { %v1574_v25 = vmul.f32 0.6931472, %v2745_v8  ;;  %v2178_v27 = vpop.xlane.xlu2 %2177 }
0x3a1d   :  { %2746 = vlog2.f32 %v2178_v27 }
0x3a1e   :  { %v1575_v30 = vsub.f32 %v1567_v34, %v1574_v25 }
0x3a20   :  { %2550 = vst [vmem:[%s3949_s12 + $0x8] sm:$0x3] %v1575_v30 }
0x3a23   :  { %v2747_v6 = vpop.eup %2746 }
0x3a24   :  { %v2180_v3 = vmul.f32 0.6931472, %v2747_v6 }
0x3a26   :  { %v2181_v60 = vsub.f32 %v2173_v42, %v2180_v3 }
0x3a28   :  { %2568 = vst [vmem:[%s3949_s12 + $0xc] sm:$0x3] %v2181_v60 }
0x3a84   :  { %v2481_v4 = vpop.xlane.xlu1 %2480 }
0x3a85   :  { %2748 = vlog2.f32 %v2481_v4 }
0x3a8b   :  { %v2749_v63 = vpop.eup %2748 }
0x3a8c   :  { %v2483_v53 = vmul.f32 0.6931472, %v2749_v63 }
0x3a8e   :  { %v2484_v15 = vsub.f32 %v2476_v21, %v2483_v53 }
0x3a90   :  { %2577 = vst [vmem:[%s3949_s12 + $0xe] sm:$0x3] %v2484_v15 }
0x3a91   :  { %2816 = dma.done.wait [#allocation4], 32  }
0x3a92   :  { %2817 = vsyncadd [#allocation4], 4294967264 }
0x3a93   :  { %2509 = vsyncpa [#allocation4], 1 }

</bundles_post_ra>
